<compile_context>
chip_gen: v7x
topology: tpu7x:2x2x1
jax: 0.10.0
libtpu: 0.0.40
codegen_flags: <defaults>
</compile_context>

<pallas_src>
import functools

import jax
import jax.numpy as jnp
import numpy as np
from jax.experimental import pallas as pl
from jax.experimental.pallas import tpu as pltpu

EPS = float(jnp.finfo(jnp.float32).eps)   # nn.RMSNorm(eps=None) uses finfo eps
NEG_INF = -1e30


def _matmul_dtype():
    """bf16 operands (f32 accumulate) on real TPU; f32 elsewhere (CPU interpret sandbox)."""
    return jnp.bfloat16 if jax.default_backend() == "tpu" else jnp.float32


# ------------------------------- fused kernel ------------------------------- #

def _titans_kernel(xc_ref, xp_ref, ga_ref, wqkv_ref, wo_ref, pmk_ref, pmv_ref,
                   rotc_ref, rotp_ref, gf_ref, w1_ref, b1_ref, w2_ref, b2_ref,
                   y_ref, v_ref, *, heads, dim_head, window, tile, prev_rows,
                   scale, di_pad, mm_dtype):
    """One (batch, query-tile) step: attention (+residual) and FFN (+residual)."""
    t = pl.program_id(1)
    hd = heads * dim_head
    mm = mm_dtype

    def rmsnorm(z, g):
        ms = jnp.mean(z * z, axis=-1, keepdims=True)
        return z * jax.lax.rsqrt(ms + EPS) * g

    def rope(z, rot):
        # interleaved rotary; signs pre-folded into rot[1]/rot[2] so only two XLU rolls.
        return (z * rot[0]
                + pltpu.roll(z, hd - 1, 1) * rot[1]    # z[j+1] used on even lanes
                + pltpu.roll(z, 1, 1) * rot[2])        # z[j-1] used on odd lanes

    ga = ga_ref[...]
    x = xc_ref[0]                                   # (TQ, D)  f32, current query tile
    xn = rmsnorm(x, ga)
    xnp = rmsnorm(xp_ref[0], ga)                    # (W, D)   last `window` rows of prev tile

    wqkv = wqkv_ref[...]                            # (D, 3*hd) fused QKV weight
    qkv = jnp.dot(xn.astype(mm), wqkv, preferred_element_type=jnp.float32)           # (TQ, 3hd)
    kvp = jnp.dot(xnp.astype(mm), wqkv[:, hd:], preferred_element_type=jnp.float32)  # (W, 2hd)

    q, k, v = qkv[:, :hd], qkv[:, hd:2 * hd], qkv[:, 2 * hd:]
    kp, vp = kvp[:, :hd], kvp[:, hd:]

    v_ref[0] = v                                    # orig per-head V (value residual output)

    q = rope(q, rotc_ref[...]).astype(mm)
    k = rope(k, rotc_ref[...]).astype(mm)
    kp = rope(kp, rotp_ref[...]).astype(mm)
    vb = v.astype(mm)
    vpb = vp.astype(mm)

    # masks (shared across heads; depend on grid index only through the scalar t > 0)
    r_c = jax.lax.broadcasted_iota(jnp.int32, (tile, tile), 0)
    c_c = jax.lax.broadcasted_iota(jnp.int32, (tile, tile), 1)
    mask_cur = (r_c >= c_c) & ((r_c - c_c) <= window)
    r_p = jax.lax.broadcasted_iota(jnp.int32, (tile, prev_rows), 0)
    c_p = jax.lax.broadcasted_iota(jnp.int32, (tile, prev_rows), 1)
    mask_prev = (r_p <= c_p) & (t > 0)              # prev keys are exactly `window` back

    outs = []
    for h in range(heads):                          # heads is small; tiles are small
        sl = slice(h * dim_head, (h + 1) * dim_head)
        qh = q[:, sl]
        s_c = jax.lax.dot_general(qh, k[:, sl], (((1,), (1,)), ((), ())),
                                  preferred_element_type=jnp.float32) * scale
        s_p = jax.lax.dot_general(qh, kp[:, sl], (((1,), (1,)), ((), ())),
                                  preferred_element_type=jnp.float32) * scale
        s_m = jax.lax.dot_general(qh, pmk_ref[h], (((1,), (1,)), ((), ())),
                                  preferred_element_type=jnp.float32) * scale
        s_c = jnp.where(mask_cur, s_c, NEG_INF)
        s_p = jnp.where(mask_prev, s_p, NEG_INF)

        m = jnp.maximum(jnp.maximum(jnp.max(s_c, -1, keepdims=True),
                                    jnp.max(s_p, -1, keepdims=True)),
                        jnp.max(s_m, -1, keepdims=True))
        p_c = jnp.exp(s_c - m)
        p_p = jnp.exp(s_p - m)
        p_m = jnp.exp(s_m - m)
        denom = (jnp.sum(p_c, -1, keepdims=True) + jnp.sum(p_p, -1, keepdims=True)
                 + jnp.sum(p_m, -1, keepdims=True))

        o = (jnp.dot(p_c.astype(mm), vb[:, sl], preferred_element_type=jnp.float32)
             + jnp.dot(p_p.astype(mm), vpb[:, sl], preferred_element_type=jnp.float32)
             + jnp.dot(p_m.astype(mm), pmv_ref[h], preferred_element_type=jnp.float32))
        outs.append(o / denom)

    o_all = jnp.concatenate(outs, axis=-1)          # (TQ, hd) -> single Wo matmul
    x1 = x + jnp.dot(o_all.astype(mm), wo_ref[...], preferred_element_type=jnp.float32)

    # --- FFN: RMSNorm -> Linear -> GEGLU -> Linear (+ residual), di padded to 128 ---
    xn2 = rmsnorm(x1, gf_ref[...])
    h1 = jnp.dot(xn2.astype(mm), w1_ref[...], preferred_element_type=jnp.float32) + b1_ref[...]
    a, gt = h1[:, :di_pad], h1[:, di_pad:]
    # TODO(synk): torch F.gelu default is erf-exact; tanh approximation used for Mosaic-safe lowering.
    hidden = a * jax.nn.gelu(gt, approximate=True)
    out = jnp.dot(hidden.astype(mm), w2_ref[...], preferred_element_type=jnp.float32) + b2_ref[...]
    y_ref[0] = x1 + out


# ------------------------------ wrapper / glue ------------------------------ #

def init_params(key, dim, heads, dim_head, num_persist_mem_tokens, ff_mult):
    """Deterministic parameter init; shapes follow TitansBlock.__init__ (default cfg)."""
    dim_attn = heads * dim_head
    dim_ffn = int(dim * ff_mult * 2 / 3)
    ks = jax.random.split(key, 12)
    s = 0.02
    return dict(
        g_att=1.0 + 0.05 * jax.random.normal(ks[0], (1, dim), jnp.float32),
        wq=s * jax.random.normal(ks[1], (dim, dim_attn), jnp.float32),
        wk=s * jax.random.normal(ks[2], (dim, dim_attn), jnp.float32),
        wv=s * jax.random.normal(ks[3], (dim, dim_attn), jnp.float32),
        wo=s * jax.random.normal(ks[4], (dim_attn, dim), jnp.float32),
        pmk=s * jax.random.normal(ks[5], (heads, num_persist_mem_tokens, dim_head), jnp.float32),
        pmv=s * jax.random.normal(ks[6], (heads, num_persist_mem_tokens, dim_head), jnp.float32),
        g_ffn=1.0 + 0.05 * jax.random.normal(ks[7], (1, dim), jnp.float32),
        w1=s * jax.random.normal(ks[8], (dim, 2 * dim_ffn), jnp.float32),
        b1=s * jax.random.normal(ks[9], (1, 2 * dim_ffn), jnp.float32),
        w2=s * jax.random.normal(ks[10], (dim_ffn, dim), jnp.float32),
        b2=s * jax.random.normal(ks[11], (1, dim), jnp.float32),
    )


def _rotary_tables(n, heads, dim_head):
    inv_freq = 1.0 / (10000.0 ** (jnp.arange(0, dim_head, 2, dtype=jnp.float32) / dim_head))
    t = jnp.arange(n, dtype=jnp.float32)
    freqs = jnp.repeat(t[:, None] * inv_freq[None, :], 2, axis=-1)   # (n, dim_head) interleaved
    cos = jnp.tile(jnp.cos(freqs), (1, heads))                       # (n, heads*dim_head)
    sin = jnp.tile(jnp.sin(freqs), (1, heads))
    return cos, sin


def titans_block_forward(x, params, *, heads, dim_head, segment_len,
                         num_longterm_mem_tokens=0, q_tile=256):
    """Pallas implementation of TitansBlock.forward (default config, self.mem is None)."""
    B, N, D = x.shape
    H, Dh = heads, dim_head
    hd = H * Dh
    P = params["pmk"].shape[1]
    W = segment_len + num_longterm_mem_tokens
    assert W % 8 == 0, "attention window must be a multiple of 8 for this kernel"

    # query tile: a multiple of the attention window (>= W) so that the current tile plus the
    # last W rows of the previous tile cover the whole sliding window.
    TQ = W * max(1, min(q_tile, 1024) // W)
    R = TQ // W                                      # W-sized blocks per query tile
    Np = -(-N // TQ) * TQ
    NT = Np // TQ
    x_in = jnp.pad(x, ((0, 0), (0, Np - N), (0, 0))) if Np != N else x

    # rotary tables with the interleave sign folded in (rot = [cos, sin_even(-), sin_odd(+)])
    cos, sin = _rotary_tables(Np, H, Dh)
    even = (jnp.arange(hd) % 2) == 0
    rot = jnp.stack([cos, jnp.where(even, -sin, 0.0), jnp.where(even, 0.0, sin)], axis=0)

    mm = _matmul_dtype()
    wqkv = jnp.concatenate([params["wq"], params["wk"], params["wv"]], axis=1).astype(mm)
    wo = params["wo"].astype(mm)
    pmk = params["pmk"].astype(mm)
    pmv = params["pmv"].astype(mm)

    # pad FFN hidden dim to a multiple of 128 (zero pad -> numerically identical)
    di_raw = params["w2"].shape[0]
    di = -(-di_raw // 128) * 128
    padc = di - di_raw
    w1v, w1g = params["w1"][:, :di_raw], params["w1"][:, di_raw:]
    b1v, b1g = params["b1"][:, :di_raw], params["b1"][:, di_raw:]
    w1 = jnp.concatenate([jnp.pad(w1v, ((0, 0), (0, padc))),
                          jnp.pad(w1g, ((0, 0), (0, padc)))], axis=1).astype(mm)
    b1 = jnp.concatenate([jnp.pad(b1v, ((0, 0), (0, padc))),
                          jnp.pad(b1g, ((0, 0), (0, padc)))], axis=1)
    w2 = jnp.pad(params["w2"], ((0, padc), (0, 0))).astype(mm)

    scale = Dh ** -0.5
    kernel = functools.partial(_titans_kernel, heads=H, dim_head=Dh, window=W,
                               tile=TQ, prev_rows=W, scale=scale, di_pad=di, mm_dtype=mm)

    prev_blk = lambda b, t: (0, jnp.maximum(t * R - 1, 0), 0)   # last W rows of previous tile

    y, v_flat = pl.pallas_call(
        kernel,
        out_shape=(jax.ShapeDtypeStruct((B, Np, D), jnp.float32),
                   jax.ShapeDtypeStruct((B, Np, hd), jnp.float32)),
        grid=(B, NT),
        in_specs=[
            pl.BlockSpec((1, TQ, D), lambda b, t: (b, t, 0)),                          # x (cur tile)
            pl.BlockSpec((1, W, D), lambda b, t: (b, jnp.maximum(t * R - 1, 0), 0)),   # x (prev rows)
            pl.BlockSpec((1, D), lambda b, t: (0, 0)),                                 # att RMSNorm g
            pl.BlockSpec((D, 3 * hd), lambda b, t: (0, 0)),                            # fused Wqkv
            pl.BlockSpec((hd, D), lambda b, t: (0, 0)),                                # Wo
            pl.BlockSpec((H, P, Dh), lambda b, t: (0, 0, 0)),                          # persistent K
            pl.BlockSpec((H, P, Dh), lambda b, t: (0, 0, 0)),                          # persistent V
            pl.BlockSpec((3, TQ, hd), lambda b, t: (0, t, 0)),                         # rot (cur tile)
            pl.BlockSpec((3, W, hd), prev_blk),                                        # rot (prev rows)
            pl.BlockSpec((1, D), lambda b, t: (0, 0)),                                 # ffn RMSNorm g
            pl.BlockSpec((D, 2 * di), lambda b, t: (0, 0)),                            # W1 (padded)
            pl.BlockSpec((1, 2 * di), lambda b, t: (0, 0)),                            # b1 (padded)
            pl.BlockSpec((di, D), lambda b, t: (0, 0)),                                # W2 (padded)
            pl.BlockSpec((1, D), lambda b, t: (0, 0)),                                 # b2
        ],
        out_specs=(pl.BlockSpec((1, TQ, D), lambda b, t: (b, t, 0)),
                   pl.BlockSpec((1, TQ, hd), lambda b, t: (b, t, 0))),
        compiler_params=pltpu.CompilerParams(
            dimension_semantics=("parallel", "parallel"),
            vmem_limit_bytes=48 * 1024 * 1024),
    )(x_in, x_in, params["g_att"], wqkv, wo, pmk, pmv, rot, rot,
      params["g_ffn"], w1, b1, w2, params["b2"])

    y = y[:, :N]
    values = v_flat.reshape(B, Np, H, Dh).transpose(0, 2, 1, 3)[:, :, :N]   # (B, H, N, Dh)
    mem_weight_residual = None   # self.mem is None for default neural_memory_layers
    return y, mem_weight_residual, values


# --------------------------- pure-JAX reference ----------------------------- #
# Mirrors the kernel's matmul-operand dtype / f32-accumulate numerics so the comparison only
# checks the kernel's structure (tiling, masking, rotary, GEGLU, residuals).

def _rmsnorm_ref(x, g):
    return x * jax.lax.rsqrt(jnp.mean(x * x, axis=-1, keepdims=True) + EPS) * g


def _rot_half_ref(t):
    tr = t.reshape(t.shape[:-1] + (t.shape[-1] // 2, 2))
    return jnp.stack([-tr[..., 1], tr[..., 0]], axis=-1).reshape(t.shape)


def reference_forward(x, params, *, heads, dim_head, segment_len, num_longterm_mem_tokens=0):
    B, N, D = x.shape
    H, Dh = heads, dim_head
    W = segment_len + num_longterm_mem_tokens
    Np = -(-N // W) * W
    xp = jnp.pad(x, ((0, 0), (0, Np - N), (0, 0))) if Np != N else x
    mm = _matmul_dtype()

    cos, sin = _rotary_tables(Np, H, Dh)
    cos, sin = cos[None], sin[None]

    xn = _rmsnorm_ref(xp, params["g_att"][0]).astype(mm)
    q = jnp.dot(xn, params["wq"].astype(mm), preferred_element_type=jnp.float32)
    k = jnp.dot(xn, params["wk"].astype(mm), preferred_element_type=jnp.float32)
    v = jnp.dot(xn, params["wv"].astype(mm), preferred_element_type=jnp.float32)
    qr = (q * cos + _rot_half_ref(q) * sin).astype(mm)
    kr = (k * cos + _rot_half_ref(k) * sin).astype(mm)

    def split(t):
        return t.reshape(B, Np, H, Dh).transpose(0, 2, 1, 3)

    qh, kh, vh = split(qr), split(kr), split(v)
    scale = Dh ** -0.5
    s = jnp.einsum("bhid,bhjd->bhij", qh, kh, preferred_element_type=jnp.float32) * scale
    i = jnp.arange(Np)[:, None]
    j = jnp.arange(Np)[None, :]
    allowed = (i >= j) & ((i - j) <= W)
    s = jnp.where(allowed[None, None], s, NEG_INF)
    s_pm = jnp.einsum("bhid,hpd->bhip", qh, params["pmk"].astype(mm),
                      preferred_element_type=jnp.float32) * scale
    m = jnp.maximum(s.max(-1, keepdims=True), s_pm.max(-1, keepdims=True))
    p = jnp.exp(s - m)
    p_pm = jnp.exp(s_pm - m)
    denom = p.sum(-1, keepdims=True) + p_pm.sum(-1, keepdims=True)
    o = (jnp.einsum("bhij,bhjd->bhid", p.astype(mm), vh.astype(mm),
                    preferred_element_type=jnp.float32)
         + jnp.einsum("bhip,hpd->bhid", p_pm.astype(mm), params["pmv"].astype(mm),
                      preferred_element_type=jnp.float32)) / denom
    attn = jnp.dot(o.transpose(0, 2, 1, 3).reshape(B, Np, H * Dh).astype(mm),
                   params["wo"].astype(mm), preferred_element_type=jnp.float32)
    x1 = xp + attn

    di = params["w2"].shape[0]
    xn2 = _rmsnorm_ref(x1, params["g_ffn"][0]).astype(mm)
    h1 = jnp.dot(xn2, params["w1"].astype(mm), preferred_element_type=jnp.float32) + params["b1"][0]
    a, gt = h1[..., :di], h1[..., di:]
    hidden = a * jax.nn.gelu(gt, approximate=True)
    x2 = x1 + (jnp.dot(hidden.astype(mm), params["w2"].astype(mm),
                       preferred_element_type=jnp.float32) + params["b2"][0])
    return x2[:, :N], None, vh[:, :, :N]


# ----------------------------------- main ----------------------------------- #

if __name__ == "__main__":
    key = jax.random.PRNGKey(0)
    B, N = 2, 80                        # N not a multiple of the tile -> exercises padding
    dim, heads, dim_head = 128, 4, 32   # lane-dense D and heads*dim_head (=128)
    segment_len, num_persist = 32, 4
    ff_mult = 4

    kx, kp = jax.random.split(key)
    x = jax.random.normal(kx, (B, N, dim), jnp.float32)
    params = init_params(kp, dim, heads, dim_head, num_persist, ff_mult)

    # q_tile=32 -> 3 query tiles of 32 rows; exercises the banded prev-window path.
    y, mem_w_res, values = titans_block_forward(
        x, params, heads=heads, dim_head=dim_head, segment_len=segment_len, q_tile=32)
    jax.block_until_ready((y, values))

    y_ref, _, v_ref = reference_forward(
        x, params, heads=heads, dim_head=dim_head, segment_len=segment_len)
    np.testing.assert_allclose(np.asarray(y), np.asarray(y_ref), rtol=5e-3, atol=5e-3)
    np.testing.assert_allclose(np.asarray(values), np.asarray(v_ref), rtol=5e-3, atol=5e-3)

    print("KERNEL_OK")
</pallas_src>

<mosaic_0001>
module attributes {stable_mosaic.version = 11 : i64} {
  func.func @_titans_kernel(%arg0: i32, %arg1: i32, %arg2: memref<1x32x128xf32, #tpu.memory_space<vmem>>, %arg3: memref<1x32x128xf32, #tpu.memory_space<vmem>>, %arg4: memref<1x128xf32, #tpu.memory_space<vmem>>, %arg5: memref<128x384xf32, #tpu.memory_space<vmem>>, %arg6: memref<128x128xf32, #tpu.memory_space<vmem>>, %arg7: memref<4x4x32xf32, #tpu.memory_space<vmem>>, %arg8: memref<4x4x32xf32, #tpu.memory_space<vmem>>, %arg9: memref<3x32x128xf32, #tpu.memory_space<vmem>>, %arg10: memref<3x32x128xf32, #tpu.memory_space<vmem>>, %arg11: memref<1x128xf32, #tpu.memory_space<vmem>>, %arg12: memref<128x768xf32, #tpu.memory_space<vmem>>, %arg13: memref<1x768xf32, #tpu.memory_space<vmem>>, %arg14: memref<384x128xf32, #tpu.memory_space<vmem>>, %arg15: memref<1x128xf32, #tpu.memory_space<vmem>>, %arg16: memref<1x32x128xf32, #tpu.memory_space<vmem>>, %arg17: memref<1x32x128xf32, #tpu.memory_space<vmem>>) attributes {dimension_semantics = [#tpu.dimension_semantics<parallel>, #tpu.dimension_semantics<parallel>], iteration_bounds = array<i64: 2, 3>, scalar_prefetch = 0 : i64, scratch_operands = 0 : i64, tpu.core_type = #tpu.core_type<tc>, window_params = [{transform_indices = @transform_0, window_bounds = array<i64: 1, 32, 128>}, {transform_indices = @transform_1, window_bounds = array<i64: 1, 32, 128>}, {pipeline_mode = #tpu.pipeline_mode<synchronous>, transform_indices = @transform_2, window_bounds = array<i64: 1, 128>}, {pipeline_mode = #tpu.pipeline_mode<synchronous>, transform_indices = @transform_3, window_bounds = array<i64: 128, 384>}, {pipeline_mode = #tpu.pipeline_mode<synchronous>, transform_indices = @transform_4, window_bounds = array<i64: 128, 128>}, {pipeline_mode = #tpu.pipeline_mode<synchronous>, transform_indices = @transform_5, window_bounds = array<i64: 4, 4, 32>}, {pipeline_mode = #tpu.pipeline_mode<synchronous>, transform_indices = @transform_6, window_bounds = array<i64: 4, 4, 32>}, {transform_indices = @transform_7, window_bounds = array<i64: 3, 32, 128>}, {transform_indices = @transform_8, window_bounds = array<i64: 3, 32, 128>}, {pipeline_mode = #tpu.pipeline_mode<synchronous>, transform_indices = @transform_9, window_bounds = array<i64: 1, 128>}, {pipeline_mode = #tpu.pipeline_mode<synchronous>, transform_indices = @transform_10, window_bounds = array<i64: 128, 768>}, {pipeline_mode = #tpu.pipeline_mode<synchronous>, transform_indices = @transform_11, window_bounds = array<i64: 1, 768>}, {pipeline_mode = #tpu.pipeline_mode<synchronous>, transform_indices = @transform_12, window_bounds = array<i64: 384, 128>}, {pipeline_mode = #tpu.pipeline_mode<synchronous>, transform_indices = @transform_13, window_bounds = array<i64: 1, 128>}, {transform_indices = @transform_14, window_bounds = array<i64: 1, 32, 128>}, {transform_indices = @transform_15, window_bounds = array<i64: 1, 32, 128>}]} {
    %c0 = arith.constant 0 : index
    %c0_0 = arith.constant 0 : index
    %0 = vector.load %arg4[%c0, %c0_0] : memref<1x128xf32, #tpu.memory_space<vmem>>, vector<1x128xf32>
    %c0_1 = arith.constant 0 : index
    %c0_2 = arith.constant 0 : index
    %c0_3 = arith.constant 0 : index
    %1 = vector.load %arg2[%c0_1, %c0_2, %c0_3] : memref<1x32x128xf32, #tpu.memory_space<vmem>>, vector<1x32x128xf32>
    %2 = vector.shape_cast %1 : vector<1x32x128xf32> to vector<32x128xf32>
    %3 = arith.mulf %2, %2 : vector<32x128xf32>
    %cst = arith.constant dense<0.000000e+00> : vector<32xf32>
    %4 = vector.multi_reduction <add>, %3, %cst [1] : vector<32x128xf32> to vector<32xf32>
    %5 = vector.shape_cast %4 : vector<32xf32> to vector<32x1xf32>
    %cst_4 = arith.constant 1.280000e+02 : f32
    %6 = vector.broadcast %cst_4 : f32 to vector<32x1xf32>
    %7 = arith.divf %5, %6 : vector<32x1xf32>
    %cst_5 = arith.constant 1.1920929E-7 : f32
    %8 = vector.broadcast %cst_5 : f32 to vector<32x1xf32>
    %9 = arith.addf %7, %8 : vector<32x1xf32>
    %10 = math.rsqrt %9 : vector<32x1xf32>
    %11 = vector.broadcast %10 : vector<32x1xf32> to vector<32x128xf32>
    %12 = arith.mulf %2, %11 : vector<32x128xf32>
    %13 = vector.broadcast %0 : vector<1x128xf32> to vector<32x128xf32>
    %14 = arith.mulf %12, %13 : vector<32x128xf32>
    %c0_6 = arith.constant 0 : index
    %c0_7 = arith.constant 0 : index
    %c0_8 = arith.constant 0 : index
    %15 = vector.load %arg3[%c0_6, %c0_7, %c0_8] : memref<1x32x128xf32, #tpu.memory_space<vmem>>, vector<1x32x128xf32>
    %16 = vector.shape_cast %15 : vector<1x32x128xf32> to vector<32x128xf32>
    %17 = arith.mulf %16, %16 : vector<32x128xf32>
    %cst_9 = arith.constant dense<0.000000e+00> : vector<32xf32>
    %18 = vector.multi_reduction <add>, %17, %cst_9 [1] : vector<32x128xf32> to vector<32xf32>
    %19 = vector.shape_cast %18 : vector<32xf32> to vector<32x1xf32>
    %cst_10 = arith.constant 1.280000e+02 : f32
    %20 = vector.broadcast %cst_10 : f32 to vector<32x1xf32>
    %21 = arith.divf %19, %20 : vector<32x1xf32>
    %cst_11 = arith.constant 1.1920929E-7 : f32
    %22 = vector.broadcast %cst_11 : f32 to vector<32x1xf32>
    %23 = arith.addf %21, %22 : vector<32x1xf32>
    %24 = math.rsqrt %23 : vector<32x1xf32>
    %25 = vector.broadcast %24 : vector<32x1xf32> to vector<32x128xf32>
    %26 = arith.mulf %16, %25 : vector<32x128xf32>
    %27 = vector.broadcast %0 : vector<1x128xf32> to vector<32x128xf32>
    %28 = arith.mulf %26, %27 : vector<32x128xf32>
    %c0_12 = arith.constant 0 : index
    %c0_13 = arith.constant 0 : index
    %29 = vector.load %arg5[%c0_12, %c0_13] : memref<128x384xf32, #tpu.memory_space<vmem>>, vector<128x384xf32>
    %cst_14 = arith.constant dense<0.000000e+00> : vector<32x384xf32>
    %30 = tpu.matmul %14, %29, %cst_14 {dimension_numbers = #tpu.dot_dimension_numbers<[1], [0], [0], [1], [0, 0, 1, 1], [], []>} : vector<32x128xf32>, vector<128x384xf32>, vector<32x384xf32> -> vector<32x384xf32>
    %31 = vector.extract_strided_slice %29 {offsets = [0, 128], sizes = [128, 256], strides = [1, 1]} : vector<128x384xf32> to vector<128x256xf32>
    %cst_15 = arith.constant dense<0.000000e+00> : vector<32x256xf32>
    %32 = tpu.matmul %28, %31, %cst_15 {dimension_numbers = #tpu.dot_dimension_numbers<[1], [0], [0], [1], [0, 0, 1, 1], [], []>} : vector<32x128xf32>, vector<128x256xf32>, vector<32x256xf32> -> vector<32x256xf32>
    %33 = vector.extract_strided_slice %30 {offsets = [0, 0], sizes = [32, 128], strides = [1, 1]} : vector<32x384xf32> to vector<32x128xf32>
    %34 = vector.extract_strided_slice %30 {offsets = [0, 128], sizes = [32, 128], strides = [1, 1]} : vector<32x384xf32> to vector<32x128xf32>
    %35 = vector.extract_strided_slice %30 {offsets = [0, 256], sizes = [32, 128], strides = [1, 1]} : vector<32x384xf32> to vector<32x128xf32>
    %36 = vector.extract_strided_slice %32 {offsets = [0, 0], sizes = [32, 128], strides = [1, 1]} : vector<32x256xf32> to vector<32x128xf32>
    %37 = vector.extract_strided_slice %32 {offsets = [0, 128], sizes = [32, 128], strides = [1, 1]} : vector<32x256xf32> to vector<32x128xf32>
    %c0_16 = arith.constant 0 : index
    %c0_17 = arith.constant 0 : index
    %c0_18 = arith.constant 0 : index
    %38 = vector.load %arg17[%c0_16, %c0_17, %c0_18] : memref<1x32x128xf32, #tpu.memory_space<vmem>>, vector<1x32x128xf32>
    %39 = vector.shape_cast %38 : vector<1x32x128xf32> to vector<32x128xf32>
    %40 = vector.shape_cast %35 : vector<32x128xf32> to vector<1x32x128xf32>
    tpu.vector_store %arg17[%c0_16, %c0_17, %c0_18], %40 {strides = array<i32>} : memref<1x32x128xf32, #tpu.memory_space<vmem>>, vector<1x32x128xf32>,
    %c0_19 = arith.constant 0 : index
    %c0_20 = arith.constant 0 : index
    %c0_21 = arith.constant 0 : index
    %41 = vector.load %arg9[%c0_19, %c0_20, %c0_21] : memref<3x32x128xf32, #tpu.memory_space<vmem>>, vector<3x32x128xf32>
    %42 = vector.extract_strided_slice %41 {offsets = [0, 0, 0], sizes = [1, 32, 128], strides = [1, 1, 1]} : vector<3x32x128xf32> to vector<1x32x128xf32>
    %43 = vector.shape_cast %42 : vector<1x32x128xf32> to vector<32x128xf32>
    %44 = arith.mulf %33, %43 : vector<32x128xf32>
    %c127_i32 = arith.constant 127 : i32
    %45 = tpu.dynamic_rotate %33 by %c127_i32 dim 1 : vector<32x128xf32>, i32 -> vector<32x128xf32>
    %46 = vector.extract_strided_slice %41 {offsets = [1, 0, 0], sizes = [1, 32, 128], strides = [1, 1, 1]} : vector<3x32x128xf32> to vector<1x32x128xf32>
    %47 = vector.shape_cast %46 : vector<1x32x128xf32> to vector<32x128xf32>
    %48 = arith.mulf %45, %47 : vector<32x128xf32>
    %49 = arith.addf %44, %48 : vector<32x128xf32>
    %c1_i32 = arith.constant 1 : i32
    %50 = tpu.dynamic_rotate %33 by %c1_i32 dim 1 : vector<32x128xf32>, i32 -> vector<32x128xf32>
    %51 = vector.extract_strided_slice %41 {offsets = [2, 0, 0], sizes = [1, 32, 128], strides = [1, 1, 1]} : vector<3x32x128xf32> to vector<1x32x128xf32>
    %52 = vector.shape_cast %51 : vector<1x32x128xf32> to vector<32x128xf32>
    %53 = arith.mulf %50, %52 : vector<32x128xf32>
    %54 = arith.addf %49, %53 : vector<32x128xf32>
    %c0_22 = arith.constant 0 : index
    %c0_23 = arith.constant 0 : index
    %c0_24 = arith.constant 0 : index
    %55 = vector.load %arg9[%c0_22, %c0_23, %c0_24] : memref<3x32x128xf32, #tpu.memory_space<vmem>>, vector<3x32x128xf32>
    %56 = vector.extract_strided_slice %55 {offsets = [0, 0, 0], sizes = [1, 32, 128], strides = [1, 1, 1]} : vector<3x32x128xf32> to vector<1x32x128xf32>
    %57 = vector.shape_cast %56 : vector<1x32x128xf32> to vector<32x128xf32>
    %58 = arith.mulf %34, %57 : vector<32x128xf32>
    %c127_i32_25 = arith.constant 127 : i32
    %59 = tpu.dynamic_rotate %34 by %c127_i32_25 dim 1 : vector<32x128xf32>, i32 -> vector<32x128xf32>
    %60 = vector.extract_strided_slice %55 {offsets = [1, 0, 0], sizes = [1, 32, 128], strides = [1, 1, 1]} : vector<3x32x128xf32> to vector<1x32x128xf32>
    %61 = vector.shape_cast %60 : vector<1x32x128xf32> to vector<32x128xf32>
    %62 = arith.mulf %59, %61 : vector<32x128xf32>
    %63 = arith.addf %58, %62 : vector<32x128xf32>
    %c1_i32_26 = arith.constant 1 : i32
    %64 = tpu.dynamic_rotate %34 by %c1_i32_26 dim 1 : vector<32x128xf32>, i32 -> vector<32x128xf32>
    %65 = vector.extract_strided_slice %55 {offsets = [2, 0, 0], sizes = [1, 32, 128], strides = [1, 1, 1]} : vector<3x32x128xf32> to vector<1x32x128xf32>
    %66 = vector.shape_cast %65 : vector<1x32x128xf32> to vector<32x128xf32>
    %67 = arith.mulf %64, %66 : vector<32x128xf32>
    %68 = arith.addf %63, %67 : vector<32x128xf32>
    %c0_27 = arith.constant 0 : index
    %c0_28 = arith.constant 0 : index
    %c0_29 = arith.constant 0 : index
    %69 = vector.load %arg10[%c0_27, %c0_28, %c0_29] : memref<3x32x128xf32, #tpu.memory_space<vmem>>, vector<3x32x128xf32>
    %70 = vector.extract_strided_slice %69 {offsets = [0, 0, 0], sizes = [1, 32, 128], strides = [1, 1, 1]} : vector<3x32x128xf32> to vector<1x32x128xf32>
    %71 = vector.shape_cast %70 : vector<1x32x128xf32> to vector<32x128xf32>
    %72 = arith.mulf %36, %71 : vector<32x128xf32>
    %c127_i32_30 = arith.constant 127 : i32
    %73 = tpu.dynamic_rotate %36 by %c127_i32_30 dim 1 : vector<32x128xf32>, i32 -> vector<32x128xf32>
    %74 = vector.extract_strided_slice %69 {offsets = [1, 0, 0], sizes = [1, 32, 128], strides = [1, 1, 1]} : vector<3x32x128xf32> to vector<1x32x128xf32>
    %75 = vector.shape_cast %74 : vector<1x32x128xf32> to vector<32x128xf32>
    %76 = arith.mulf %73, %75 : vector<32x128xf32>
    %77 = arith.addf %72, %76 : vector<32x128xf32>
    %c1_i32_31 = arith.constant 1 : i32
    %78 = tpu.dynamic_rotate %36 by %c1_i32_31 dim 1 : vector<32x128xf32>, i32 -> vector<32x128xf32>
    %79 = vector.extract_strided_slice %69 {offsets = [2, 0, 0], sizes = [1, 32, 128], strides = [1, 1, 1]} : vector<3x32x128xf32> to vector<1x32x128xf32>
    %80 = vector.shape_cast %79 : vector<1x32x128xf32> to vector<32x128xf32>
    %81 = arith.mulf %78, %80 : vector<32x128xf32>
    %82 = arith.addf %77, %81 : vector<32x128xf32>
    %83 = tpu.iota {dimensions = array<i32: 0>} : vector<32x32xi32>
    %84 = tpu.iota {dimensions = array<i32: 1>} : vector<32x32xi32>
    %85 = arith.cmpi sge, %83, %84 : vector<32x32xi32>
    %86 = arith.subi %83, %84 : vector<32x32xi32>
    %c32_i32 = arith.constant 32 : i32
    %87 = vector.broadcast %c32_i32 : i32 to vector<32x32xi32>
    %88 = arith.cmpi sle, %86, %87 : vector<32x32xi32>
    %89 = arith.andi %85, %88 : vector<32x32xi1>
    %90 = tpu.iota {dimensions = array<i32: 0>} : vector<32x32xi32>
    %91 = tpu.iota {dimensions = array<i32: 1>} : vector<32x32xi32>
    %92 = arith.cmpi sle, %90, %91 : vector<32x32xi32>
    %c0_i32 = arith.constant 0 : i32
    %93 = arith.cmpi sgt, %arg1, %c0_i32 : i32
    %94 = vector.broadcast %93 : i1 to vector<32x32xi1>
    %95 = arith.andi %92, %94 : vector<32x32xi1>
    %96 = vector.extract_strided_slice %54 {offsets = [0, 0], sizes = [32, 32], strides = [1, 1]} : vector<32x128xf32> to vector<32x32xf32>
    %97 = vector.extract_strided_slice %68 {offsets = [0, 0], sizes = [32, 32], strides = [1, 1]} : vector<32x128xf32> to vector<32x32xf32>
    %cst_32 = arith.constant dense<0.000000e+00> : vector<32x32xf32>
    %98 = tpu.matmul %96, %97, %cst_32 {dimension_numbers = #tpu.dot_dimension_numbers<[1], [1], [0], [0], [0, 0, 1, 0], [], []>} : vector<32x32xf32>, vector<32x32xf32>, vector<32x32xf32> -> vector<32x32xf32>
    %cst_33 = arith.constant 0.176776692 : f32
    %99 = vector.broadcast %cst_33 : f32 to vector<32x32xf32>
    %100 = arith.mulf %98, %99 : vector<32x32xf32>
    %101 = vector.extract_strided_slice %82 {offsets = [0, 0], sizes = [32, 32], strides = [1, 1]} : vector<32x128xf32> to vector<32x32xf32>
    %cst_34 = arith.constant dense<0.000000e+00> : vector<32x32xf32>
    %102 = tpu.matmul %96, %101, %cst_34 {dimension_numbers = #tpu.dot_dimension_numbers<[1], [1], [0], [0], [0, 0, 1, 0], [], []>} : vector<32x32xf32>, vector<32x32xf32>, vector<32x32xf32> -> vector<32x32xf32>
    %cst_35 = arith.constant 0.176776692 : f32
    %103 = vector.broadcast %cst_35 : f32 to vector<32x32xf32>
    %104 = arith.mulf %102, %103 : vector<32x32xf32>
    %c0_36 = arith.constant 0 : index
    %c0_37 = arith.constant 0 : index
    %c0_38 = arith.constant 0 : index
    %105 = vector.load %arg7[%c0_36, %c0_37, %c0_38] : memref<4x4x32xf32, #tpu.memory_space<vmem>>, vector<1x4x32xf32>
    %106 = vector.shape_cast %105 : vector<1x4x32xf32> to vector<4x32xf32>
    %cst_39 = arith.constant dense<0.000000e+00> : vector<32x4xf32>
    %107 = tpu.matmul %96, %106, %cst_39 {dimension_numbers = #tpu.dot_dimension_numbers<[1], [1], [0], [0], [0, 0, 1, 0], [], []>} : vector<32x32xf32>, vector<4x32xf32>, vector<32x4xf32> -> vector<32x4xf32>
    %cst_40 = arith.constant 0.176776692 : f32
    %108 = vector.broadcast %cst_40 : f32 to vector<32x4xf32>
    %109 = arith.mulf %107, %108 : vector<32x4xf32>
    %cst_41 = arith.constant -1.000000e+30 : f32
    %110 = vector.broadcast %cst_41 : f32 to vector<32x32xf32>
    %111 = arith.select %89, %100, %110 : vector<32x32xi1>, vector<32x32xf32>
    %cst_42 = arith.constant -1.000000e+30 : f32
    %112 = vector.broadcast %cst_42 : f32 to vector<32x32xf32>
    %113 = arith.select %95, %104, %112 : vector<32x32xi1>, vector<32x32xf32>
    %cst_43 = arith.constant dense<0xFF800000> : vector<32xf32>
    %114 = vector.multi_reduction <maximumf>, %111, %cst_43 [1] : vector<32x32xf32> to vector<32xf32>
    %115 = vector.shape_cast %114 : vector<32xf32> to vector<32x1xf32>
    %cst_44 = arith.constant dense<0xFF800000> : vector<32xf32>
    %116 = vector.multi_reduction <maximumf>, %113, %cst_44 [1] : vector<32x32xf32> to vector<32xf32>
    %117 = vector.shape_cast %116 : vector<32xf32> to vector<32x1xf32>
    %118 = arith.maximumf %115, %117 : vector<32x1xf32>
    %cst_45 = arith.constant dense<0xFF800000> : vector<32xf32>
    %119 = vector.multi_reduction <maximumf>, %109, %cst_45 [1] : vector<32x4xf32> to vector<32xf32>
    %120 = vector.shape_cast %119 : vector<32xf32> to vector<32x1xf32>
    %121 = arith.maximumf %118, %120 : vector<32x1xf32>
    %122 = vector.broadcast %121 : vector<32x1xf32> to vector<32x32xf32>
    %123 = arith.subf %111, %122 : vector<32x32xf32>
    %124 = math.exp %123 : vector<32x32xf32>
    %125 = vector.broadcast %121 : vector<32x1xf32> to vector<32x32xf32>
    %126 = arith.subf %113, %125 : vector<32x32xf32>
    %127 = math.exp %126 : vector<32x32xf32>
    %128 = vector.broadcast %121 : vector<32x1xf32> to vector<32x4xf32>
    %129 = arith.subf %109, %128 : vector<32x4xf32>
    %130 = math.exp %129 : vector<32x4xf32>
    %cst_46 = arith.constant dense<0.000000e+00> : vector<32xf32>
    %131 = vector.multi_reduction <add>, %124, %cst_46 [1] : vector<32x32xf32> to vector<32xf32>
    %132 = vector.shape_cast %131 : vector<32xf32> to vector<32x1xf32>
    %cst_47 = arith.constant dense<0.000000e+00> : vector<32xf32>
    %133 = vector.multi_reduction <add>, %127, %cst_47 [1] : vector<32x32xf32> to vector<32xf32>
    %134 = vector.shape_cast %133 : vector<32xf32> to vector<32x1xf32>
    %135 = arith.addf %132, %134 : vector<32x1xf32>
    %cst_48 = arith.constant dense<0.000000e+00> : vector<32xf32>
    %136 = vector.multi_reduction <add>, %130, %cst_48 [1] : vector<32x4xf32> to vector<32xf32>
    %137 = vector.shape_cast %136 : vector<32xf32> to vector<32x1xf32>
    %138 = arith.addf %135, %137 : vector<32x1xf32>
    %139 = vector.extract_strided_slice %35 {offsets = [0, 0], sizes = [32, 32], strides = [1, 1]} : vector<32x128xf32> to vector<32x32xf32>
    %cst_49 = arith.constant dense<0.000000e+00> : vector<32x32xf32>
    %140 = tpu.matmul %124, %139, %cst_49 {dimension_numbers = #tpu.dot_dimension_numbers<[1], [0], [0], [1], [0, 0, 1, 1], [], []>} : vector<32x32xf32>, vector<32x32xf32>, vector<32x32xf32> -> vector<32x32xf32>
    %141 = vector.extract_strided_slice %37 {offsets = [0, 0], sizes = [32, 32], strides = [1, 1]} : vector<32x128xf32> to vector<32x32xf32>
    %cst_50 = arith.constant dense<0.000000e+00> : vector<32x32xf32>
    %142 = tpu.matmul %127, %141, %cst_50 {dimension_numbers = #tpu.dot_dimension_numbers<[1], [0], [0], [1], [0, 0, 1, 1], [], []>} : vector<32x32xf32>, vector<32x32xf32>, vector<32x32xf32> -> vector<32x32xf32>
    %143 = arith.addf %140, %142 : vector<32x32xf32>
    %c0_51 = arith.constant 0 : index
    %c0_52 = arith.constant 0 : index
    %c0_53 = arith.constant 0 : index
    %144 = vector.load %arg8[%c0_51, %c0_52, %c0_53] : memref<4x4x32xf32, #tpu.memory_space<vmem>>, vector<1x4x32xf32>
    %145 = vector.shape_cast %144 : vector<1x4x32xf32> to vector<4x32xf32>
    %cst_54 = arith.constant dense<0.000000e+00> : vector<32x32xf32>
    %146 = tpu.matmul %130, %145, %cst_54 {dimension_numbers = #tpu.dot_dimension_numbers<[1], [0], [0], [1], [0, 0, 1, 1], [], []>} : vector<32x4xf32>, vector<4x32xf32>, vector<32x32xf32> -> vector<32x32xf32>
    %147 = arith.addf %143, %146 : vector<32x32xf32>
    %148 = vector.broadcast %138 : vector<32x1xf32> to vector<32x32xf32>
    %149 = arith.divf %147, %148 : vector<32x32xf32>
    %150 = vector.extract_strided_slice %54 {offsets = [0, 32], sizes = [32, 32], strides = [1, 1]} : vector<32x128xf32> to vector<32x32xf32>
    %151 = vector.extract_strided_slice %68 {offsets = [0, 32], sizes = [32, 32], strides = [1, 1]} : vector<32x128xf32> to vector<32x32xf32>
    %cst_55 = arith.constant dense<0.000000e+00> : vector<32x32xf32>
    %152 = tpu.matmul %150, %151, %cst_55 {dimension_numbers = #tpu.dot_dimension_numbers<[1], [1], [0], [0], [0, 0, 1, 0], [], []>} : vector<32x32xf32>, vector<32x32xf32>, vector<32x32xf32> -> vector<32x32xf32>
    %cst_56 = arith.constant 0.176776692 : f32
    %153 = vector.broadcast %cst_56 : f32 to vector<32x32xf32>
    %154 = arith.mulf %152, %153 : vector<32x32xf32>
    %155 = vector.extract_strided_slice %82 {offsets = [0, 32], sizes = [32, 32], strides = [1, 1]} : vector<32x128xf32> to vector<32x32xf32>
    %cst_57 = arith.constant dense<0.000000e+00> : vector<32x32xf32>
    %156 = tpu.matmul %150, %155, %cst_57 {dimension_numbers = #tpu.dot_dimension_numbers<[1], [1], [0], [0], [0, 0, 1, 0], [], []>} : vector<32x32xf32>, vector<32x32xf32>, vector<32x32xf32> -> vector<32x32xf32>
    %cst_58 = arith.constant 0.176776692 : f32
    %157 = vector.broadcast %cst_58 : f32 to vector<32x32xf32>
    %158 = arith.mulf %156, %157 : vector<32x32xf32>
    %c1 = arith.constant 1 : index
    %c0_59 = arith.constant 0 : index
    %c0_60 = arith.constant 0 : index
    %159 = vector.load %arg7[%c1, %c0_59, %c0_60] : memref<4x4x32xf32, #tpu.memory_space<vmem>>, vector<1x4x32xf32>
    %160 = vector.shape_cast %159 : vector<1x4x32xf32> to vector<4x32xf32>
    %cst_61 = arith.constant dense<0.000000e+00> : vector<32x4xf32>
    %161 = tpu.matmul %150, %160, %cst_61 {dimension_numbers = #tpu.dot_dimension_numbers<[1], [1], [0], [0], [0, 0, 1, 0], [], []>} : vector<32x32xf32>, vector<4x32xf32>, vector<32x4xf32> -> vector<32x4xf32>
    %cst_62 = arith.constant 0.176776692 : f32
    %162 = vector.broadcast %cst_62 : f32 to vector<32x4xf32>
    %163 = arith.mulf %161, %162 : vector<32x4xf32>
    %cst_63 = arith.constant -1.000000e+30 : f32
    %164 = vector.broadcast %cst_63 : f32 to vector<32x32xf32>
    %165 = arith.select %89, %154, %164 : vector<32x32xi1>, vector<32x32xf32>
    %cst_64 = arith.constant -1.000000e+30 : f32
    %166 = vector.broadcast %cst_64 : f32 to vector<32x32xf32>
    %167 = arith.select %95, %158, %166 : vector<32x32xi1>, vector<32x32xf32>
    %cst_65 = arith.constant dense<0xFF800000> : vector<32xf32>
    %168 = vector.multi_reduction <maximumf>, %165, %cst_65 [1] : vector<32x32xf32> to vector<32xf32>
    %169 = vector.shape_cast %168 : vector<32xf32> to vector<32x1xf32>
    %cst_66 = arith.constant dense<0xFF800000> : vector<32xf32>
    %170 = vector.multi_reduction <maximumf>, %167, %cst_66 [1] : vector<32x32xf32> to vector<32xf32>
    %171 = vector.shape_cast %170 : vector<32xf32> to vector<32x1xf32>
    %172 = arith.maximumf %169, %171 : vector<32x1xf32>
    %cst_67 = arith.constant dense<0xFF800000> : vector<32xf32>
    %173 = vector.multi_reduction <maximumf>, %163, %cst_67 [1] : vector<32x4xf32> to vector<32xf32>
    %174 = vector.shape_cast %173 : vector<32xf32> to vector<32x1xf32>
    %175 = arith.maximumf %172, %174 : vector<32x1xf32>
    %176 = vector.broadcast %175 : vector<32x1xf32> to vector<32x32xf32>
    %177 = arith.subf %165, %176 : vector<32x32xf32>
    %178 = math.exp %177 : vector<32x32xf32>
    %179 = vector.broadcast %175 : vector<32x1xf32> to vector<32x32xf32>
    %180 = arith.subf %167, %179 : vector<32x32xf32>
    %181 = math.exp %180 : vector<32x32xf32>
    %182 = vector.broadcast %175 : vector<32x1xf32> to vector<32x4xf32>
    %183 = arith.subf %163, %182 : vector<32x4xf32>
    %184 = math.exp %183 : vector<32x4xf32>
    %cst_68 = arith.constant dense<0.000000e+00> : vector<32xf32>
    %185 = vector.multi_reduction <add>, %178, %cst_68 [1] : vector<32x32xf32> to vector<32xf32>
    %186 = vector.shape_cast %185 : vector<32xf32> to vector<32x1xf32>
    %cst_69 = arith.constant dense<0.000000e+00> : vector<32xf32>
    %187 = vector.multi_reduction <add>, %181, %cst_69 [1] : vector<32x32xf32> to vector<32xf32>
    %188 = vector.shape_cast %187 : vector<32xf32> to vector<32x1xf32>
    %189 = arith.addf %186, %188 : vector<32x1xf32>
    %cst_70 = arith.constant dense<0.000000e+00> : vector<32xf32>
    %190 = vector.multi_reduction <add>, %184, %cst_70 [1] : vector<32x4xf32> to vector<32xf32>
    %191 = vector.shape_cast %190 : vector<32xf32> to vector<32x1xf32>
    %192 = arith.addf %189, %191 : vector<32x1xf32>
    %193 = vector.extract_strided_slice %35 {offsets = [0, 32], sizes = [32, 32], strides = [1, 1]} : vector<32x128xf32> to vector<32x32xf32>
    %cst_71 = arith.constant dense<0.000000e+00> : vector<32x32xf32>
    %194 = tpu.matmul %178, %193, %cst_71 {dimension_numbers = #tpu.dot_dimension_numbers<[1], [0], [0], [1], [0, 0, 1, 1], [], []>} : vector<32x32xf32>, vector<32x32xf32>, vector<32x32xf32> -> vector<32x32xf32>
    %195 = vector.extract_strided_slice %37 {offsets = [0, 32], sizes = [32, 32], strides = [1, 1]} : vector<32x128xf32> to vector<32x32xf32>
    %cst_72 = arith.constant dense<0.000000e+00> : vector<32x32xf32>
    %196 = tpu.matmul %181, %195, %cst_72 {dimension_numbers = #tpu.dot_dimension_numbers<[1], [0], [0], [1], [0, 0, 1, 1], [], []>} : vector<32x32xf32>, vector<32x32xf32>, vector<32x32xf32> -> vector<32x32xf32>
    %197 = arith.addf %194, %196 : vector<32x32xf32>
    %c1_73 = arith.constant 1 : index
    %c0_74 = arith.constant 0 : index
    %c0_75 = arith.constant 0 : index
    %198 = vector.load %arg8[%c1_73, %c0_74, %c0_75] : memref<4x4x32xf32, #tpu.memory_space<vmem>>, vector<1x4x32xf32>
    %199 = vector.shape_cast %198 : vector<1x4x32xf32> to vector<4x32xf32>
    %cst_76 = arith.constant dense<0.000000e+00> : vector<32x32xf32>
    %200 = tpu.matmul %184, %199, %cst_76 {dimension_numbers = #tpu.dot_dimension_numbers<[1], [0], [0], [1], [0, 0, 1, 1], [], []>} : vector<32x4xf32>, vector<4x32xf32>, vector<32x32xf32> -> vector<32x32xf32>
    %201 = arith.addf %197, %200 : vector<32x32xf32>
    %202 = vector.broadcast %192 : vector<32x1xf32> to vector<32x32xf32>
    %203 = arith.divf %201, %202 : vector<32x32xf32>
    %204 = vector.extract_strided_slice %54 {offsets = [0, 64], sizes = [32, 32], strides = [1, 1]} : vector<32x128xf32> to vector<32x32xf32>
    %205 = vector.extract_strided_slice %68 {offsets = [0, 64], sizes = [32, 32], strides = [1, 1]} : vector<32x128xf32> to vector<32x32xf32>
    %cst_77 = arith.constant dense<0.000000e+00> : vector<32x32xf32>
    %206 = tpu.matmul %204, %205, %cst_77 {dimension_numbers = #tpu.dot_dimension_numbers<[1], [1], [0], [0], [0, 0, 1, 0], [], []>} : vector<32x32xf32>, vector<32x32xf32>, vector<32x32xf32> -> vector<32x32xf32>
    %cst_78 = arith.constant 0.176776692 : f32
    %207 = vector.broadcast %cst_78 : f32 to vector<32x32xf32>
    %208 = arith.mulf %206, %207 : vector<32x32xf32>
    %209 = vector.extract_strided_slice %82 {offsets = [0, 64], sizes = [32, 32], strides = [1, 1]} : vector<32x128xf32> to vector<32x32xf32>
    %cst_79 = arith.constant dense<0.000000e+00> : vector<32x32xf32>
    %210 = tpu.matmul %204, %209, %cst_79 {dimension_numbers = #tpu.dot_dimension_numbers<[1], [1], [0], [0], [0, 0, 1, 0], [], []>} : vector<32x32xf32>, vector<32x32xf32>, vector<32x32xf32> -> vector<32x32xf32>
    %cst_80 = arith.constant 0.176776692 : f32
    %211 = vector.broadcast %cst_80 : f32 to vector<32x32xf32>
    %212 = arith.mulf %210, %211 : vector<32x32xf32>
    %c2 = arith.constant 2 : index
    %c0_81 = arith.constant 0 : index
    %c0_82 = arith.constant 0 : index
    %213 = vector.load %arg7[%c2, %c0_81, %c0_82] : memref<4x4x32xf32, #tpu.memory_space<vmem>>, vector<1x4x32xf32>
    %214 = vector.shape_cast %213 : vector<1x4x32xf32> to vector<4x32xf32>
    %cst_83 = arith.constant dense<0.000000e+00> : vector<32x4xf32>
    %215 = tpu.matmul %204, %214, %cst_83 {dimension_numbers = #tpu.dot_dimension_numbers<[1], [1], [0], [0], [0, 0, 1, 0], [], []>} : vector<32x32xf32>, vector<4x32xf32>, vector<32x4xf32> -> vector<32x4xf32>
    %cst_84 = arith.constant 0.176776692 : f32
    %216 = vector.broadcast %cst_84 : f32 to vector<32x4xf32>
    %217 = arith.mulf %215, %216 : vector<32x4xf32>
    %cst_85 = arith.constant -1.000000e+30 : f32
    %218 = vector.broadcast %cst_85 : f32 to vector<32x32xf32>
    %219 = arith.select %89, %208, %218 : vector<32x32xi1>, vector<32x32xf32>
    %cst_86 = arith.constant -1.000000e+30 : f32
    %220 = vector.broadcast %cst_86 : f32 to vector<32x32xf32>
    %221 = arith.select %95, %212, %220 : vector<32x32xi1>, vector<32x32xf32>
    %cst_87 = arith.constant dense<0xFF800000> : vector<32xf32>
    %222 = vector.multi_reduction <maximumf>, %219, %cst_87 [1] : vector<32x32xf32> to vector<32xf32>
    %223 = vector.shape_cast %222 : vector<32xf32> to vector<32x1xf32>
    %cst_88 = arith.constant dense<0xFF800000> : vector<32xf32>
    %224 = vector.multi_reduction <maximumf>, %221, %cst_88 [1] : vector<32x32xf32> to vector<32xf32>
    %225 = vector.shape_cast %224 : vector<32xf32> to vector<32x1xf32>
    %226 = arith.maximumf %223, %225 : vector<32x1xf32>
    %cst_89 = arith.constant dense<0xFF800000> : vector<32xf32>
    %227 = vector.multi_reduction <maximumf>, %217, %cst_89 [1] : vector<32x4xf32> to vector<32xf32>
    %228 = vector.shape_cast %227 : vector<32xf32> to vector<32x1xf32>
    %229 = arith.maximumf %226, %228 : vector<32x1xf32>
    %230 = vector.broadcast %229 : vector<32x1xf32> to vector<32x32xf32>
    %231 = arith.subf %219, %230 : vector<32x32xf32>
    %232 = math.exp %231 : vector<32x32xf32>
    %233 = vector.broadcast %229 : vector<32x1xf32> to vector<32x32xf32>
    %234 = arith.subf %221, %233 : vector<32x32xf32>
    %235 = math.exp %234 : vector<32x32xf32>
    %236 = vector.broadcast %229 : vector<32x1xf32> to vector<32x4xf32>
    %237 = arith.subf %217, %236 : vector<32x4xf32>
    %238 = math.exp %237 : vector<32x4xf32>
    %cst_90 = arith.constant dense<0.000000e+00> : vector<32xf32>
    %239 = vector.multi_reduction <add>, %232, %cst_90 [1] : vector<32x32xf32> to vector<32xf32>
    %240 = vector.shape_cast %239 : vector<32xf32> to vector<32x1xf32>
    %cst_91 = arith.constant dense<0.000000e+00> : vector<32xf32>
    %241 = vector.multi_reduction <add>, %235, %cst_91 [1] : vector<32x32xf32> to vector<32xf32>
    %242 = vector.shape_cast %241 : vector<32xf32> to vector<32x1xf32>
    %243 = arith.addf %240, %242 : vector<32x1xf32>
    %cst_92 = arith.constant dense<0.000000e+00> : vector<32xf32>
    %244 = vector.multi_reduction <add>, %238, %cst_92 [1] : vector<32x4xf32> to vector<32xf32>
    %245 = vector.shape_cast %244 : vector<32xf32> to vector<32x1xf32>
    %246 = arith.addf %243, %245 : vector<32x1xf32>
    %247 = vector.extract_strided_slice %35 {offsets = [0, 64], sizes = [32, 32], strides = [1, 1]} : vector<32x128xf32> to vector<32x32xf32>
    %cst_93 = arith.constant dense<0.000000e+00> : vector<32x32xf32>
    %248 = tpu.matmul %232, %247, %cst_93 {dimension_numbers = #tpu.dot_dimension_numbers<[1], [0], [0], [1], [0, 0, 1, 1], [], []>} : vector<32x32xf32>, vector<32x32xf32>, vector<32x32xf32> -> vector<32x32xf32>
    %249 = vector.extract_strided_slice %37 {offsets = [0, 64], sizes = [32, 32], strides = [1, 1]} : vector<32x128xf32> to vector<32x32xf32>
    %cst_94 = arith.constant dense<0.000000e+00> : vector<32x32xf32>
    %250 = tpu.matmul %235, %249, %cst_94 {dimension_numbers = #tpu.dot_dimension_numbers<[1], [0], [0], [1], [0, 0, 1, 1], [], []>} : vector<32x32xf32>, vector<32x32xf32>, vector<32x32xf32> -> vector<32x32xf32>
    %251 = arith.addf %248, %250 : vector<32x32xf32>
    %c2_95 = arith.constant 2 : index
    %c0_96 = arith.constant 0 : index
    %c0_97 = arith.constant 0 : index
    %252 = vector.load %arg8[%c2_95, %c0_96, %c0_97] : memref<4x4x32xf32, #tpu.memory_space<vmem>>, vector<1x4x32xf32>
    %253 = vector.shape_cast %252 : vector<1x4x32xf32> to vector<4x32xf32>
    %cst_98 = arith.constant dense<0.000000e+00> : vector<32x32xf32>
    %254 = tpu.matmul %238, %253, %cst_98 {dimension_numbers = #tpu.dot_dimension_numbers<[1], [0], [0], [1], [0, 0, 1, 1], [], []>} : vector<32x4xf32>, vector<4x32xf32>, vector<32x32xf32> -> vector<32x32xf32>
    %255 = arith.addf %251, %254 : vector<32x32xf32>
    %256 = vector.broadcast %246 : vector<32x1xf32> to vector<32x32xf32>
    %257 = arith.divf %255, %256 : vector<32x32xf32>
    %258 = vector.extract_strided_slice %54 {offsets = [0, 96], sizes = [32, 32], strides = [1, 1]} : vector<32x128xf32> to vector<32x32xf32>
    %259 = vector.extract_strided_slice %68 {offsets = [0, 96], sizes = [32, 32], strides = [1, 1]} : vector<32x128xf32> to vector<32x32xf32>
    %cst_99 = arith.constant dense<0.000000e+00> : vector<32x32xf32>
    %260 = tpu.matmul %258, %259, %cst_99 {dimension_numbers = #tpu.dot_dimension_numbers<[1], [1], [0], [0], [0, 0, 1, 0], [], []>} : vector<32x32xf32>, vector<32x32xf32>, vector<32x32xf32> -> vector<32x32xf32>
    %cst_100 = arith.constant 0.176776692 : f32
    %261 = vector.broadcast %cst_100 : f32 to vector<32x32xf32>
    %262 = arith.mulf %260, %261 : vector<32x32xf32>
    %263 = vector.extract_strided_slice %82 {offsets = [0, 96], sizes = [32, 32], strides = [1, 1]} : vector<32x128xf32> to vector<32x32xf32>
    %cst_101 = arith.constant dense<0.000000e+00> : vector<32x32xf32>
    %264 = tpu.matmul %258, %263, %cst_101 {dimension_numbers = #tpu.dot_dimension_numbers<[1], [1], [0], [0], [0, 0, 1, 0], [], []>} : vector<32x32xf32>, vector<32x32xf32>, vector<32x32xf32> -> vector<32x32xf32>
    %cst_102 = arith.constant 0.176776692 : f32
    %265 = vector.broadcast %cst_102 : f32 to vector<32x32xf32>
    %266 = arith.mulf %264, %265 : vector<32x32xf32>
    %c3 = arith.constant 3 : index
    %c0_103 = arith.constant 0 : index
    %c0_104 = arith.constant 0 : index
    %267 = vector.load %arg7[%c3, %c0_103, %c0_104] : memref<4x4x32xf32, #tpu.memory_space<vmem>>, vector<1x4x32xf32>
    %268 = vector.shape_cast %267 : vector<1x4x32xf32> to vector<4x32xf32>
    %cst_105 = arith.constant dense<0.000000e+00> : vector<32x4xf32>
    %269 = tpu.matmul %258, %268, %cst_105 {dimension_numbers = #tpu.dot_dimension_numbers<[1], [1], [0], [0], [0, 0, 1, 0], [], []>} : vector<32x32xf32>, vector<4x32xf32>, vector<32x4xf32> -> vector<32x4xf32>
    %cst_106 = arith.constant 0.176776692 : f32
    %270 = vector.broadcast %cst_106 : f32 to vector<32x4xf32>
    %271 = arith.mulf %269, %270 : vector<32x4xf32>
    %cst_107 = arith.constant -1.000000e+30 : f32
    %272 = vector.broadcast %cst_107 : f32 to vector<32x32xf32>
    %273 = arith.select %89, %262, %272 : vector<32x32xi1>, vector<32x32xf32>
    %cst_108 = arith.constant -1.000000e+30 : f32
    %274 = vector.broadcast %cst_108 : f32 to vector<32x32xf32>
    %275 = arith.select %95, %266, %274 : vector<32x32xi1>, vector<32x32xf32>
    %cst_109 = arith.constant dense<0xFF800000> : vector<32xf32>
    %276 = vector.multi_reduction <maximumf>, %273, %cst_109 [1] : vector<32x32xf32> to vector<32xf32>
    %277 = vector.shape_cast %276 : vector<32xf32> to vector<32x1xf32>
    %cst_110 = arith.constant dense<0xFF800000> : vector<32xf32>
    %278 = vector.multi_reduction <maximumf>, %275, %cst_110 [1] : vector<32x32xf32> to vector<32xf32>
    %279 = vector.shape_cast %278 : vector<32xf32> to vector<32x1xf32>
    %280 = arith.maximumf %277, %279 : vector<32x1xf32>
    %cst_111 = arith.constant dense<0xFF800000> : vector<32xf32>
    %281 = vector.multi_reduction <maximumf>, %271, %cst_111 [1] : vector<32x4xf32> to vector<32xf32>
    %282 = vector.shape_cast %281 : vector<32xf32> to vector<32x1xf32>
    %283 = arith.maximumf %280, %282 : vector<32x1xf32>
    %284 = vector.broadcast %283 : vector<32x1xf32> to vector<32x32xf32>
    %285 = arith.subf %273, %284 : vector<32x32xf32>
    %286 = math.exp %285 : vector<32x32xf32>
    %287 = vector.broadcast %283 : vector<32x1xf32> to vector<32x32xf32>
    %288 = arith.subf %275, %287 : vector<32x32xf32>
    %289 = math.exp %288 : vector<32x32xf32>
    %290 = vector.broadcast %283 : vector<32x1xf32> to vector<32x4xf32>
    %291 = arith.subf %271, %290 : vector<32x4xf32>
    %292 = math.exp %291 : vector<32x4xf32>
    %cst_112 = arith.constant dense<0.000000e+00> : vector<32xf32>
    %293 = vector.multi_reduction <add>, %286, %cst_112 [1] : vector<32x32xf32> to vector<32xf32>
    %294 = vector.shape_cast %293 : vector<32xf32> to vector<32x1xf32>
    %cst_113 = arith.constant dense<0.000000e+00> : vector<32xf32>
    %295 = vector.multi_reduction <add>, %289, %cst_113 [1] : vector<32x32xf32> to vector<32xf32>
    %296 = vector.shape_cast %295 : vector<32xf32> to vector<32x1xf32>
    %297 = arith.addf %294, %296 : vector<32x1xf32>
    %cst_114 = arith.constant dense<0.000000e+00> : vector<32xf32>
    %298 = vector.multi_reduction <add>, %292, %cst_114 [1] : vector<32x4xf32> to vector<32xf32>
    %299 = vector.shape_cast %298 : vector<32xf32> to vector<32x1xf32>
    %300 = arith.addf %297, %299 : vector<32x1xf32>
    %301 = vector.extract_strided_slice %35 {offsets = [0, 96], sizes = [32, 32], strides = [1, 1]} : vector<32x128xf32> to vector<32x32xf32>
    %cst_115 = arith.constant dense<0.000000e+00> : vector<32x32xf32>
    %302 = tpu.matmul %286, %301, %cst_115 {dimension_numbers = #tpu.dot_dimension_numbers<[1], [0], [0], [1], [0, 0, 1, 1], [], []>} : vector<32x32xf32>, vector<32x32xf32>, vector<32x32xf32> -> vector<32x32xf32>
    %303 = vector.extract_strided_slice %37 {offsets = [0, 96], sizes = [32, 32], strides = [1, 1]} : vector<32x128xf32> to vector<32x32xf32>
    %cst_116 = arith.constant dense<0.000000e+00> : vector<32x32xf32>
    %304 = tpu.matmul %289, %303, %cst_116 {dimension_numbers = #tpu.dot_dimension_numbers<[1], [0], [0], [1], [0, 0, 1, 1], [], []>} : vector<32x32xf32>, vector<32x32xf32>, vector<32x32xf32> -> vector<32x32xf32>
    %305 = arith.addf %302, %304 : vector<32x32xf32>
    %c3_117 = arith.constant 3 : index
    %c0_118 = arith.constant 0 : index
    %c0_119 = arith.constant 0 : index
    %306 = vector.load %arg8[%c3_117, %c0_118, %c0_119] : memref<4x4x32xf32, #tpu.memory_space<vmem>>, vector<1x4x32xf32>
    %307 = vector.shape_cast %306 : vector<1x4x32xf32> to vector<4x32xf32>
    %cst_120 = arith.constant dense<0.000000e+00> : vector<32x32xf32>
    %308 = tpu.matmul %292, %307, %cst_120 {dimension_numbers = #tpu.dot_dimension_numbers<[1], [0], [0], [1], [0, 0, 1, 1], [], []>} : vector<32x4xf32>, vector<4x32xf32>, vector<32x32xf32> -> vector<32x32xf32>
    %309 = arith.addf %305, %308 : vector<32x32xf32>
    %310 = vector.broadcast %300 : vector<32x1xf32> to vector<32x32xf32>
    %311 = arith.divf %309, %310 : vector<32x32xf32>
    %312 = tpu.concatenate %149, %203, %257, %311 in 1 : vector<32x32xf32>, vector<32x32xf32>, vector<32x32xf32>, vector<32x32xf32> -> vector<32x128xf32>
    %c0_121 = arith.constant 0 : index
    %c0_122 = arith.constant 0 : index
    %313 = vector.load %arg6[%c0_121, %c0_122] : memref<128x128xf32, #tpu.memory_space<vmem>>, vector<128x128xf32>
    %cst_123 = arith.constant dense<0.000000e+00> : vector<32x128xf32>
    %314 = tpu.matmul %312, %313, %cst_123 {dimension_numbers = #tpu.dot_dimension_numbers<[1], [0], [0], [1], [0, 0, 1, 1], [], []>} : vector<32x128xf32>, vector<128x128xf32>, vector<32x128xf32> -> vector<32x128xf32>
    %315 = arith.addf %2, %314 : vector<32x128xf32>
    %c0_124 = arith.constant 0 : index
    %c0_125 = arith.constant 0 : index
    %316 = vector.load %arg11[%c0_124, %c0_125] : memref<1x128xf32, #tpu.memory_space<vmem>>, vector<1x128xf32>
    %317 = arith.mulf %315, %315 : vector<32x128xf32>
    %cst_126 = arith.constant dense<0.000000e+00> : vector<32xf32>
    %318 = vector.multi_reduction <add>, %317, %cst_126 [1] : vector<32x128xf32> to vector<32xf32>
    %319 = vector.shape_cast %318 : vector<32xf32> to vector<32x1xf32>
    %cst_127 = arith.constant 1.280000e+02 : f32
    %320 = vector.broadcast %cst_127 : f32 to vector<32x1xf32>
    %321 = arith.divf %319, %320 : vector<32x1xf32>
    %cst_128 = arith.constant 1.1920929E-7 : f32
    %322 = vector.broadcast %cst_128 : f32 to vector<32x1xf32>
    %323 = arith.addf %321, %322 : vector<32x1xf32>
    %324 = math.rsqrt %323 : vector<32x1xf32>
    %325 = vector.broadcast %324 : vector<32x1xf32> to vector<32x128xf32>
    %326 = arith.mulf %315, %325 : vector<32x128xf32>
    %327 = vector.broadcast %316 : vector<1x128xf32> to vector<32x128xf32>
    %328 = arith.mulf %326, %327 : vector<32x128xf32>
    %c0_129 = arith.constant 0 : index
    %c0_130 = arith.constant 0 : index
    %329 = vector.load %arg12[%c0_129, %c0_130] : memref<128x768xf32, #tpu.memory_space<vmem>>, vector<128x768xf32>
    %cst_131 = arith.constant dense<0.000000e+00> : vector<32x768xf32>
    %330 = tpu.matmul %328, %329, %cst_131 {dimension_numbers = #tpu.dot_dimension_numbers<[1], [0], [0], [1], [0, 0, 1, 1], [], []>} : vector<32x128xf32>, vector<128x768xf32>, vector<32x768xf32> -> vector<32x768xf32>
    %c0_132 = arith.constant 0 : index
    %c0_133 = arith.constant 0 : index
    %331 = vector.load %arg13[%c0_132, %c0_133] : memref<1x768xf32, #tpu.memory_space<vmem>>, vector<1x768xf32>
    %332 = vector.broadcast %331 : vector<1x768xf32> to vector<32x768xf32>
    %333 = arith.addf %330, %332 : vector<32x768xf32>
    %334 = vector.extract_strided_slice %333 {offsets = [0, 0], sizes = [32, 384], strides = [1, 1]} : vector<32x768xf32> to vector<32x384xf32>
    %335 = vector.extract_strided_slice %333 {offsets = [0, 384], sizes = [32, 384], strides = [1, 1]} : vector<32x768xf32> to vector<32x384xf32>
    %336 = arith.mulf %335, %335 : vector<32x384xf32>
    %337 = arith.mulf %335, %336 : vector<32x384xf32>
    %cst_134 = arith.constant 4.471500e-02 : f32
    %338 = vector.broadcast %cst_134 : f32 to vector<32x384xf32>
    %339 = arith.mulf %338, %337 : vector<32x384xf32>
    %340 = arith.addf %335, %339 : vector<32x384xf32>
    %cst_135 = arith.constant 0.797884583 : f32
    %341 = vector.broadcast %cst_135 : f32 to vector<32x384xf32>
    %342 = arith.mulf %341, %340 : vector<32x384xf32>
    %343 = math.tanh %342 : vector<32x384xf32>
    %cst_136 = arith.constant 1.000000e+00 : f32
    %344 = vector.broadcast %cst_136 : f32 to vector<32x384xf32>
    %345 = arith.addf %344, %343 : vector<32x384xf32>
    %cst_137 = arith.constant 5.000000e-01 : f32
    %346 = vector.broadcast %cst_137 : f32 to vector<32x384xf32>
    %347 = arith.mulf %346, %345 : vector<32x384xf32>
    %348 = arith.mulf %335, %347 : vector<32x384xf32>
    %349 = arith.mulf %334, %348 : vector<32x384xf32>
    %c0_138 = arith.constant 0 : index
    %c0_139 = arith.constant 0 : index
    %350 = vector.load %arg14[%c0_138, %c0_139] : memref<384x128xf32, #tpu.memory_space<vmem>>, vector<384x128xf32>
    %cst_140 = arith.constant dense<0.000000e+00> : vector<32x128xf32>
    %351 = tpu.matmul %349, %350, %cst_140 {dimension_numbers = #tpu.dot_dimension_numbers<[1], [0], [0], [1], [0, 0, 1, 1], [], []>} : vector<32x384xf32>, vector<384x128xf32>, vector<32x128xf32> -> vector<32x128xf32>
    %c0_141 = arith.constant 0 : index
    %c0_142 = arith.constant 0 : index
    %352 = vector.load %arg15[%c0_141, %c0_142] : memref<1x128xf32, #tpu.memory_space<vmem>>, vector<1x128xf32>
    %353 = vector.broadcast %352 : vector<1x128xf32> to vector<32x128xf32>
    %354 = arith.addf %351, %353 : vector<32x128xf32>
    %355 = arith.addf %315, %354 : vector<32x128xf32>
    %c0_143 = arith.constant 0 : index
    %c0_144 = arith.constant 0 : index
    %c0_145 = arith.constant 0 : index
    %356 = vector.load %arg16[%c0_143, %c0_144, %c0_145] : memref<1x32x128xf32, #tpu.memory_space<vmem>>, vector<1x32x128xf32>
    %357 = vector.shape_cast %356 : vector<1x32x128xf32> to vector<32x128xf32>
    %358 = vector.shape_cast %355 : vector<32x128xf32> to vector<1x32x128xf32>
    tpu.vector_store %arg16[%c0_143, %c0_144, %c0_145], %358 {strides = array<i32>} : memref<1x32x128xf32, #tpu.memory_space<vmem>>, vector<1x32x128xf32>,
    return
  }
  func.func @transform_0(%arg0: i32, %arg1: i32) -> (i32, i32, i32) {
    %c0_i32 = arith.constant 0 : i32
    %c0_i32_0 = arith.constant 0 : i32
    return %arg0, %arg1, %c0_i32 : i32, i32, i32
  }
  func.func @transform_1(%arg0: i32, %arg1: i32) -> (i32, i32, i32) {
    %c1_i32 = arith.constant 1 : i32
    %0 = arith.muli %arg1, %c1_i32 : i32
    %c1_i32_0 = arith.constant 1 : i32
    %1 = arith.subi %0, %c1_i32_0 : i32
    %c0_i32 = arith.constant 0 : i32
    %2 = arith.maxsi %1, %c0_i32 : i32
    %c0_i32_1 = arith.constant 0 : i32
    %c0_i32_2 = arith.constant 0 : i32
    return %arg0, %2, %c0_i32_1 : i32, i32, i32
  }
  func.func @transform_2(%arg0: i32, %arg1: i32) -> (i32, i32) {
    %c0_i32 = arith.constant 0 : i32
    %c0_i32_0 = arith.constant 0 : i32
    %c0_i32_1 = arith.constant 0 : i32
    return %c0_i32, %c0_i32_0 : i32, i32
  }
  func.func @transform_3(%arg0: i32, %arg1: i32) -> (i32, i32) {
    %c0_i32 = arith.constant 0 : i32
    %c0_i32_0 = arith.constant 0 : i32
    %c0_i32_1 = arith.constant 0 : i32
    return %c0_i32, %c0_i32_0 : i32, i32
  }
  func.func @transform_4(%arg0: i32, %arg1: i32) -> (i32, i32) {
    %c0_i32 = arith.constant 0 : i32
    %c0_i32_0 = arith.constant 0 : i32
    %c0_i32_1 = arith.constant 0 : i32
    return %c0_i32, %c0_i32_0 : i32, i32
  }
  func.func @transform_5(%arg0: i32, %arg1: i32) -> (i32, i32, i32) {
    %c0_i32 = arith.constant 0 : i32
    %c0_i32_0 = arith.constant 0 : i32
    %c0_i32_1 = arith.constant 0 : i32
    %c0_i32_2 = arith.constant 0 : i32
    return %c0_i32, %c0_i32_0, %c0_i32_1 : i32, i32, i32
  }
  func.func @transform_6(%arg0: i32, %arg1: i32) -> (i32, i32, i32) {
    %c0_i32 = arith.constant 0 : i32
    %c0_i32_0 = arith.constant 0 : i32
    %c0_i32_1 = arith.constant 0 : i32
    %c0_i32_2 = arith.constant 0 : i32
    return %c0_i32, %c0_i32_0, %c0_i32_1 : i32, i32, i32
  }
  func.func @transform_7(%arg0: i32, %arg1: i32) -> (i32, i32, i32) {
    %c0_i32 = arith.constant 0 : i32
    %c0_i32_0 = arith.constant 0 : i32
    %c0_i32_1 = arith.constant 0 : i32
    return %c0_i32, %arg1, %c0_i32_0 : i32, i32, i32
  }
  func.func @transform_8(%arg0: i32, %arg1: i32) -> (i32, i32, i32) {
    %c1_i32 = arith.constant 1 : i32
    %0 = arith.muli %arg1, %c1_i32 : i32
    %c1_i32_0 = arith.constant 1 : i32
    %1 = arith.subi %0, %c1_i32_0 : i32
    %c0_i32 = arith.constant 0 : i32
    %2 = arith.maxsi %1, %c0_i32 : i32
    %c0_i32_1 = arith.constant 0 : i32
    %c0_i32_2 = arith.constant 0 : i32
    %c0_i32_3 = arith.constant 0 : i32
    return %c0_i32_1, %2, %c0_i32_2 : i32, i32, i32
  }
  func.func @transform_9(%arg0: i32, %arg1: i32) -> (i32, i32) {
    %c0_i32 = arith.constant 0 : i32
    %c0_i32_0 = arith.constant 0 : i32
    %c0_i32_1 = arith.constant 0 : i32
    return %c0_i32, %c0_i32_0 : i32, i32
  }
  func.func @transform_10(%arg0: i32, %arg1: i32) -> (i32, i32) {
    %c0_i32 = arith.constant 0 : i32
    %c0_i32_0 = arith.constant 0 : i32
    %c0_i32_1 = arith.constant 0 : i32
    return %c0_i32, %c0_i32_0 : i32, i32
  }
  func.func @transform_11(%arg0: i32, %arg1: i32) -> (i32, i32) {
    %c0_i32 = arith.constant 0 : i32
    %c0_i32_0 = arith.constant 0 : i32
    %c0_i32_1 = arith.constant 0 : i32
    return %c0_i32, %c0_i32_0 : i32, i32
  }
  func.func @transform_12(%arg0: i32, %arg1: i32) -> (i32, i32) {
    %c0_i32 = arith.constant 0 : i32
    %c0_i32_0 = arith.constant 0 : i32
    %c0_i32_1 = arith.constant 0 : i32
    return %c0_i32, %c0_i32_0 : i32, i32
  }
  func.func @transform_13(%arg0: i32, %arg1: i32) -> (i32, i32) {
    %c0_i32 = arith.constant 0 : i32
    %c0_i32_0 = arith.constant 0 : i32
    %c0_i32_1 = arith.constant 0 : i32
    return %c0_i32, %c0_i32_0 : i32, i32
  }
  func.func @transform_14(%arg0: i32, %arg1: i32) -> (i32, i32, i32) {
    %c0_i32 = arith.constant 0 : i32
    %c0_i32_0 = arith.constant 0 : i32
    return %arg0, %arg1, %c0_i32 : i32, i32, i32
  }
  func.func @transform_15(%arg0: i32, %arg1: i32) -> (i32, i32, i32) {
    %c0_i32 = arith.constant 0 : i32
    %c0_i32_0 = arith.constant 0 : i32
    return %arg0, %arg1, %c0_i32 : i32, i32, i32
  }
}

</mosaic_0001>

<bundles_post_ra>
// kernel: tpu_custom_call.1
= control target key start
LH: loop header
LB: loop body
LE: loop exit
PB: predicated region body
PF: predicated region fallthrough
CT: control target
= control target key end

     0   :  { %s10435_s0 = inlined_call_operand.hbm [shape: f32[2,96,128], index: 0, kind: input, shape index: {}]   ;;  %s10436_s1 = inlined_call_operand.hbm [shape: f32[2,96,128], index: 1, kind: input, shape index: {}]   ;;  %s10437_s2 = inlined_call_operand.hbm [shape: f32[1,128], index: 2, kind: input, shape index: {}]   ;;  %s10438_s3 = inlined_call_operand.hbm [shape: f32[128,384], index: 3, kind: input, shape index: {}]   ;;  %s10439_s4 = inlined_call_operand.hbm [shape: f32[128,128], index: 4, kind: input, shape index: {}]   ;;  %s10440_s5 = inlined_call_operand.vmem [shape: f32[4,4,32], index: 5, kind: input, shape index: {}]   ;;  %s10441_s6 = inlined_call_operand.hbm [shape: f32[4,4,32], index: 6, kind: input, shape index: {}]   ;;  %s10442_s7 = inlined_call_operand.hbm [shape: f32[3,96,128], index: 7, kind: input, shape index: {}]   ;;  %s10443_s8 = inlined_call_operand.hbm [shape: f32[3,96,128], index: 8, kind: input, shape index: {}]   ;;  %s10444_s9 = inlined_call_operand.vmem [shape: f32[1,128], index: 9, kind: input, shape index: {}]   ;;  %s10445_s10 = inlined_call_operand.hbm [shape: f32[128,768], index: 10, kind: input, shape index: {}]   ;;  %s10446_s11 = inlined_call_operand.vmem [shape: f32[1,768], index: 11, kind: input, shape index: {}]   ;;  %s10447_s12 = inlined_call_operand.hbm [shape: f32[384,128], index: 12, kind: input, shape index: {}]   ;;  %s10448_s13 = inlined_call_operand.vmem [shape: f32[1,128], index: 13, kind: input, shape index: {}]   ;;  %s10449_s14 = inlined_call_operand.hbm [shape: f32[2,96,128], index: 14, kind: output, shape index: {0}]   ;;  %s10450_s15 = inlined_call_operand.hbm [shape: f32[2,96,128], index: 15, kind: output, shape index: {1}]  }
   0x1   :  { %10515 = sst [smem:[#allocation81_spill]] %s10435_s0 }
   0x2   :  { %10516 = sst [smem:[#allocation82_spill]] %s10436_s1 }
   0x3   :  { %10517 = sst [smem:[#allocation83_spill]] %s10437_s2 }
   0x4   :  { %10518 = sst [smem:[#allocation84_spill]] %s10438_s3 }
   0x5   :  { %10519 = sst [smem:[#allocation85_spill]] %s10439_s4 }
   0x6   :  { %10520 = sst [smem:[#allocation86_spill]] %s10440_s5 }
   0x7   :  { %10521 = sst [smem:[#allocation87_spill]] %s10442_s7 }
   0x8   :  { %10522 = sst [smem:[#allocation88_spill]] %s10443_s8 }
   0x9   :  { %10523 = sst [smem:[#allocation89_spill]] %s10444_s9 }
   0xa   :  { %10524 = sst [smem:[#allocation90_spill]] %s10446_s11 }
   0xb   :  { %10525 = sst [smem:[#allocation91_spill]] %s10448_s13 }
   0xc   :  { %10526 = sst [smem:[#allocation92_spill]] %s10449_s14 }
   0xd   :  { %10527 = sst [smem:[#allocation93_spill]] %s10450_s15 }
   0xe   :  { %21 = vsyncpa [#allocation3], 0 }
   0xf   :  { %23 = vsyncpa [#allocation3 + $0x1], 0 }
  0x10   :  { %24 = vsyncpa [#allocation6], 0 }
  0x11   :  { %26 = vsyncpa [#allocation6 + $0x1], 0 }
  0x12   :  { %27 = vsyncpa [#allocation9], 0 }
  0x13   :  { %28 = vsyncpa [#allocation12], 0 }
  0x14   :  { %29 = vsyncpa [#allocation4], 0 }
  0x15   :  { %31 = vsyncpa [#allocation4 + $0x1], 0 }
  0x16   :  { %32 = vsyncpa [#allocation19], 0 }
  0x17   :  { %34 = vsyncpa [#allocation19 + $0x1], 0  ;;  %s8263_s18 = smov 0   ;;  %s8265_s19 = smov 0  }
  0x18   :  { %s8267_s20 = smov 0   ;;  %s8269_s21 = smov 0  }
  0x19   :  { %s8271_s22 = smov 0   ;;  %s8273_s23 = smov 0  }
  0x1a   :  { %s8275_s24 = smov 0   ;;  %s8277_s25 = smov 0  }
  0x1b   :  { %s8279_s26 = smov 0   ;;  %s8281_s27 = smov 0  }
  0x1c   :  { %s8283_s28 = smov 0   ;;  %s8285_s29 = smov 0  }
  0x1d   :  { %s8287_s30 = smov 0   ;;  %s8289_s16 = smov 0  }
  0x1e   :  { %s8291_s17 = smov 0   ;;  %s8293_s14 = smov 0  }
  0x1f   :  { %s8295_s13 = smov 0  }
  0x20 LB: > { %10528 = sst [smem:[#allocation37_spill]] %s8081_s19  ;;  %s8349_s15 = sadd.s32 4294967295, %s8141_s13   ;;  %s8141_s13 = sphi %s8295_s13, %s40_s13   ;;  %s8137_s14 = sphi %s8293_s14, %s10699_s14   ;;  %s8133_s17 = sphi %s8291_s17, %s10687_s17   ;;  %s8129_s16 = sphi %s8289_s16, %s10698_s16   ;;  %s8125_s30 = sphi %s8287_s30, %s10697_s30   ;;  %s8121_s29 = sphi %s8285_s29, %s10696_s29   ;;  %s8117_s28 = sphi %s8283_s28, %s10695_s28   ;;  %s8113_s27 = sphi %s8281_s27, %s10684_s27   ;;  %s8109_s26 = sphi %s8279_s26, %s10694_s26   ;;  %s8105_s25 = sphi %s8277_s25, %s10693_s25   ;;  %s8101_s24 = sphi %s8275_s24, %s10682_s24   ;;  %s8097_s23 = sphi %s8273_s23, %s10692_s23   ;;  %s8093_s22 = sphi %s8271_s22, %s10691_s22   ;;  %s8089_s21 = sphi %s8269_s21, %s10680_s21   ;;  %s8085_s20 = sphi %s8267_s20, %s10690_s20   ;;  %s8081_s19 = sphi %s8265_s19, %s10689_s19   ;;  %s8077_s18 = sphi %s8263_s18, %s10678_s18  }
  0x21   : > { %10529 = sst [smem:[#allocation38_spill]] %s8093_s22  ;;  %s49_s11 = sadd.s32 1, %s8133_s17 }
  0x22   : > { %10530 = sst [smem:[#allocation39_spill]] %s8105_s25  ;;  %s52_s9 = sadd.s32 1, %s8137_s14 }
  0x23   : > { %10531 = sst [smem:[#allocation40_spill]] %s8113_s27  ;;  %p50_p0 = scmp.ge.s32.totalorder %s49_s11, 3 }
  0x24   : > { %10532 = sst [smem:[#allocation41_spill]] %s8117_s28  ;;  %p10466_p1 = scmp.ne.s32.totalorder %s8121_s29, %s8117_s28 }
  0x25   : > { %10533 = sst [smem:[#allocation42_spill]] %s8125_s30  ;;  %s61_s30 = sadd.s32 1, %s8121_s29 }
  0x26   : > { %10534 = sst [smem:[#allocation43_spill]] %s8129_s16  ;;  %p69_p2 = scmp.eq.s32.totalorder %s8141_s13, 0 }
  0x27   : > { %10535 = sst [smem:[#allocation44_spill]] %s8133_s17  ;;  %s10701_s11 = smov (%p50_p0, %s49_s11), 0 }
  0x28   : > { %10536 = sst [smem:[#allocation45_spill]] %s8349_s15  ;;  %s10703_s9 = smov (!%p50_p0, %s52_s9), %s8137_s14 }
  0x29   : > { %10537 = sst [smem:[#allocation46_spill]] %s10701_s11  ;;  %s8363_s5 = ssub.s32 %s8133_s17, %s10701_s11 }
  0x2a   : > { %p8370_p3 = por %p69_p2, %p10466_p1  ;;  %p54_p4 = scmp.ge.s32.totalorder %s10703_s9, 2 }
  0x2b   : > { %p10465_p5 = scmp.ne.s32.totalorder %s8117_s28, %s8113_s27  ;;  %p10485_p6 = scmp.eq.s32.totalorder %s8349_s15, 0 }
  0x2c   : > { %s10538_s16 = scalar_select %p8370_p3, 1, 0 }
  0x2d   : > { %s5739_s8 = sadd.s32 4294967295, %s8133_s17  ;;  %s10705_s9 = smov (%p54_p4, %s10703_s9), 0 }
  0x2e   : > { %10539 = sst [smem:[#allocation47_spill]] %s10538_s16  ;;  %p8385_p7 = por %p10485_p6, %p10465_p5 }
  0x2f   : > { %10540 = sst [smem:[#allocation48_spill]] %s10705_s9  ;;  %p85_p8 = scmp.gt.s32.totalorder %s5739_s8, 0 }
  0x30   : > { %s10541_s7 = scalar_select %p8385_p7, 1, 0 }
  0x31   : > { %s56_s1 = ssub.s32 %s8137_s14, %s10705_s9  ;;  %s5740_s0 = sadd.s32 4294967295, %s10701_s11 }
  0x32   : > { %10542 = sst [smem:[#allocation49_spill]] %s10541_s7  ;;  %s58_s16 = sor.u32 %s8363_s5, %s56_s1 }
  0x33   : > { %p88_p9 = scmp.gt.s32.totalorder %s5740_s0, 0  ;;  %p59_p10 = scmp.eq.s32.totalorder %s58_s16, 0 }
  0x34   : > { %s95_s17 = sadd.s32 1, %s8109_s26  ;;  %s10707_s8 = smov (!%p85_p8, %s5739_s8), 0 }
  0x35   : > { %s8397_s7 = scalar_select %p59_p10, %s8121_s29, %s61_s30  }
  0x36   : > { %s10709_s0 = smov (!%p88_p9, %s5740_s0), 0  ;;  %p102_p11 = scmp.ne.s32.totalorder %s8109_s26, %s8105_s25 }
  0x37   : > { %10543 = sst [smem:[#allocation50_spill]] %s8397_s7  ;;  %p108_p12 = scmp.ne.s32.totalorder %s8105_s25, %s8101_s24 }
  0x38   : > { %s91_s9 = ssub.s32 %s10707_s8, %s10709_s0  ;;  %p224_p13 = scmp.eq.s32.totalorder %s8363_s5, 0 }
  0x39   : > { %s92_s16 = sor.u32 %s91_s9, %s56_s1  ;;  %p8407_p0 = por %p102_p11, %p69_p2 }
  0x3a   : > { %p93_p4 = scmp.eq.s32.totalorder %s92_s16, 0  ;;  %p8413_p8 = por %p108_p12, %p10485_p6 }
  0x3b   : > { %s10544_s11 = scalar_select %p8407_p0, 1, 0 }
  0x3c   : > { %s10545_s24 = scalar_select %p8413_p8, 1, 0 }
  0x3d   : > { %s226_s0 = sadd.s32 1, %s8097_s23  ;;  %p233_p9 = scmp.ne.s32.totalorder %s8097_s23, %s8093_s22 }
  0x3e   : > { %10546 = sst [smem:[#allocation51_spill]] %s10545_s24  ;;  %p239_p11 = scmp.ne.s32.totalorder %s8093_s22, %s8089_s21 }
  0x3f   : > { %s8421_s1 = scalar_select %p93_p4, %s8109_s26, %s95_s17  }
  0x40   : > { %s8424_s5 = scalar_select %p224_p13, %s8097_s23, %s226_s0  }
  0x41   : > { %10547 = sst [smem:[#allocation52_spill]] %s8421_s1  ;;  %p8428_p10 = por %p233_p9, %p69_p2 }
  0x42   : > { %10548 = sst [smem:[#allocation53_spill]] %s8424_s5  ;;  %p256_p12 = scmp.eq.s32.totalorder %s91_s9, 0 }
  0x43   : > { %s10549_s30 = scalar_select %p8428_p10, 1, 0 }
  0x44   : > { %s258_s16 = sadd.s32 1, %s8085_s20  ;;  %p8437_p5 = por %p239_p11, %p10485_p6 }
  0x45   : > { %p265_p4 = scmp.ne.s32.totalorder %s8085_s20, %s8081_s19  ;;  %p271_p9 = scmp.ne.s32.totalorder %s8081_s19, %s8077_s18 }
  0x46   : > { %s10550_s7 = scalar_select %p8437_p5, 1, 0 }
  0x47   : > { %s8444_s17 = scalar_select %p256_p12, %s8085_s20, %s258_s16  }
  0x48   : > { %10551 = sst [smem:[#allocation54_spill]] %s10550_s7  ;;  %p8448_p13 = por %p265_p4, %p69_p2 }
  0x49   : > { %10552 = sst [smem:[#allocation55_spill]] %s8444_s17  ;;  %p402_p1 = scmp.eq.s32.totalorder %s8349_s15, 5 }
  0x4a   : > { %s10553_s0 = scalar_select %p8448_p13, 1, 0 }
  0x4b   : > { %s10555_s1 = sadd.s32 4294967294, %s8141_s13   ;;  %p8459_p7 = por %p271_p9, %p10485_p6 }
  0x4c   : > { %10554 = sst [smem:[#allocation56_spill]] %s10553_s0  ;;  %p408_p8 = scmp.eq.s32.totalorder %s10555_s1, 5 }
  0x4d   : > { %s10556_s9 = scalar_select %p8459_p7, 1, 0 }
  0x4e   : > { %p5743_p11 = scmp.ge.s32.totalorder %s8141_s13, 1  ;;  %p10558_p5 = scmp.ne.s32.totalorder %s8121_s29, %s8117_s28 }
  0x4f   : > { %10557 = sst [smem:[#allocation57_spill]] %s10556_s9  ;;  %p10561_p2 = scmp.ne.s32.totalorder %s8117_s28, %s8113_s27 }
  0x50   : > { %p8467_p10 = por %p402_p1, %p10558_p5  ;;  %p443_p4 = scmp.lt.s32.totalorder %s8141_s13, 7 }
  0x51   : > { %p8474_p12 = por %p408_p8, %p10561_p2  ;;  %s8143_s1 = smov [#allocation8]  }
  0x52   : > { %s10559_s21 = scalar_select %p8467_p10, 1, 0 }
  0x53   : > { %s10562_s16 = scalar_select %p8474_p12, 1, 0 }
  0x54   : > { %10560 = sst [smem:[#allocation58_spill]] %s10559_s21  ;;  %p8479_p13 = pnand %p5743_p11, %p443_p4 }
  0x55   : > { %10563 = sst [smem:[#allocation59_spill]] %s10562_s16  ;;  %s466_s5 = sshll.u32 %s8143_s1, 4  ;;  %s8483_s5 = int_to_ptr.vmem [resolvable:$true] %s466_s5 }
  0x56   : > { %s10564_s18 = scalar_select %p8479_p13, 1, 0 }
  0x57   : > { %p7142_p1 = pneg %p8479_p13  ;;  %s8144_s17 = smov [#allocation10]  }
  0x58   : > { %10565 = sst [smem:[#allocation60_spill]] %s10564_s18  ;;  %s479_s9 = sshll.u32 %s8144_s17, 4  ;;  %s8493_s9 = int_to_ptr.vmem [resolvable:$true] %s479_s9 }
  0x59   : > { %p8489_p5 = pnand %p7142_p1, %p10485_p6  ;;  %s8145_s16 = smov [#allocation11]  }
  0x5a   : > { %s8495_s21 = sshll.u32 %s8145_s16, 4  ;;  %s10567_s3 = sld [smem:[#allocation84_spill]]  ;;  %s496_s21 = int_to_ptr.vmem [resolvable:$true] %s8495_s21 }
  0x5b   : > { %p8505_p9 = pneg %p8489_p5 }
  0x60   : > { %s7683_s1 = scalar_lea.hbm %s10567_s3, 6144 }
  0x61   : > { %p7684_p8 = scmp.ne.s32.totalorder %s10567_s3, %s7683_s1  ;;  %p7690_p4 = scmp.lt.u32.totalorder %s7683_s1, %s10567_s3 }
  0x63   : > { %p7686_p11 = pnand %p8505_p9, %p7684_p8 }
  0x65   : > { %p7687_p2 = pneg %p7686_p11 }
  0x67   : > { %p7692_p1 = pnand %p7690_p4, %p7687_p2 }
  0x69   : > { %7695 = shalt.err (!%p7692_p1)
}
  0x6a   : > { %s7696_s7 = scalar_lea.vmem %s8483_s5, 6144  ;;  %p7704_p7 = scmp.lt.s32.totalorder %s8483_s5, %s8483_s5 }
  0x6b   : > { %p7697_p6 = scmp.ne.s32.totalorder %s8483_s5, %s7696_s7  ;;  %p7705_p13 = scmp.lt.s32.totalorder %s7696_s7, %s7696_s7 }
  0x6d   : > { %p7699_p12 = pnand %p7697_p6, %p8505_p9  ;;  %p7706_p8 = por %p7705_p13, %p7704_p7 }
  0x6f   : > { %p7700_p10 = pneg %p7699_p12 }
  0x71   : > { %p7707_p11 = pnand %p7706_p8, %p7700_p10 }
  0x73   : > { %7710 = shalt.err (!%p7707_p11)
}
  0x74   : > { %s8146_s19 = smov 384   ;;  %s8147_s22 = smov 24  }
  0x75   : > { %7148 = dma.hbm_to_vmem [thread:$0]  (!%p8489_p5), %s10567_s3, 6144, %s8483_s5, [#allocation9], %s8146_s19, %s8146_s19, %s8147_s22  }
  0x76   : > { %s10569_s4 = sld [smem:[#allocation85_spill]] }
  0x7c   : > { %s7711_s28 = scalar_lea.hbm %s10569_s4, 2048 }
  0x7d   : > { %p7712_p6 = scmp.ne.s32.totalorder %s10569_s4, %s7711_s28  ;;  %p7718_p13 = scmp.lt.u32.totalorder %s7711_s28, %s10569_s4 }
  0x7f   : > { %p7714_p7 = pnand %p7712_p6, %p8505_p9 }
  0x81   : > { %p7715_p10 = pneg %p7714_p7 }
  0x83   : > { %p7720_p12 = pnand %p7718_p13, %p7715_p10 }
  0x85   : > { %7723 = shalt.err (!%p7720_p12)
}
  0x86   : > { %s7724_s5 = scalar_lea.vmem %s8493_s9, 2048  ;;  %p7732_p8 = scmp.lt.s32.totalorder %s8493_s9, %s8493_s9 }
  0x87   : > { %p7725_p2 = scmp.ne.s32.totalorder %s8493_s9, %s7724_s5  ;;  %p7733_p11 = scmp.lt.s32.totalorder %s7724_s5, %s7724_s5 }
  0x89   : > { %p7727_p4 = pnand %p7725_p2, %p8505_p9  ;;  %p7734_p6 = por %p7733_p11, %p7732_p8 }
  0x8b   : > { %p7728_p1 = pneg %p7727_p4 }
  0x8d   : > { %p7735_p7 = pnand %p7734_p6, %p7728_p1 }
  0x8f   : > { %7738 = shalt.err (!%p7735_p7)
}
  0x90   : > { %s10497_s15 = smov 128   ;;  %s10498_s28 = smov 8  }
  0x91   : > { %7151 = dma.hbm_to_vmem [thread:$0]  (!%p8489_p5), %s10569_s4, 2048, %s8493_s9, [#allocation9], %s10497_s15, %s10497_s15, %s10498_s28  }
  0x92   : > { %s7739_s25 = scalar_lea.hbm %s10441_s6, 256 }
  0x93   : > { %p7740_p10 = scmp.ne.s32.totalorder %s10441_s6, %s7739_s25  ;;  %p7746_p2 = scmp.lt.u32.totalorder %s7739_s25, %s10441_s6 }
  0x95   : > { %p7742_p13 = pnand %p7740_p10, %p8505_p9 }
  0x97   : > { %p7743_p12 = pneg %p7742_p13 }
  0x99   : > { %p7748_p4 = pnand %p7746_p2, %p7743_p12 }
  0x9b   : > { %7751 = shalt.err (!%p7748_p4)
}
  0x9c   : > { %s7752_s5 = scalar_lea.vmem %s496_s21, 256  ;;  %p7760_p6 = scmp.lt.s32.totalorder %s496_s21, %s496_s21 }
  0x9d   : > { %p7753_p1 = scmp.ne.s32.totalorder %s496_s21, %s7752_s5  ;;  %p7761_p7 = scmp.lt.s32.totalorder %s7752_s5, %s7752_s5 }
  0x9f   : > { %p7755_p8 = pnand %p7753_p1, %p8505_p9  ;;  %p7762_p0 = por %p7761_p7, %p7760_p6 }
  0xa1   : > { %p7756_p11 = pneg %p7755_p8 }
  0xa3   : > { %p7763_p3 = pnand %p7762_p0, %p7756_p11 }
  0xa5   : > { %7766 = shalt.err (!%p7763_p3)
}
  0xa6   : > { %s8150_s9 = smov 64   ;;  %s8151_s0 = smov 4  }
  0xa7   : > { %7154 = dma.hbm_to_vmem [thread:$0]  (!%p8489_p5), %s10441_s6, 256, %s496_s21, [#allocation12], %s8150_s9, %s8150_s9, %s8151_s0  }
  0xa8   : > { %s8152_s22 = smov [#allocation7]   ;;  %s8153_s24 = smov [#allocation15]  }
  0xa9   : > { %s456_s25 = sshll.u32 %s8152_s22, 4  ;;  %s511_s1 = sshll.u32 %s8153_s24, 4  ;;  %s457_s25 = int_to_ptr.vmem [resolvable:$true] %s456_s25  ;;  %s512_s1 = int_to_ptr.vmem [resolvable:$true] %s511_s1 }
  0xaa   : > { %s10570_s2 = sld [smem:[#allocation83_spill]] }
  0xb0   : > { %s7767_s5 = scalar_lea.hbm %s10570_s2, 16 }
  0xb1   : > { %p7768_p3 = scmp.ne.s32.totalorder %s10570_s2, %s7767_s5  ;;  %p7774_p13 = scmp.lt.u32.totalorder %s7767_s5, %s10570_s2 }
  0xb3   : > { %p7770_p0 = pnand %p7768_p3, %p8505_p9 }
  0xb5   : > { %p7771_p10 = pneg %p7770_p0 }
  0xb7   : > { %p7776_p12 = pnand %p7774_p13, %p7771_p10 }
  0xb9   : > { %7779 = shalt.err (!%p7776_p12)
}
  0xba   : > { %s7780_s21 = scalar_lea.vmem %s457_s25, 16  ;;  %s7787_s9 = scalar_lea.vmem %s457_s25, 32 }
  0xbb   : > { %p7781_p2 = scmp.ne.s32.totalorder %s457_s25, %s7780_s21  ;;  %p7788_p8 = scmp.lt.s32.totalorder %s457_s25, %s457_s25 }
  0xbc   : > { %p7789_p11 = scmp.lt.s32.totalorder %s7787_s9, %s7780_s21 }
  0xbd   : > { %p7783_p4 = pnand %p7781_p2, %p8505_p9 }
  0xbe   : > { %p7790_p6 = por %p7789_p11, %p7788_p8 }
  0xbf   : > { %p7784_p1 = pneg %p7783_p4 }
  0xc1   : > { %p7791_p7 = pnand %p7790_p6, %p7784_p1 }
  0xc3   : > { %7794 = shalt.err (!%p7791_p7)
}
  0xc4   : > { %7145 = dma.hbm_to_vmem [thread:$0]  (!%p8489_p5), %s10570_s2, 16, %s457_s25, [#allocation6]  }
  0xc5   : > { %s7795_s0 = scalar_lea.hbm %s10445_s10, 12288 }
  0xc6   : > { %p7796_p3 = scmp.ne.s32.totalorder %s10445_s10, %s7795_s0  ;;  %p7802_p13 = scmp.lt.u32.totalorder %s7795_s0, %s10445_s10 }
  0xc8   : > { %p7798_p0 = pnand %p7796_p3, %p8505_p9 }
  0xca   : > { %p7799_p10 = pneg %p7798_p0 }
  0xcc   : > { %p7804_p12 = pnand %p7802_p13, %p7799_p10 }
  0xce   : > { %7807 = shalt.err (!%p7804_p12)
}
  0xcf   : > { %s7808_s16 = scalar_lea.vmem %s512_s1, 12288  ;;  %p7816_p8 = scmp.lt.s32.totalorder %s512_s1, %s512_s1 }
  0xd0   : > { %p7809_p2 = scmp.ne.s32.totalorder %s512_s1, %s7808_s16  ;;  %p7817_p11 = scmp.lt.s32.totalorder %s7808_s16, %s7808_s16 }
  0xd2   : > { %p7811_p4 = pnand %p7809_p2, %p8505_p9  ;;  %p7818_p6 = por %p7817_p11, %p7816_p8 }
  0xd4   : > { %p7812_p1 = pneg %p7811_p4 }
  0xd6   : > { %p7819_p7 = pnand %p7818_p6, %p7812_p1 }
  0xd8   : > { %7822 = shalt.err (!%p7819_p7)
}
  0xd9   : > { %s8154_s25 = smov 768   ;;  %s8155_s7 = smov 48  }
  0xda   : > { %7157 = dma.hbm_to_vmem [thread:$0]  (!%p8489_p5), %s10445_s10, 12288, %s512_s1, [#allocation9], %s8154_s25, %s8154_s25, %s8155_s7  }
  0xdb   : > { %s8156_s9 = smov [#allocation16]   ;;  %s7823_s4 = scalar_lea.hbm %s10447_s12, 6144 }
  0xdc   : > { %s527_s15 = sshll.u32 %s8156_s9, 4  ;;  %p7824_p3 = scmp.ne.s32.totalorder %s10447_s12, %s7823_s4  ;;  %s528_s15 = int_to_ptr.vmem [resolvable:$true] %s527_s15 }
  0xdd   : > { %p7830_p13 = scmp.lt.u32.totalorder %s7823_s4, %s10447_s12 }
  0xde   : > { %p7826_p0 = pnand %p7824_p3, %p8505_p9 }
  0xe0   : > { %p7827_p10 = pneg %p7826_p0 }
  0xe2   : > { %p7832_p12 = pnand %p7830_p13, %p7827_p10 }
  0xe4   : > { %7835 = shalt.err (!%p7832_p12)
}
  0xe5   : > { %s7836_s1 = scalar_lea.vmem %s528_s15, 6144  ;;  %p7844_p8 = scmp.lt.s32.totalorder %s528_s15, %s528_s15 }
  0xe6   : > { %p7837_p2 = scmp.ne.s32.totalorder %s528_s15, %s7836_s1  ;;  %p7845_p11 = scmp.lt.s32.totalorder %s7836_s1, %s7836_s1 }
  0xe8   : > { %p7839_p4 = pnand %p7837_p2, %p8505_p9  ;;  %p7846_p6 = por %p7845_p11, %p7844_p8 }
  0xea   : > { %p7840_p1 = pneg %p7839_p4 }
  0xec   : > { %p7847_p7 = pnand %p7846_p6, %p7840_p1 }
  0xee   : > { %7850 = shalt.err (!%p7847_p7)
}
  0xef   : > { %s10571_s24 = smov 8   ;;  %s10572_s16 = smov 128  }
  0xf0   : > { %7160 = dma.hbm_to_vmem [thread:$0]  (!%p8489_p5), %s10447_s12, 6144, %s528_s15, [#allocation12], %s10572_s16, %s10572_s16, %s10571_s24  }
  0xf1   : > { %p5750_p3 = scmp.ge.s32.totalorder %s8141_s13, 6 }
  0xf2   : > { %s10573_s17 = sld [smem:[#allocation44_spill]] (!%p5750_p3)  ;;  %s10574_s5 = sld [smem:[#allocation47_spill]] (!%p5750_p3) }
  0xf3   : > { %540 = sbr.rel (%p5750_p3) target bundleno = 340 (0x154), region = 56  ;;  %s10499_s21 = sand.u32 (!%p5750_p3), 1, %s8141_s13  }
  0xf4   : > { %s546_s27 = sand.u32 (!%p5750_p3), 1, %s8121_s29   ;;  %s7084_s3 = smul.u32 (!%p5750_p3), 12, %s8137_s14 }
  0xf5   : > { %s5751_s9 = sshll.u32 (!%p5750_p3), %s546_s27, 5  ;;  %s10575_s1 = sld [smem:[#allocation81_spill]] (!%p5750_p3) }
  0xf6   : > { %s548_s4 = scalar_lea.vmem (!%p5750_p3), [#allocation2], %s5751_s9  ;;  %s569_s16 = sand.u32 (!%p5750_p3), 1, %s8109_s26  }
  0xf7   : > { %s557_s0 = sshll.u32 (!%p5750_p3), %s548_s4, 4  ;;  %s8645_s25 = scalar_lea.sflag (!%p5750_p3), [#allocation3], %s10499_s21  ;;  %s8633_s0 = int_to_ptr.vmem [resolvable:$true] %s557_s0 }
  0xf8   : > { %s5752_s28 = sshll.u32 (!%p5750_p3), %s10573_s17, 2  ;;  %p10576_p9 = scmp.ne.s32.totalorder (!%p5750_p3), %s10574_s5, 0 }
  0xf9   : > { %s554_s15 = sadd.s32 (!%p5750_p3), %s7084_s3, %s5752_s28 }
  0xfa   : > { %s5753_s18 = sshll.u32 %s554_s15, 7 }
  0xfb   : > { %s8640_s24 = scalar_lea.hbm %s10575_s1, %s5753_s18  ;;  %s7855_s28 = scalar_lea.hbm %s10575_s1, 3072 }
  0xfc   : > { %s7851_s7 = scalar_lea.hbm %s8640_s24, 512  ;;  %p7856_p13 = scmp.lt.u32.totalorder %s8640_s24, %s10575_s1 }
  0xfd   : > { %p7852_p5 = scmp.ne.s32.totalorder %s8640_s24, %s7851_s7  ;;  %p7857_p12 = scmp.lt.u32.totalorder %s7855_s28, %s7851_s7 }
  0xfe   : > { %p7859_p4 = scmp.lt.u32.totalorder %s7851_s7, %s8640_s24 }
  0xff   : > { %p7853_p0 = pnand %p7852_p5, %p10576_p9  ;;  %p7858_p2 = por %p7857_p12, %p7856_p13 }
 0x101   : > { %p7854_p10 = pneg %p7853_p0  ;;  %p7860_p1 = por %p7859_p4, %p7858_p2 }
 0x103   : > { %p7861_p8 = pnand %p7860_p1, %p7854_p10 }
 0x105   : > { %7864 = shalt.err (!%p7861_p8)
}
 0x106   : > { %s7865_s18 = scalar_lea.vmem %s8633_s0, 512  ;;  %s8157_s19 = smov [#allocation2]  }
 0x107   : > { %p7866_p11 = scmp.ne.s32.totalorder %s8633_s0, %s7865_s18  ;;  %s7869_s22 = sshll.u32 %s8157_s19, 4  ;;  %s7870_s22 = int_to_ptr.vmem [resolvable:$false] %s7869_s22 }
 0x108   : > { %s7871_s27 = scalar_lea.vmem %s7870_s22, 1024  ;;  %p7872_p3 = scmp.lt.s32.totalorder %s8633_s0, %s7870_s22 }
 0x109   : > { %p7867_p6 = pnand %p7866_p11, %p10576_p9  ;;  %p7873_p5 = scmp.lt.s32.totalorder %s7871_s27, %s7865_s18 }
 0x10b   : > { %p7868_p7 = pneg %p7867_p6  ;;  %p7874_p0 = por %p7873_p5, %p7872_p3 }
 0x10d   : > { %p7875_p13 = pnand %p7874_p0, %p7868_p7 }
 0x10f   : > { %7878 = shalt.err (!%p7875_p13)
}
 0x110   : > { %s8158_s7 = smov 128   ;;  %s8159_s9 = smov 8  }
 0x111   : > { %7104 = dma.hbm_to_vmem [thread:$0]  (%p10576_p9), %s8640_s24, 512, %s8633_s0, %s8645_s25, %s8158_s7, %s8158_s7, %s8159_s9  }
 0x112   : > { %s5754_s28 = sshll.u32 %s569_s16, 5  ;;  %s5756_s4 = sshll.u32 %s10707_s8, 2 }
 0x113   : > { %s580_s15 = sadd.s32 %s7084_s3, %s5756_s4  ;;  %s571_s19 = scalar_lea.vmem [#allocation5], %s5754_s28 }
 0x114   : > { %s5757_s18 = sshll.u32 %s580_s15, 7  ;;  %s583_s22 = sshll.u32 %s571_s19, 4  ;;  %s8682_s22 = int_to_ptr.vmem [resolvable:$true] %s583_s22 }
 0x115   : > { %s10577_s1 = sld [smem:[#allocation82_spill]]  ;;  %s10578_s5 = sand.u32 1, %s8141_s13  }
 0x116   : > { %s8686_s0 = scalar_lea.sflag [#allocation6], %s10578_s5  ;;  %p10579_p10 = scmp.ne.s32.totalorder %s10544_s11, 0 }
 0x11b   : > { %s8680_s2 = scalar_lea.hbm %s10577_s1, %s5757_s18  ;;  %s7883_s21 = scalar_lea.hbm %s10577_s1, 3072 }
 0x11c   : > { %s7879_s24 = scalar_lea.hbm %s8680_s2, 512  ;;  %p7884_p4 = scmp.lt.u32.totalorder %s8680_s2, %s10577_s1 }
 0x11d   : > { %p7880_p9 = scmp.ne.s32.totalorder %s8680_s2, %s7879_s24  ;;  %p7885_p1 = scmp.lt.u32.totalorder %s7883_s21, %s7879_s24 }
 0x11e   : > { %p7887_p11 = scmp.lt.u32.totalorder %s7879_s24, %s8680_s2 }
 0x11f   : > { %p7881_p12 = pnand %p7880_p9, %p10579_p10  ;;  %p7886_p8 = por %p7885_p1, %p7884_p4 }
 0x121   : > { %p7882_p2 = pneg %p7881_p12  ;;  %p7888_p6 = por %p7887_p11, %p7886_p8 }
 0x123   : > { %p7889_p7 = pnand %p7888_p6, %p7882_p2 }
 0x125   : > { %7892 = shalt.err (!%p7889_p7)
}
 0x126   : > { %s7893_s15 = scalar_lea.vmem %s8682_s22, 512  ;;  %s8160_s18 = smov [#allocation5]  }
 0x127   : > { %p7894_p3 = scmp.ne.s32.totalorder %s8682_s22, %s7893_s15  ;;  %s7897_s19 = sshll.u32 %s8160_s18, 4  ;;  %s7898_s19 = int_to_ptr.vmem [resolvable:$false] %s7897_s19 }
 0x128   : > { %s7899_s27 = scalar_lea.vmem %s7898_s19, 1024  ;;  %p7900_p13 = scmp.lt.s32.totalorder %s8682_s22, %s7898_s19 }
 0x129   : > { %p7895_p5 = pnand %p7894_p3, %p10579_p10  ;;  %p7901_p9 = scmp.lt.s32.totalorder %s7899_s27, %s7893_s15 }
 0x12b   : > { %p7896_p0 = pneg %p7895_p5  ;;  %p7902_p12 = por %p7901_p9, %p7900_p13 }
 0x12d   : > { %p7903_p4 = pnand %p7902_p12, %p7896_p0 }
 0x12f   : > { %7906 = shalt.err (!%p7903_p4)
}
 0x130   : > { %7105 = dma.hbm_to_vmem [thread:$0]  (%p10579_p10), %s8680_s2, 512, %s8682_s22, %s8686_s0, %s8158_s7, %s8158_s7, %s8159_s9  }
 0x131   : > { %s595_s5 = sand.u32 1, %s8097_s23   ;;  %s5928_s24 = sshll.u32 %s10573_s17, 9 }
 0x132   : > { %s7086_s3 = smul.u32 96, %s595_s5  ;;  %s10580_s11 = sld [smem:[#allocation87_spill]] }
 0x133   : > { %p10581_p2 = scmp.ne.s32.totalorder %s10549_s30, 0  ;;  %s8161_s9 = smov 1536  }
 0x134   : > { %s597_s2 = scalar_lea.vmem [#allocation13], %s7086_s3  ;;  %s8162_s22 = smov 512  }
 0x135   : > { %s7106_s4 = scalar_select %p10581_p2, [#allocation0], [#allocation24] }
 0x136   : > { %s616_s7 = sshll.u32 %s597_s2, 4  ;;  %7107 = sst [smem:[#allocation21]] (%p10581_p2), %s8161_s9  ;;  %s617_s7 = int_to_ptr.vmem [resolvable:$true] %s616_s7 }
 0x137   : > { %s608_s15 = sld [smem:[%s7106_s4]]   ;;  %s8163_s17 = smov 4  }
 0x138   : > { %s603_s28 = scalar_lea.hbm %s10580_s11, %s5928_s24  ;;  %7108 = sst [smem:[#allocation21 + $0x1]] (%p10581_p2), %s8162_s22 }
 0x139   : > { %7109 = sst [smem:[#allocation21 + $0x2]] (%p10581_p2), %s8163_s17  ;;  %s8164_s18 = smov 128  }
 0x13a   : > { %7110 = sst [smem:[#allocation21 + $0x3]] (%p10581_p2), %s8164_s18  ;;  %s8165_s5 = smov 8  }
 0x13b   : > { %7111 = sst [smem:[#allocation21 + $0x4]] (%p10581_p2), %s8164_s18  ;;  %s8166_s24 = smov [#allocation20]  }
 0x13c   : > { %7112 = sst [smem:[#allocation21 + $0x5]] (%p10581_p2), %s8165_s5 }
 0x13d   : > { %s5760_s19 = sshll.u32 %s608_s15, 26 }
 0x13e   : > { %s5761_s27 = sadd.s32 134217728, %s5760_s19 }
 0x13f   : > { %7113 = dma.general (%p10581_p2), %s603_s28, 1536, %s617_s7, %s8645_s25, %s8166_s24, [#allocation21], %s5761_s27, 0  }
 0x140   : > { %s10582_s3 = sld [smem:[#allocation56_spill]]  ;;  %s641_s16 = sand.u32 1, %s8085_s20  }
 0x141   : > { %s5929_s21 = sshll.u32 %s10707_s8, 9  ;;  %s7087_s11 = smul.u32 96, %s641_s16 }
 0x142   : > { %s10583_s2 = sld [smem:[#allocation88_spill]]  ;;  %s8167_s28 = smov 1536  }
 0x143   : > { %s643_s30 = scalar_lea.vmem [#allocation14], %s7087_s11  ;;  %s8168_s7 = smov 512  }
 0x144   : > { %s665_s25 = sshll.u32 %s643_s30, 4  ;;  %s8169_s8 = smov 4   ;;  %s666_s25 = int_to_ptr.vmem [resolvable:$true] %s665_s25 }
 0x145   : > { %s8170_s18 = smov 128   ;;  %s8171_s5 = smov 8  }
 0x146   : > { %p10584_p10 = scmp.ne.s32.totalorder %s10582_s3, 0  ;;  %s8172_s24 = smov [#allocation22]  }
 0x148   : > { %s652_s9 = scalar_lea.hbm %s10583_s2, %s5929_s21  ;;  %7115 = sst [smem:[#allocation23]] (%p10584_p10), %s8167_s28 }
 0x149   : > { %s7114_s22 = scalar_select %p10584_p10, [#allocation0], [#allocation25] }
 0x14a   : > { %7116 = sst [smem:[#allocation23 + $0x1]] (%p10584_p10), %s8168_s7 }
 0x14b   : > { %s657_s17 = sld [smem:[%s7114_s22]]  }
 0x14c   : > { %7117 = sst [smem:[#allocation23 + $0x2]] (%p10584_p10), %s8169_s8 }
 0x14d   : > { %7118 = sst [smem:[#allocation23 + $0x3]] (%p10584_p10), %s8170_s18 }
 0x14e   : > { %7119 = sst [smem:[#allocation23 + $0x4]] (%p10584_p10), %s8170_s18 }
 0x14f   : > { %7120 = sst [smem:[#allocation23 + $0x5]] (%p10584_p10), %s8171_s5 }
 0x151   : > { %s5765_s19 = sshll.u32 %s657_s17, 26 }
 0x152   : > { %s5766_s27 = sadd.s32 134217728, %s5765_s19 }
 0x153   : > { %7121 = dma.general (%p10584_p10), %s652_s9, 1536, %s666_s25, %s8686_s0, %s8172_s24, [#allocation23], %s5766_s27, 0  }
 0x154 PF: > { %s10585_s16 = sld [smem:[#allocation60_spill]] }
 0x15a   : > { %p10586_p1 = scmp.ne.s32.totalorder %s10585_s16, 0 }
 0x15c   : > { %690 = sbr.rel (%p10586_p1) target bundleno = 3865 (0xf19), region = 76 }
 0x163   : > { %s10587_s21 = sld [smem:[#allocation45_spill]]  ;;  %s10588_s11 = sld [smem:[#allocation41_spill]] }
 0x164   : > { %s10589_s4 = sld [smem:[#allocation49_spill]] }
 0x169   : > { %s692_s15 = sand.u32 1, %s10587_s21   ;;  %s8761_s2 = sand.u32 1, %s10588_s11  }
 0x16a   : > { %s8764_s22 = sshll.u32 %s8761_s2, 5  ;;  %s693_s17 = scalar_lea.sflag [#allocation3], %s692_s15 }
 0x16b   : > { %s8767_s30 = scalar_lea.vmem [#allocation2], %s8764_s22  ;;  %p10590_p8 = scmp.ne.s32.totalorder %s10589_s4, 0 }
 0x16d   : > { %8032 = dma.done.wait (%p10590_p8), %s693_s17, 512  }
 0x16e   : > { %8034 = vsyncadd (%p10590_p8), %s693_s17, 4294966784  ;;  %s10591_s0 = sld [smem:[#allocation39_spill]]  ;;  %s10592_s3 = sld [smem:[#allocation51_spill]] }
 0x16f   : > { %s702_s28 = scalar_lea.sflag [#allocation6], %s692_s15 }
 0x174   : > { %s703_s9 = sand.u32 1, %s10591_s0   ;;  %p10593_p11 = scmp.ne.s32.totalorder %s10592_s3, 0 }
 0x175   : > { %s5769_s25 = sshll.u32 %s703_s9, 5 }
 0x176   : > { %s8774_s7 = scalar_lea.vmem [#allocation5], %s5769_s25 }
 0x177   : > { %8036 = dma.done.wait (%p10593_p11), %s702_s28, 512  }
 0x178   : > { %8038 = vsyncadd (%p10593_p11), %s702_s28, 4294966784  ;;  %p10594_p6 = scmp.eq.s32.totalorder %s10587_s21, 0 }
 0x17a   : > { %8040 = dma.done.wait (%p10594_p6), [#allocation6], 16   ;;  %p10595_p7 = pmov %p10594_p6 }
 0x17b   : > { %p10596_p3 = pmov %p10594_p6 }
 0x17c   : > { %8042 = vsyncadd (%p10595_p7), [#allocation6], 4294967280 }
 0x17d   : > { %8044 = dma.done.wait (%p10596_p3), [#allocation9], 8192   ;;  %p10597_p5 = pmov %p10596_p3 }
 0x17e   : > { %p10598_p0 = pmov %p10596_p3 }
 0x17f   : > { %8046 = vsyncadd (%p10597_p5), [#allocation9], 4294959104 }
 0x180   : > { %8048 = dma.done.wait (%p10598_p0), [#allocation12], 256   ;;  %p10599_p13 = pmov %p10598_p0 }
 0x181   : > { %s10600_s8 = sld [smem:[#allocation38_spill]]  ;;  %s10601_s18 = sld [smem:[#allocation54_spill]] }
 0x182   : > { %8050 = vsyncadd (%p10599_p13), [#allocation12], 4294967040 }
 0x187   : > { %s728_s19 = sand.u32 1, %s10600_s8   ;;  %p10602_p9 = scmp.ne.s32.totalorder %s10601_s18, 0 }
 0x188   : > { %s7088_s27 = smul.u32 96, %s728_s19 }
 0x18a   : > { %s8793_s5 = scalar_lea.vmem [#allocation13], %s7088_s27 }
 0x18b   : > { %8052 = dma.done.wait (%p10602_p9), %s693_s17, 1536  }
 0x18c   : > { %8054 = vsyncadd (%p10602_p9), %s693_s17, 4294965760  ;;  %s10603_s24 = sld [smem:[#allocation37_spill]]  ;;  %s10604_s16 = sld [smem:[#allocation57_spill]] }
 0x192   : > { %s737_s11 = sand.u32 1, %s10603_s24   ;;  %p10605_p12 = scmp.ne.s32.totalorder %s10604_s16, 0 }
 0x193   : > { %s7089_s4 = smul.u32 96, %s737_s11 }
 0x195   : > { %s8800_s15 = scalar_lea.vmem [#allocation14], %s7089_s4 }
 0x196   : > { %8056 = dma.done.wait (%p10605_p12), %s702_s28, 1536  }
 0x197   : > { %8058 = vsyncadd (%p10605_p12), %s702_s28, 4294965760  ;;  %p10606_p4 = pmov %p10598_p0 }
 0x198   : > { %p10607_p2 = pmov %p10598_p0 }
 0x199   : > { %8060 = dma.done.wait (%p10606_p4), [#allocation9], 12288  }
 0x19a   : > { %8062 = vsyncadd (%p10607_p2), [#allocation9], 4294955008  ;;  %p10608_p10 = pmov %p10598_p0 }
 0x19b   : > { %p10609_p1 = pmov %p10598_p0 }
 0x19c   : > { %8064 = dma.done.wait (%p10608_p10), [#allocation12], 6144  }
 0x19d   : > { %8066 = vsyncadd (%p10609_p1), [#allocation12], 4294961152  ;;  %v8815_v0 = vld [vmem:[%s8767_s30] sm:$0xff]  ;;  %v8818_v1 = vld [vmem:[%s8767_s30 + $0x8] sm:$0xff]  ;;  %s8174_s21 = smov 127   ;;  %s8175_s17 = smov 1  }
 0x19e   : > { %v8821_v2 = vld [vmem:[%s8767_s30 + $0x10] sm:$0xff]  ;;  %v831_v3 = vmul.f32 %v8815_v0, %v8815_v0  ;;  %v8828_v5 = vld [vmem:[%s8767_s30 + $0x18] sm:$0xff]  ;;  %v8831_v6 = vld [vmem:[%s8774_s7] sm:$0xff]  ;;  %v832_v8 = vmul.f32 %v8818_v1, %v8818_v1  ;;  %s8965_s0 = scalar_lea.vmem [#allocation18], %s8764_s22  ;;  %vm1388_vm0 = vcmask 261120   ;;  %s10612_s25 = sld [smem:[#allocation86_spill]] }
 0x19f   : > { %v833_v4 = vmul.f32 %v8821_v2, %v8821_v2  ;;  %v907_v7 = vld [vmem:[#allocation8 + $0x8] sm:$0xff]  ;;  %v834_v9 = vmul.f32 %v8828_v5, %v8828_v5  ;;  %v910_v10 = vld [vmem:[#allocation8 + $0x20] sm:$0xff]  ;;  %v909_v12 = vld [vmem:[#allocation8 + $0x18] sm:$0xff]  ;;  %v874_v24 = vmul.f32 %v8831_v6, %v8831_v6  ;;  %s10614_s28 = sld [smem:[#allocation42_spill]]  ;;  %vm1732_vm15 = vcmask 31744   ;;  %s8176_s18 = smov 96  }
 0x1a0   : > { %835 = vadd.xlane.f32.xlu0 %v831_v3  ;;  %v906_v11 = vld [vmem:[#allocation8] sm:$0xff]  ;;  %v8840_v14 = vpack.c.bf16 %v910_v10, %v907_v7  ;;  %v913_v16 = vld [vmem:[#allocation8 + $0x38] sm:$0xff]  ;;  %v916_v17 = vld [vmem:[#allocation8 + $0x50] sm:$0xff]  ;;  %s8177_s19 = smov 64   ;;  %s8178_s24 = smov 32  }
 0x1a1   : > { %839 = vadd.xlane.f32.xlu1 %v833_v4  ;;  %v8838_v13 = vld [vmem:[%s8774_s7 + $0x8] sm:$0xff]  ;;  %v6606_v15 = vpack.c.bf16 %v909_v12, %v906_v11  ;;  %v8842_v18 = vpack.c.bf16 %v916_v17, %v913_v16  ;;  %v912_v19 = vld [vmem:[#allocation8 + $0x30] sm:$0xff]  ;;  %v921_v33 = vld [vmem:[#allocation8 + $0x78] sm:$0xff]  ;;  %v10501_v16 = vmov 0.0  }
 0x1a2   : > { %v915_v20 = vld [vmem:[#allocation8 + $0x48] sm:$0xff]  ;;  %6605 = vmatprep.subr.bf16.mxu0 %v8840_v14  ;;  %v922_v22 = vld [vmem:[#allocation8 + $0x80] sm:$0xff]  ;;  %v908_v23 = vld [vmem:[#allocation8 + $0x10] sm:$0xff]  ;;  %v875_v25 = vmul.f32 %v8838_v13, %v8838_v13  ;;  %1018 = vmatprep.mubr.f32.mxu0 %v10501_v16 }
 0x1a3   : > { %v919_v21 = vld [vmem:[#allocation8 + $0x68] sm:$0xff]  ;;  %v8853_v28 = vld [vmem:[%s8774_s7 + $0x18] sm:$0xff]  ;;  %6607 = vmatpush1.bf16.msra.mxu0 %v6606_v15  ;;  %v6610_v29 = vpack.c.bf16 %v915_v20, %v912_v19  ;;  %v918_v32 = vld [vmem:[#allocation8 + $0x60] sm:$0xff] }
 0x1a4   : > { %837 = vadd.xlane.f32.xlu0 %v832_v8  ;;  %v911_v26 = vld [vmem:[#allocation8 + $0x28] sm:$0xff]  ;;  %6609 = vmatprep.subr.bf16.mxu0 %v8842_v18  ;;  %v8858_v31 = vpack.c.bf16 %v922_v22, %v919_v21  ;;  %v925_v34 = vld [vmem:[#allocation8 + $0x98] sm:$0xff]  ;;  %v928_v35 = vld [vmem:[#allocation8 + $0xb0] sm:$0xff]  ;;  %v877_v37 = vmul.f32 %v8853_v28, %v8853_v28  ;;  %v6614_v38 = vpack.c.bf16 %v921_v33, %v918_v32 }
 0x1a5   : > { %841 = vadd.xlane.f32.xlu1 %v834_v9  ;;  %v8850_v27 = vld [vmem:[%s8774_s7 + $0x10] sm:$0xff]  ;;  %v8855_v30 = vpack.c.bf16 %v911_v26, %v908_v23  ;;  %v8867_v39 = vpack.c.bf16 %v928_v35, %v925_v34  ;;  %v914_v42 = vld [vmem:[#allocation8 + $0x40] sm:$0xff]  ;;  %v917_v43 = vld [vmem:[#allocation8 + $0x58] sm:$0xff]  ;;  %s10613_s7 = smov %s10612_s25  ;;  %p1380_p8 = scmp.gt.s32.totalorder %s10614_s28, 0 }
 0x1a6   : > { %v876_v36 = vmul.f32 %v8850_v27, %v8850_v27  ;;  %v924_v40 = vld [vmem:[#allocation8 + $0x90] sm:$0xff]  ;;  %v927_v41 = vld [vmem:[#allocation8 + $0xa8] sm:$0xff]  ;;  %v8869_v44 = vpack.c.bf16 %v917_v43, %v914_v42  ;;  %v934_v47 = vld [vmem:[#allocation8 + $0xe0] sm:$0xff] }
 0x1a7   : > { %6637 = vmatprep.subr.bf16.mxu1 %v8855_v30  ;;  %6611 = vmatpush1.bf16.msra.mxu0 %v6610_v29  ;;  %v6618_v45 = vpack.c.bf16 %v927_v41, %v924_v40  ;;  %v931_v46 = vld [vmem:[#allocation8 + $0xc8] sm:$0xff]  ;;  %v930_v49 = vld [vmem:[#allocation8 + $0xc0] sm:$0xff]  ;;  %v933_v50 = vld [vmem:[#allocation8 + $0xd8] sm:$0xff]  ;;  %s1381_s8 = scalar_select %p1380_p8, 1, 0 }
 0x1a8   : > { %878 = vadd.xlane.f32.xlu0 %v874_v24  ;;  %6639 = vmatpush3.bf16.msra.mxu1 %v8855_v30  ;;  %v8873_v48 = vpack.c.bf16 %v934_v47, %v931_v46  ;;  %v920_v51 = vld [vmem:[#allocation8 + $0x70] sm:$0xff]  ;;  %v923_v52 = vld [vmem:[#allocation8 + $0x88] sm:$0xff]  ;;  %v6622_v54 = vpack.c.bf16 %v933_v50, %v930_v49  ;;  %v937_v55 = vld [vmem:[#allocation8 + $0xf8] sm:$0xff] }
 0x1a9   : > { %880 = vadd.xlane.f32.xlu1 %v875_v25  ;;  %6613 = vmatprep.subr.bf16.mxu0 %v8858_v31  ;;  %v8876_v53 = vpack.c.bf16 %v923_v52, %v920_v51  ;;  %v940_v56 = vld [vmem:[#allocation8 + $0x110] sm:$0xff]  ;;  %v939_v59 = vld [vmem:[#allocation8 + $0x108] sm:$0xff]  ;;  %v926_v60 = vld [vmem:[#allocation8 + $0xa0] sm:$0xff] }
 0x1aa   : > { %6641 = vmatprep.subr.bf16.mxu1 %v8869_v44  ;;  %v8880_v57 = vpack.c.bf16 %v940_v56, %v937_v55  ;;  %v936_v58 = vld [vmem:[#allocation8 + $0xf0] sm:$0xff]  ;;  %v929_v61 = vld [vmem:[#allocation8 + $0xb8] sm:$0xff]  ;;  %v943_v3 = vld [vmem:[#allocation8 + $0x128] sm:$0xff] }
 0x1ab   : > { %6615 = vmatpush1.bf16.msra.mxu0 %v6614_v38  ;;  %v8883_v62 = vpack.c.bf16 %v929_v61, %v926_v60  ;;  %v6626_v63 = vpack.c.bf16 %v939_v59, %v936_v58  ;;  %v946_v4 = vld [vmem:[#allocation8 + $0x140] sm:$0xff]  ;;  %v945_v9 = vld [vmem:[#allocation8 + $0x138] sm:$0xff]  ;;  %v932_v10 = vld [vmem:[#allocation8 + $0xd0] sm:$0xff] }
 0x1ac   : > { %882 = vadd.xlane.f32.xlu0 %v876_v36  ;;  %6617 = vmatprep.subr.bf16.mxu0 %v8867_v39  ;;  %v8887_v7 = vpack.c.bf16 %v946_v4, %v943_v3  ;;  %v942_v8 = vld [vmem:[#allocation8 + $0x120] sm:$0xff]  ;;  %v935_v11 = vld [vmem:[#allocation8 + $0xe8] sm:$0xff]  ;;  %v949_v12 = vld [vmem:[#allocation8 + $0x158] sm:$0xff] }
 0x1ad   : > { %884 = vadd.xlane.f32.xlu1 %v877_v37  ;;  %6643 = vmatpush3.bf16.msra.mxu1 %v8869_v44  ;;  %v952_v15 = vld [vmem:[#allocation8 + $0x170] sm:$0xff]  ;;  %v8891_v17 = vpack.c.bf16 %v935_v11, %v932_v10  ;;  %v938_v19 = vld [vmem:[#allocation8 + $0x100] sm:$0xff]  ;;  %v6630_v20 = vpack.c.bf16 %v945_v9, %v942_v8  ;;  %v941_v21 = vld [vmem:[#allocation8 + $0x118] sm:$0xff] }
 0x1ae   : > { %6645 = vmatprep.subr.bf16.mxu1 %v8876_v53  ;;  %v8895_v22 = vpack.c.bf16 %v952_v15, %v949_v12  ;;  %v948_v23 = vld [vmem:[#allocation8 + $0x150] sm:$0xff]  ;;  %v951_v24 = vld [vmem:[#allocation8 + $0x168] sm:$0xff]  ;;  %v8897_v25 = vpack.c.bf16 %v941_v21, %v938_v19  ;;  %v950_v34 = vld [vmem:[#allocation8 + $0x160] sm:$0xff] }
 0x1af   : > { %6619 = vmatpush1.bf16.msra.mxu0 %v6618_v45  ;;  %v6634_v26 = vpack.c.bf16 %v951_v24, %v948_v23  ;;  %v944_v29 = vld [vmem:[#allocation8 + $0x130] sm:$0xff]  ;;  %v947_v32 = vld [vmem:[#allocation8 + $0x148] sm:$0xff]  ;;  %v953_v35 = vld [vmem:[#allocation8 + $0x178] sm:$0xff] }
 0x1b0   : > { %6621 = vmatprep.subr.bf16.mxu0 %v8873_v48  ;;  %v8903_v33 = vpack.c.bf16 %v947_v32, %v944_v29  ;;  %v8908_v36 = vpack.c.bf16 %v953_v35, %v950_v34  ;;  %v8912_v52 = vld [vmem:[#allocation7] ss:$0 sm:$0xff]  ;;  %vm9074_vm1 = vmpackc.low %vm1388_vm0, %vm1388_vm0 }
 0x1b1   : > { %6647 = vmatpush3.bf16.msra.mxu1 %v8876_v53 }
 0x1b2   : > { %6649 = vmatprep.subr.bf16.mxu1 %v8883_v62 }
 0x1b3   : > { %6623 = vmatpush1.bf16.msra.mxu0 %v6622_v54 }
 0x1b4   : > { %6625 = vmatprep.subr.bf16.mxu0 %v8880_v57 }
 0x1b5   : > { %6651 = vmatpush3.bf16.msra.mxu1 %v8883_v62 }
 0x1b6   : > { %6653 = vmatprep.subr.bf16.mxu1 %v8891_v17 }
 0x1b7   : > { %6627 = vmatpush1.bf16.msra.mxu0 %v6626_v63 }
 0x1b8   : > { %6629 = vmatprep.subr.bf16.mxu0 %v8887_v7 }
 0x1b9   : > { %6655 = vmatpush3.bf16.msra.mxu1 %v8891_v17 }
 0x1ba   : > { %6657 = vmatprep.subr.bf16.mxu1 %v8897_v25 }
 0x1bb   : > { %6631 = vmatpush1.bf16.msra.mxu0 %v6630_v20 }
 0x1bc   : > { %6633 = vmatprep.subr.bf16.mxu0 %v8895_v22 }
 0x1bd   : > { %6659 = vmatpush3.bf16.msra.mxu1 %v8897_v25 }
 0x1be   : > { %6661 = vmatprep.subr.bf16.mxu1 %v8903_v33 }
 0x1bf   : > { %6635 = vmatpush1.bf16.msra.mxu0 %v6634_v26 }
 0x1c0   : > { %6669 = vmatprep.subr.bf16.mxu0 %v8855_v30 }
 0x1c1   : > { %6663 = vmatpush3.bf16.msra.mxu1 %v8903_v33 }
 0x1c2   : > { %6665 = vmatprep.subr.bf16.mxu1 %v8908_v36 }
 0x1c5   : > { %6667 = vmatpush3.bf16.msra.mxu1 %v8908_v36 }
 0x22d   : > { %v836_v37 = vpop.xlane.xlu0 %835 }
 0x22e   : > { %v840_v38 = vpop.xlane.xlu1 %839  ;;  %v844_v40 = vmul.f32 0.0078125, %v836_v37 }
 0x22f   : > { %v846_v41 = vmul.f32 0.0078125, %v840_v38 }
 0x230   : > { %v848_v42 = vadd.f32 1.1920929e-07, %v844_v40 }
 0x231   : > { %v850_v43 = vadd.f32 1.1920929e-07, %v846_v41  ;;  %v838_v45 = vpop.xlane.xlu0 %837 }
 0x232   : > { %v842_v30 = vpop.xlane.xlu1 %841  ;;  %7503 = vrsqrt.f32 %v848_v42  ;;  %v845_v46 = vmul.f32 0.0078125, %v838_v45 }
 0x233   : > { %v847_v47 = vmul.f32 0.0078125, %v842_v30  ;;  %7505 = vrsqrt.f32 %v850_v43 }
 0x234   : > { %v849_v49 = vadd.f32 1.1920929e-07, %v845_v46 }
 0x235   : > { %v851_v50 = vadd.f32 1.1920929e-07, %v847_v47  ;;  %v879_v61 = vpop.xlane.xlu0 %878 }
 0x236   : > { %7507 = vrsqrt.f32 %v849_v49  ;;  %v886_v4 = vmul.f32 0.0078125, %v879_v61  ;;  %v881_v9 = vpop.xlane.xlu1 %880  ;;  %v1229_v61 = vld [vmem:[%s8793_s5 + $0x40] sm:$0xff] }
 0x237   : > { %7509 = vrsqrt.f32 %v851_v50 }
 0x23a   : > { %v885_v10 = vpop.xlane.xlu1 %884 }
 0x23b   : > { %v889_v11 = vmul.f32 0.0078125, %v885_v10 }
 0x23c   : > { %v7504_v51 = vpop.eup %7503 }
 0x23d   : > { %v856_v54 = vmul.f32 %v7504_v51, %v8815_v0  ;;  %v7506_v55 = vpop.eup %7505 }
 0x23e   : > { %v858_v63 = vmul.f32 %v7506_v55, %v8821_v2  ;;  %v890_v2 = vadd.f32 1.1920929e-07, %v886_v4  ;;  %v1221_v55 = vld [vmem:[%s8793_s5] sm:$0xff] }
 0x23f   : > { %v866_v56 = vmul.f32 %v8912_v52, %v856_v54  ;;  %v1225_v54 = vld [vmem:[%s8793_s5 + $0x20] sm:$0xff] }
 0x240   : > { %v7508_v58 = vpop.eup %7507  ;;  %v868_v8 = vmul.f32 %v8912_v52, %v858_v63  ;;  %7511 = vrsqrt.f32 %v890_v2 }
 0x241   : > { %v7510_v59 = vpop.eup %7509  ;;  %1019 = vmatmul.mubr.f32.vlgmr.msra.gmra.mrb[0].mxu0 %v866_v56  ;;  %6234 = vmatprep.mubr.f32.mxu1 %v866_v56  ;;  %v857_v60 = vmul.f32 %v7508_v58, %v8818_v1 }
 0x242   : > { %6671 = vmatpush1.bf16.msra.mxu0 %v8840_v14  ;;  %1024 = vmatprep.mubr.f32.mxu0 %v10501_v16  ;;  %v859_v3 = vmul.f32 %v7510_v59, %v8828_v5  ;;  %v887_v14 = vmul.f32 0.0078125, %v881_v9 }
 0x243   : > { %6673 = vmatprep.subr.bf16.mxu0 %v8869_v44  ;;  %v867_v0 = vmul.f32 %v8912_v52, %v857_v60  ;;  %v883_v44 = vpop.xlane.xlu0 %882 }
 0x244   : > { %v869_v1 = vmul.f32 %v8912_v52, %v859_v3  ;;  %v891_v5 = vadd.f32 1.1920929e-07, %v887_v14  ;;  %v1222_v14 = vld [vmem:[%s8793_s5 + $0x8] sm:$0xff] }
 0x245   : > { %1025 = vmatmul.mubr.f32.gmra.mrb[2].mxu0 %v867_v0  ;;  %6235 = vmatmul.mubr.f32.vlgmr.msra.gmra.mrb[0].mxu1 %v867_v0 }
 0x246   : > { %6675 = vmatpush1.bf16.msra.mxu0 %v8842_v18  ;;  %1030 = vmatprep.mubr.f32.mxu0 %v10501_v16  ;;  %v888_v18 = vmul.f32 0.0078125, %v883_v44  ;;  %7513 = vrsqrt.f32 %v891_v5  ;;  %v1226_v44 = vld [vmem:[%s8793_s5 + $0x28] sm:$0xff] }
 0x247   : > { %6677 = vmatprep.subr.bf16.mxu0 %v8876_v53  ;;  %6237 = vmatprep.mubr.f32.mxu1 %v868_v8 }
 0x248   : > { %v892_v53 = vadd.f32 1.1920929e-07, %v888_v18 }
 0x249   : > { %1031 = vmatmul.mubr.f32.gmra.mrb[4].mxu0 %v868_v8  ;;  %6238 = vmatmul.mubr.f32.gmra.mrb[2].mxu1 %v869_v1 }
 0x24a   : > { %6679 = vmatpush1.bf16.msra.mxu0 %v8858_v31  ;;  %1036 = vmatprep.mubr.f32.mxu0 %v10501_v16  ;;  %7515 = vrsqrt.f32 %v892_v53  ;;  %v893_v31 = vadd.f32 1.1920929e-07, %v889_v11 }
 0x24b   : > { %6681 = vmatprep.subr.bf16.mxu0 %v8883_v62  ;;  %v7512_v62 = vpop.eup %7511 }
 0x24c   : > { %7517 = vrsqrt.f32 %v893_v31 }
 0x24d   : > { %1037 = vmatmul.mubr.f32.gmra.mrb[6].mxu0 %v869_v1 }
 0x24e   : > { %6683 = vmatpush1.bf16.msra.mxu0 %v8867_v39  ;;  %1192 = vmatprep.mubr.f32.mxu0 %v10501_v16  ;;  %v898_v39 = vmul.f32 %v7512_v62, %v8831_v6  ;;  %v1230_v62 = vld [vmem:[%s8793_s5 + $0x48] sm:$0xff] }
 0x24f   : > { %6685 = vmatprep.subr.bf16.mxu0 %v8891_v17 }
 0x250   : > { %v7514_v12 = vpop.eup %7513  ;;  %v902_v15 = vmul.f32 %v8912_v52, %v898_v39 }
 0x252   : > { %6687 = vmatpush1.bf16.msra.mxu0 %v8873_v48  ;;  %v899_v48 = vmul.f32 %v7514_v12, %v8838_v13 }
 0x253   : > { %6689 = vmatprep.subr.bf16.mxu0 %v8897_v25 }
 0x254   : > { %v7516_v17 = vpop.eup %7515 }
 0x255   : > { %v900_v19 = vmul.f32 %v7516_v17, %v8850_v27 }
 0x256   : > { %6691 = vmatpush1.bf16.msra.mxu0 %v8880_v57  ;;  %v903_v57 = vmul.f32 %v8912_v52, %v899_v48  ;;  %v7518_v20 = vpop.eup %7517 }
 0x257   : > { %6693 = vmatprep.subr.bf16.mxu0 %v8903_v33  ;;  %v904_v6 = vmul.f32 %v8912_v52, %v900_v19  ;;  %v9063_v19 = vld [vmem:[%s8793_s5 + $0x10] sm:$0xff] }
 0x25a   : > { %6695 = vmatpush1.bf16.msra.mxu0 %v8887_v7  ;;  %v901_v7 = vmul.f32 %v7518_v20, %v8853_v28 }
 0x25b   : > { %6697 = vmatprep.subr.bf16.mxu0 %v8908_v36 }
 0x25c   : > { %v905_v13 = vmul.f32 %v8912_v52, %v901_v7  ;;  %v9066_v7 = vld [vmem:[%s8793_s5 + $0x18] sm:$0xff] }
 0x25e   : > { %6699 = vmatpush1.bf16.msra.mxu0 %v8895_v22 }
 0x261   : > { %1193 = vmatmul.mubr.f32.vlgmr.msra.gmra.mrb[8].mxu0 %v902_v15  ;;  %v9057_v15 = vld [vmem:[%s8793_s5 + $0x30] sm:$0xff] }
 0x262   : > { %1198 = vmatprep.mubr.f32.mxu0 %v10501_v16 }
 0x265   : > { %1199 = vmatmul.mubr.f32.gmra.mrb[10].mxu0 %v903_v57  ;;  %v9060_v57 = vld [vmem:[%s8793_s5 + $0x38] sm:$0xff] }
 0x266   : > { %1204 = vmatprep.mubr.f32.mxu0 %v10501_v16 }
 0x269   : > { %1205 = vmatmul.mubr.f32.gmra.mrb[12].mxu0 %v904_v6 }
 0x26a   : > { %1210 = vmatprep.mubr.f32.mxu0 %v10501_v16 }
 0x26d   : > { %1211 = vmatmul.mubr.f32.gmra.mrb[14].mxu0 %v905_v13 }
 0x314   : > { %v8952_v21 = vpop.f32.mrb[0].mxu0 }
 0x315   : > { %1237 = vrot.lane.b32.xlu0 %v8952_v21, %s8174_s21  ;;  %v8956_v27 = vpop.f32.mrb[1].mxu0  ;;  %v1233_v60 = vmul.f32 %v1221_v55, %v8952_v21 }
 0x316   : > { %1289 = vrot.lane.b32.xlu1 %v8956_v27, %s8175_s17  ;;  %v1269_v18 = vmul.f32 %v1221_v55, %v8956_v27 }
 0x318   : > { %v8960_v28 = vpop.f32.mrb[2].mxu0  ;;  %v6236_v22 = vpop.f32.mrb[0].mxu1 }
 0x319   : > { %1253 = vrot.lane.b32.xlu0 %v8952_v21, %s8175_s17  ;;  %1218 = vst [vmem:[%s8965_s0 + $0x8] sm:$0xff] %v6236_v22  ;;  %v1109_v23 = vpop.f32.mrb[1].mxu1  ;;  %v8968_v24 = vpop.f32.mrb[3].mxu0  ;;  %v9070_v21 = vld [vmem:[%s8793_s5 + $0x50] sm:$0xff] }
 0x31a   : > { %1239 = vrot.lane.b32.xlu1 %v8960_v28, %s8174_s21  ;;  %1217 = vst [vmem:[%s8965_s0] sm:$0xff] %v1109_v23  ;;  %v6732_v25 = vpack.c.bf16 %v6236_v22, %v1109_v23  ;;  %v8973_v26 = vpack.i.bf16 %v6236_v22, %v1109_v23  ;;  %v1270_v11 = vmul.f32 %v1222_v14, %v8968_v24 }
 0x31c   : > { %v8975_v29 = vpop.f32.mrb[4].mxu0  ;;  %6733 = vmatprep.subr.bf16.mxu0 %v6732_v25  ;;  %v6239_v32 = vpop.f32.mrb[2].mxu1 }
 0x31d   : > { %1273 = vrot.lane.b32.xlu0 %v8956_v27, %s8174_s21  ;;  %v8979_v33 = vpop.f32.mrb[5].mxu0  ;;  %6735 = vmatpush3.bf16.msra.mxu0 %v6732_v25  ;;  %1220 = vst [vmem:[%s8965_s0 + $0x18] sm:$0xff] %v6239_v32  ;;  %v1119_v34 = vpop.f32.mrb[3].mxu1 }
 0x31e   : > { %1255 = vrot.lane.b32.xlu1 %v8960_v28, %s8175_s17  ;;  %1219 = vst [vmem:[%s8965_s0 + $0x10] sm:$0xff] %v1119_v34  ;;  %v6736_v35 = vpack.c.bf16 %v6239_v32, %v1119_v34  ;;  %v8985_v36 = vpack.i.bf16 %v6239_v32, %v1119_v34  ;;  %v9082_v34 = vld [vmem:[%s8793_s5 + $0x58] sm:$0xff]  ;;  %s5922_s5 = sshll.u32 %s10614_s28, 2  ;;  %s8179_s28 = smov [#allocation18]  }
 0x320   : > { %v8987_v37 = vpop.f32.mrb[6].mxu0  ;;  %6737 = vmatprep.subr.bf16.mxu0 %v6736_v35 }
 0x321   : > { %1277 = vrot.lane.b32.xlu0 %v8979_v33, %s8174_s21  ;;  %v8991_v38 = vpop.f32.mrb[7].mxu0  ;;  %6739 = vmatpush3.bf16.msra.mxu0 %v6736_v35  ;;  %v1271_v35 = vmul.f32 %v9063_v19, %v8979_v33 }
 0x322   : > { %1275 = vrot.lane.b32.xlu1 %v8968_v24, %s8174_s21 }
 0x325   : > { %1293 = vrot.lane.b32.xlu0 %v8979_v33, %s8175_s17 }
 0x326   : > { %1291 = vrot.lane.b32.xlu1 %v8968_v24, %s8175_s17 }
 0x32a   : > { %1279 = vrot.lane.b32.xlu1 %v8991_v38, %s8174_s21 }
 0x32e   : > { %1295 = vrot.lane.b32.xlu1 %v8991_v38, %s8175_s17 }
 0x334   : > { %v9003_v40 = vpop.f32.mrb[8].mxu0 }
 0x335   : > { %1337 = vrot.lane.b32.xlu1 %v9003_v40, %s8175_s17  ;;  %1321 = vrot.lane.b32.xlu0 %v9003_v40, %s8174_s21  ;;  %v1196_v41 = vpop.f32.mrb[9].mxu0 }
 0x338   : > { %v9009_v42 = vpop.f32.mrb[10].mxu0 }
 0x339   : > { %1339 = vrot.lane.b32.xlu0 %v9009_v42, %s8175_s17  ;;  %1323 = vrot.lane.b32.xlu1 %v9009_v42, %s8174_s21  ;;  %v1202_v43 = vpop.f32.mrb[11].mxu0 }
 0x33a   : > { %v9015_v45 = vpack.i.bf16 %v1202_v43, %v1196_v41  ;;  %v9017_v30 = vpack.c.bf16 %v1202_v43, %v1196_v41  ;;  %v1272_v41 = vmul.f32 %v9066_v7, %v8991_v38 }
 0x33c   : > { %v9019_v46 = vpop.f32.mrb[12].mxu0 }
 0x33d   : > { %1325 = vrot.lane.b32.xlu0 %v9019_v46, %s8174_s21  ;;  %v1208_v47 = vpop.f32.mrb[13].mxu0 }
 0x340   : > { %v9023_v49 = vpop.f32.mrb[14].mxu0 }
 0x341   : > { %1341 = vrot.lane.b32.xlu0 %v9019_v46, %s8175_s17  ;;  %1327 = vrot.lane.b32.xlu1 %v9023_v49, %s8174_s21  ;;  %v1214_v50 = vpop.f32.mrb[15].mxu0 }
 0x342   : > { %v9029_v51 = vpack.i.bf16 %v1214_v50, %v1208_v47  ;;  %v9031_v52 = vpack.c.bf16 %v1214_v50, %v1208_v47 }
 0x345   : > { %1241 = vrot.lane.b32.xlu0 %v8975_v29, %s8174_s21  ;;  %1343 = vrot.lane.b32.xlu1 %v9023_v49, %s8175_s17 }
 0x349   : > { %1257 = vrot.lane.b32.xlu0 %v8975_v29, %s8175_s17  ;;  %1243 = vrot.lane.b32.xlu1 %v8987_v37, %s8174_s21  ;;  %s5457_s21 = scalar_lea.sflag [#allocation19], %s8761_s2 }
 0x34d   : > { %1259 = vrot.lane.b32.xlu1 %v8987_v37, %s8175_s17  ;;  %s10666_s17 = sld [smem:[#allocation89_spill]] }
 0x387   : > { %v1238_v56 = vpop.permute.xlu0 %1237 }
 0x388   : > { %v1245_v58 = vmul.f32 %v1238_v56, %v1225_v54  ;;  %v1290_v59 = vpop.permute.xlu1 %1289 }
 0x389   : > { %v1297_v12 = vmul.f32 %v1290_v59, %v1229_v61 }
 0x38a   : > { %v1249_v0 = vadd.f32 %v1245_v58, %v1233_v60  ;;  %v1309_v58 = vld [vmem:[%s8800_s15 + $0x20] sm:$0xff] }
 0x38b   : > { %v1254_v63 = vpop.permute.xlu0 %1253  ;;  %v1305_v60 = vld [vmem:[%s8800_s15] sm:$0xff] }
 0x38c   : > { %v1261_v3 = vmul.f32 %v1254_v63, %v1229_v61  ;;  %v1240_v4 = vpop.permute.xlu1 %1239 }
 0x38d   : > { %v1246_v61 = vmul.f32 %v1240_v4, %v1226_v44  ;;  %v1314_v4 = vld [vmem:[%s8800_s15 + $0x48] sm:$0xff] }
 0x38e   : > { %v9047_v8 = vadd.f32 %v1261_v3, %v1249_v0 }
 0x38f   : > { %v1274_v9 = vpop.permute.xlu0 %1273 }
 0x390   : > { %6248 = vmatprep.mubr.msk.f32.mxu1 %vm1388_vm0, %v9047_v8  ;;  %v1256_v1 = vpop.permute.xlu1 %1255  ;;  %v1281_v2 = vmul.f32 %v1274_v9, %v1225_v54  ;;  %v1234_v9 = vmul.f32 %v1222_v14, %v8960_v28 }
 0x392   : > { %v1285_v31 = vadd.f32 %v1281_v2, %v1269_v18  ;;  %v1306_v2 = vld [vmem:[%s8800_s15 + $0x8] sm:$0xff] }
 0x393   : > { %v1278_v53 = vpop.permute.xlu0 %1277  ;;  %v1310_v18 = vld [vmem:[%s8800_s15 + $0x28] sm:$0xff] }
 0x394   : > { %v1276_v5 = vpop.permute.xlu1 %1275  ;;  %v1301_v20 = vadd.f32 %v1297_v12, %v1285_v31  ;;  %v1283_v13 = vmul.f32 %v1278_v53, %v9057_v15  ;;  %v1250_v53 = vadd.f32 %v1246_v61, %v1234_v9 }
 0x395   : > { %v1282_v10 = vmul.f32 %v1276_v5, %v1226_v44  ;;  %v1262_v5 = vmul.f32 %v1256_v1, %v1230_v62 }
 0x396   : > { %v1287_v50 = vadd.f32 %v1283_v13, %v1271_v35  ;;  %v1312_v13 = vld [vmem:[%s8800_s15 + $0x38] sm:$0xff] }
 0x397   : > { %v1286_v48 = vadd.f32 %v1282_v10, %v1270_v11  ;;  %v1294_v27 = vpop.permute.xlu0 %1293  ;;  %v1317_v10 = vmul.f32 %v1305_v60, %v9003_v40  ;;  %v1313_v11 = vld [vmem:[%s8800_s15 + $0x40] sm:$0xff]  ;;  %v9109_v28 = vadd.f32 %v1262_v5, %v1250_v53 }
 0x398   : > { %v1292_v39 = vpop.permute.xlu1 %1291  ;;  %v1299_v43 = vmul.f32 %v1294_v27, %v9070_v21 }
 0x399   : > { %v1298_v17 = vmul.f32 %v1292_v39, %v1230_v62  ;;  %v1318_v39 = vmul.f32 %v1306_v2, %v9009_v42 }
 0x39a   : > { %v1303_v56 = vadd.f32 %v1299_v43, %v1287_v50  ;;  %v1316_v50 = vld [vmem:[%s8800_s15 + $0x58] sm:$0xff] }
 0x39b   : > { %v1302_v6 = vadd.f32 %v1298_v17, %v1286_v48 }
 0x39c   : > { %v1280_v22 = vpop.permute.xlu1 %1279 }
 0x39d   : > { %v1284_v24 = vmul.f32 %v1280_v22, %v9060_v57  ;;  %v6700_v25 = vpack.c.bf16 %v1302_v6, %v1301_v20  ;;  %v9079_v32 = vpack.i.bf16 %v1302_v6, %v1301_v20  ;;  %v1311_v6 = vld [vmem:[%s8800_s15 + $0x30] sm:$0xff] }
 0x39e   : > { %v1307_v22 = vld [vmem:[%s8800_s15 + $0x10] sm:$0xff] }
 0x39f   : > { %6702 = vmatprep.subr.msk.bf16.mxu1 %vm9074_vm1, %v6700_v25  ;;  %v1288_v54 = vadd.f32 %v1284_v24, %v1272_v41  ;;  %v1308_v24 = vld [vmem:[%s8800_s15 + $0x18] sm:$0xff] }
 0x3a0   : > { %6705 = vmatpush3.bf16.xpose.msk.msra.mxu1 %vm9074_vm1, %v6700_v25  ;;  %v1296_v47 = vpop.permute.xlu1 %1295  ;;  %v1315_v25 = vld [vmem:[%s8800_s15 + $0x50] sm:$0xff]  ;;  %s10670_s15 = sld [smem:[#allocation93_spill]] }
 0x3a1   : > { %v1300_v55 = vmul.f32 %v1296_v47, %v9082_v34 }
 0x3a3   : > { %v1304_v33 = vadd.f32 %v1300_v55, %v1288_v54  ;;  %v1319_v54 = vmul.f32 %v1307_v22, %v9019_v46  ;;  %v1320_v55 = vmul.f32 %v1308_v24, %v9023_v49 }
 0x3a5   : > { %v6706_v38 = vpack.c.bf16 %v1304_v33, %v1303_v56  ;;  %v9095_v59 = vpack.i.bf16 %v1304_v33, %v1303_v56 }
 0x3a7   : > { %v1338_v63 = vpop.permute.xlu1 %1337  ;;  %v1322_v0 = vpop.permute.xlu0 %1321  ;;  %6708 = vmatprep.subr.msk.bf16.mxu1 %vm9074_vm1, %v6706_v38 }
 0x3a8   : > { %v1329_v3 = vmul.f32 %v1322_v0, %v1309_v58  ;;  %6711 = vmatpush3.bf16.xpose.msk.msra.mxu1 %vm9074_vm1, %v6706_v38  ;;  %v1345_v1 = vmul.f32 %v1338_v63, %v1313_v11  ;;  %v1235_v0 = vmul.f32 %v9063_v19, %v8975_v29  ;;  %v1236_v11 = vmul.f32 %v9066_v7, %v8987_v37 }
 0x3a9   : > { %v1353_v37 = vlaneseq }
 0x3aa   : > { %v1333_v12 = vadd.f32 %v1329_v3, %v1317_v10 }
 0x3ab   : > { %v1340_v44 = vpop.permute.xlu0 %1339  ;;  %v1324_v31 = vpop.permute.xlu1 %1323  ;;  %v9174_v7 = vshrl.u32 %v1353_v37, 7 }
 0x3ac   : > { %v1330_v48 = vmul.f32 %v1324_v31, %v1310_v18  ;;  %v1346_v14 = vmul.f32 %v1340_v44, %v1314_v4  ;;  %v1349_v17 = vadd.f32 %v1345_v1, %v1333_v12  ;;  %v9179_v44 = vand.u32 127, %v1353_v37 }
 0x3ae   : > { %v1334_v62 = vadd.f32 %v1330_v48, %v1318_v39  ;;  %vm1360_vm3 = vcmp.ge.s32.totalorder %v9174_v7, %v9179_v44  ;;  %vm1376_vm6 = vcmp.le.s32.totalorder %v9174_v7, %v9179_v44 }
 0x3af   : > { %v1326_v40 = vpop.permute.xlu0 %1325  ;;  %6249 = vmatmul.mubr.msk.f32.vlgmr.msra.gmra.mrb[4].mxu1 %vm1388_vm0, %v9109_v28 }
 0x3b0   : > { %v1350_v20 = vadd.f32 %v1346_v14, %v1334_v62  ;;  %v1331_v43 = vmul.f32 %v1326_v40, %v1311_v6  ;;  %v9201_v62 = vadd.s32 24, %v9174_v7  ;;  %v9204_v40 = vadd.s32 16, %v9174_v7 }
 0x3b2   : > { %v6712_v27 = vpack.c.bf16 %v1350_v20, %v1349_v17  ;;  %v9115_v42 = vpack.i.bf16 %v1350_v20, %v1349_v17  ;;  %v1335_v38 = vadd.f32 %v1331_v43, %v1319_v54  ;;  %v1382_v17 = vstv %s1381_s8  ;;  %s10668_s8 = sld [smem:[#allocation43_spill]] }
 0x3b3   : > { %v1342_v35 = vpop.permute.xlu0 %1341  ;;  %v1328_v41 = vpop.permute.xlu1 %1327  ;;  %vm1363_vm4 = vcmp.ge.s32.totalorder %v9201_v62, %v9179_v44  ;;  %vm1362_vm5 = vcmp.ge.s32.totalorder %v9204_v40, %v9179_v44  ;;  %vm9212_vm7 = vcmp.eq.s32.totalorder %v1382_v17, 1  ;;  %vm1379_vm10 = vcmp.le.s32.totalorder %v9201_v62, %v9179_v44 }
 0x3b4   : > { %v1332_v47 = vmul.f32 %v1328_v41, %v1312_v13  ;;  %6714 = vmatprep.subr.msk.bf16.mxu1 %vm9074_vm1, %v6712_v27  ;;  %v1347_v56 = vmul.f32 %v1342_v35, %v1315_v25  ;;  %vm9232_vm9 = vmand %vm1376_vm6, %vm9212_vm7  ;;  %vm1378_vm13 = vcmp.le.s32.totalorder %v9204_v40, %v9179_v44  ;;  %vm2036_vm6 = vcmask 1043456  }
 0x3b5   : > { %6717 = vmatpush3.bf16.xpose.msk.msra.mxu1 %vm9074_vm1, %v6712_v27  ;;  %vm9252_vm12 = vmand %vm1379_vm10, %vm9212_vm7 }
 0x3b6   : > { %v1336_v60 = vadd.f32 %v1332_v47, %v1320_v55  ;;  %v1351_v3 = vadd.f32 %v1347_v56, %v1335_v38  ;;  %vm9270_vm14 = vmand %vm1378_vm13, %vm9212_vm7 }
 0x3b7   : > { %v1242_v33 = vpop.permute.xlu0 %1241  ;;  %v1344_v58 = vpop.permute.xlu1 %1343 }
 0x3b8   : > { %v1247_v61 = vmul.f32 %v1242_v33, %v9057_v15  ;;  %v1348_v63 = vmul.f32 %v1344_v58, %v1316_v50  ;;  %v1603_v15 = vld [vmem:[%s10612_s25] sm:$0xf]  ;;  %s10667_s25 = sld [smem:[#allocation90_spill]]  ;;  %s7090_s27 = smul.u32 12, %s10668_s8 }
 0x3ba   : > { %v1352_v9 = vadd.f32 %v1348_v63, %v1336_v60  ;;  %v1251_v2 = vadd.f32 %v1247_v61, %v1235_v0 }
 0x3bb   : > { %v1258_v5 = vpop.permute.xlu0 %1257  ;;  %v1244_v18 = vpop.permute.xlu1 %1243 }
 0x3bc   : > { %v1263_v46 = vmul.f32 %v1258_v5, %v9070_v21  ;;  %v1248_v49 = vmul.f32 %v1244_v18, %v9060_v57  ;;  %v6718_v10 = vpack.c.bf16 %v1352_v9, %v1351_v3  ;;  %v9132_v53 = vpack.i.bf16 %v1352_v9, %v1351_v3 }
 0x3be   : > { %v9139_v29 = vadd.f32 %v1263_v46, %v1251_v2  ;;  %6720 = vmatprep.subr.msk.bf16.mxu1 %vm9074_vm1, %v6718_v10  ;;  %v1252_v57 = vadd.f32 %v1248_v49, %v1236_v11 }
 0x3bf   : > { %v1260_v19 = vpop.permute.xlu1 %1259  ;;  %6723 = vmatpush3.bf16.xpose.msk.msra.mxu1 %vm9074_vm1, %v6718_v10 }
 0x3c0   : > { %v1264_v21 = vmul.f32 %v1260_v19, %v9082_v34  ;;  %6251 = vmatprep.mubr.msk.f32.mxu1 %vm1388_vm0, %v9139_v29  ;;  %6268 = vmatprep.subr.msk.mxu1 %vm1388_vm0, %v1603_v15  ;;  %v9177_v34 = vadd.s32 8, %v9174_v7 }
 0x3c2   : > { %v9149_v4 = vadd.f32 %v1264_v21, %v1252_v57  ;;  %vm1361_vm2 = vcmp.ge.s32.totalorder %v9177_v34, %v9179_v44  ;;  %vm1377_vm8 = vcmp.le.s32.totalorder %v9177_v34, %v9179_v44 }
 0x3c3   : > { %vm9240_vm11 = vmand %vm1377_vm8, %vm9212_vm7 }
 0x3c4   : > { %6252 = vmatmul.mubr.msk.f32.gmra.mrb[6].mxu1 %vm1388_vm0, %v9149_v4 }
 0x3c5   : > { %6262 = vmatprep.mubr.msk.f32.mxu1 %vm1388_vm0, %v9047_v8 }
 0x3c8   : > { %6263 = vmatmul.mubr.msk.f32.vlgmr.msra.gmra.mrb[8].mxu1 %vm1388_vm0, %v9109_v28 }
 0x3c9   : > { %6269 = vmatpush3.xpose.msk.msra.mxu1 %vm1388_vm0, %v1603_v15  ;;  %6265 = vmatprep.mubr.msk.f32.mxu1 %vm1388_vm0, %v9139_v29 }
 0x3ca   : > { %6725 = vmatprep.subr.bf16.mxu1 %v9017_v30 }
 0x3cc   : > { %6266 = vmatmul.mubr.msk.f32.gmra.mrb[10].mxu1 %vm1388_vm0, %v9149_v4 }
 0x3cd   : > { %6270 = vmatprep.mubr.msk.f32.mxu1 %vm1388_vm0, %v9047_v8 }
 0x3d0   : > { %6271 = vmatmul.mubr.msk.f32.vlgmr.msra.gmra.mrb[12].mxu1 %vm1388_vm0, %v9109_v28 }
 0x3d1   : > { %6727 = vmatpush3.bf16.msra.mxu1 %v9017_v30  ;;  %6273 = vmatprep.mubr.msk.f32.mxu1 %vm1388_vm0, %v9139_v29 }
 0x3d2   : > { %6729 = vmatprep.subr.bf16.mxu1 %v9031_v52 }
 0x3d4   : > { %6274 = vmatmul.mubr.msk.f32.gmra.mrb[14].mxu1 %vm1388_vm0, %v9149_v4 }
 0x3d5   : > { %6731 = vmatpush3.bf16.msra.mxu1 %v9031_v52 }
 0x482   : > { %v6250_v30 = vpop.f32.mrb[4].mxu1 }
 0x483   : > { %v1499_v31 = vmul.f32 0.17677669, %v6250_v30  ;;  %v1479_v39 = vpop.f32.mrb[5].mxu1 }
 0x484   : > { %v1498_v12 = vmul.f32 0.17677669, %v1479_v39 }
 0x485   : > { %v9188_v52 = vsel %vm1361_vm2, %v1499_v31, -1e+30 }
 0x486   : > { %v1707_v48 = vsel %vm1388_vm0, %v9188_v52, -inf  ;;  %v9195_v1 = vsel %vm1360_vm3, %v1498_v12, -1e+30 }
 0x487   : > { %1708 = vmax.xlane.f32.xlu0 %v1707_v48  ;;  %v1704_v14 = vsel %vm1388_vm0, %v9195_v1, -inf }
 0x48b   : > { %1705 = vmax.xlane.f32.xlu0 %v1704_v14  ;;  %v9316_v14 = vld [vmem:[#allocation11] sm:$0xf] }
 0x48c   : > { %6304 = vmatprep.subr.msk.mxu0 %vm2036_vm6, %v9316_v14 }
 0x497   : > { %v6253_v20 = vpop.f32.mrb[6].mxu1 }
 0x498   : > { %v1501_v6 = vmul.f32 0.17677669, %v6253_v20  ;;  %v1489_v13 = vpop.f32.mrb[7].mxu1 }
 0x499   : > { %v1500_v27 = vmul.f32 0.17677669, %v1489_v13 }
 0x49a   : > { %v9219_v24 = vsel %vm1363_vm4, %v1501_v6, -1e+30 }
 0x49b   : > { %v6264_v25 = vpop.f32.mrb[8].mxu1  ;;  %v1713_v35 = vsel %vm1388_vm0, %v9219_v24, -inf  ;;  %v9228_v47 = vsel %vm1362_vm5, %v1500_v27, -1e+30 }
 0x49c   : > { %v1600_v41 = vmul.f32 0.17677669, %v6264_v25  ;;  %1714 = vmax.xlane.f32.xlu0 %v1713_v35  ;;  %v1580_v43 = vpop.f32.mrb[9].mxu1  ;;  %v1710_v33 = vsel %vm1388_vm0, %v9228_v47, -inf }
 0x49d   : > { %v1599_v54 = vmul.f32 0.17677669, %v1580_v43 }
 0x49e   : > { %v9262_v0 = vsel %vm9240_vm11, %v1600_v41, -1e+30 }
 0x49f   : > { %v6267_v56 = vpop.f32.mrb[10].mxu1  ;;  %v9248_v58 = vsel %vm9232_vm9, %v1599_v54, -1e+30  ;;  %v1719_v18 = vsel %vm1388_vm0, %v9262_v0, -inf }
 0x4a0   : > { %v1602_v60 = vmul.f32 0.17677669, %v6267_v56  ;;  %1711 = vmax.xlane.f32.xlu0 %v1710_v33  ;;  %v1590_v61 = vpop.f32.mrb[11].mxu1  ;;  %v1716_v63 = vsel %vm1388_vm0, %v9248_v58, -inf }
 0x4a1   : > { %v1601_v3 = vmul.f32 0.17677669, %v1590_v61  ;;  %1717 = vmax.xlane.f32.xlu1 %v1716_v63 }
 0x4a2   : > { %v9266_v9 = vsel %vm9252_vm12, %v1602_v60, -1e+30 }
 0x4a3   : > { %v6272_v5 = vpop.f32.mrb[12].mxu1  ;;  %v1725_v46 = vsel %vm1388_vm0, %v9266_v9, -inf  ;;  %v9282_v15 = vsel %vm9270_vm14, %v1601_v3, -1e+30 }
 0x4a4   : > { %1720 = vmax.xlane.f32.xlu0 %v1719_v18  ;;  %v1673_v49 = vpop.f32.mrb[13].mxu1  ;;  %v9286_v57 = vmul.f32 0.17677669, %v6272_v5  ;;  %v1722_v37 = vsel %vm1388_vm0, %v9282_v15, -inf }
 0x4a5   : > { %v9278_v10 = vmul.f32 0.17677669, %v1673_v49  ;;  %1726 = vmax.xlane.f32.xlu1 %v1725_v46 }
 0x4a6   : > { %v1736_v12 = vsel %vm1732_vm15, %v9286_v57, -inf }
 0x4a7   : > { %v6275_v11 = vpop.f32.mrb[14].mxu1  ;;  %v1733_v19 = vsel %vm1732_vm15, %v9278_v10, -inf }
 0x4a8   : > { %1734 = vmax.xlane.f32.xlu0 %v1733_v19  ;;  %v1683_v21 = vpop.f32.mrb[15].mxu1  ;;  %v9294_v39 = vmul.f32 0.17677669, %v6275_v11 }
 0x4a9   : > { %v9290_v30 = vmul.f32 0.17677669, %v1683_v21  ;;  %1723 = vmax.xlane.f32.xlu1 %v1722_v37 }
 0x4aa   : > { %v1742_v48 = vsel %vm1732_vm15, %v9294_v39, -inf }
 0x4ab   : > { %v1739_v31 = vsel %vm1732_vm15, %v9290_v30, -inf }
 0x4ac   : > { %1740 = vmax.xlane.f32.xlu0 %v1739_v31 }
 0x4ad   : > { %1737 = vmax.xlane.f32.xlu1 %v1736_v12 }
 0x4b1   : > { %1743 = vmax.xlane.f32.xlu1 %v1742_v48 }
 0x4c2   : > { %7354 = vrot.lane.b32.xlu0 %v9079_v32, %s8176_s18  ;;  %7359 = vrot.lane.b32.xlu1 %v9095_v59, %s8176_s18 }
 0x4c6   : > { %2139 = vrot.lane.b32.xlu0 %v9109_v28, %s8176_s18  ;;  %7364 = vrot.lane.b32.xlu1 %v9115_v42, %s8176_s18 }
 0x4ca   : > { %2141 = vrot.lane.b32.xlu0 %v9139_v29, %s8176_s18  ;;  %2137 = vrot.lane.b32.xlu1 %v9047_v8, %s8176_s18 }
 0x4ce   : > { %7374 = vrot.lane.b32.xlu0 %v9079_v32, %s8177_s19  ;;  %7369 = vrot.lane.b32.xlu1 %v9132_v53, %s8176_s18 }
 0x4d2   : > { %2143 = vrot.lane.b32.xlu1 %v9149_v4, %s8176_s18 }
 0x4d6   : > { %7379 = vrot.lane.b32.xlu1 %v9015_v45, %s8176_s18 }
 0x4da   : > { %7384 = vrot.lane.b32.xlu1 %v9029_v51, %s8176_s18 }
 0x4de   : > { %7389 = vrot.lane.b32.xlu1 %v9095_v59, %s8177_s19 }
 0x514   : > { %v1709_v17 = vpop.xlane.xlu0 %1708 }
 0x518   : > { %v1706_v20 = vpop.xlane.xlu0 %1705 }
 0x529   : > { %v1715_v6 = vpop.xlane.xlu0 %1714 }
 0x52d   : > { %v1712_v13 = vpop.xlane.xlu0 %1711 }
 0x52e   : > { %v1718_v27 = vpop.xlane.xlu1 %1717 }
 0x52f   : > { %v1728_v35 = vmax.f32 %v1706_v20, %v1718_v27 }
 0x531   : > { %v1721_v22 = vpop.xlane.xlu0 %1720 }
 0x532   : > { %v1727_v25 = vpop.xlane.xlu1 %1726  ;;  %v1729_v61 = vmax.f32 %v1709_v17, %v1721_v22 }
 0x533   : > { %v1731_v31 = vmax.f32 %v1715_v6, %v1727_v25 }
 0x535   : > { %v1735_v41 = vpop.xlane.xlu0 %1734 }
 0x536   : > { %v1745_v43 = vmax.f32 %v1728_v35, %v1735_v41  ;;  %v1724_v54 = vpop.xlane.xlu1 %1723 }
 0x537   : > { %v1730_v56 = vmax.f32 %v1712_v13, %v1724_v54 }
 0x538   : > { %v1749_v33 = vsub.f32 %v9195_v1, %v1745_v43  ;;  %v1761_v60 = vsub.f32 %v9248_v58, %v1745_v43  ;;  %v1773_v48 = vsub.f32 %v9278_v10, %v1745_v43 }
 0x539   : > { %v1741_v63 = vpop.xlane.xlu0 %1740 }
 0x53a   : > { %v1753_v3 = vmul.f32 1.442695, %v1749_v33  ;;  %v1765_v5 = vmul.f32 1.442695, %v1761_v60  ;;  %v1747_v18 = vmax.f32 %v1730_v56, %v1741_v63  ;;  %v1738_v46 = vpop.xlane.xlu1 %1737 }
 0x53b   : > { %v1746_v49 = vmax.f32 %v1729_v61, %v1738_v46 }
 0x53c   : > { %7519 = vpow2.f32 %v1753_v3  ;;  %v1751_v11 = vsub.f32 %v9228_v47, %v1747_v18  ;;  %v1763_v19 = vsub.f32 %v9282_v15, %v1747_v18  ;;  %v1775_v25 = vsub.f32 %v9290_v30, %v1747_v18 }
 0x53d   : > { %7521 = vpow2.f32 %v1765_v5  ;;  %v1750_v21 = vsub.f32 %v9188_v52, %v1746_v49  ;;  %v1762_v37 = vsub.f32 %v9262_v0, %v1746_v49  ;;  %v7355_v1 = vpop.permute.xlu0 %7354  ;;  %v1777_v0 = vmul.f32 1.442695, %v1773_v48 }
 0x53e   : > { %v1757_v58 = vmul.f32 1.442695, %v1751_v11  ;;  %v1744_v12 = vpop.xlane.xlu1 %1743  ;;  %v7357_v20 = vunpack.i.h.bf16 %v7355_v1  ;;  %v7356_v27 = vunpack.i.l.bf16 %v7355_v1  ;;  %v1769_v35 = vmul.f32 1.442695, %v1763_v19  ;;  %v5829_v11 = vld [vmem:[%s10613_s7 + $0x4] sm:$0xf] }
 0x53f   : > { %v1755_v17 = vmul.f32 1.442695, %v1750_v21  ;;  %v1767_v13 = vmul.f32 1.442695, %v1762_v37  ;;  %v1748_v22 = vmax.f32 %v1731_v31, %v1744_v12  ;;  %v1774_v6 = vsub.f32 %v9286_v57, %v1746_v49 }
 0x540   : > { %7523 = vpow2.f32 %v1757_v58  ;;  %v6740_v47 = vpack.c.bf16 %v7357_v20, %v7356_v27  ;;  %v1781_v57 = vmul.f32 1.442695, %v1775_v25 }
 0x541   : > { %v1752_v15 = vsub.f32 %v9219_v24, %v1748_v22  ;;  %v1764_v52 = vsub.f32 %v9266_v9, %v1748_v22  ;;  %7525 = vpow2.f32 %v1755_v17  ;;  %v1779_v9 = vmul.f32 1.442695, %v1774_v6 }
 0x542   : > { %v7360_v41 = vpop.permute.xlu1 %7359  ;;  %7527 = vpow2.f32 %v1767_v13  ;;  %6742 = vmatprep.subr.msk.bf16.mxu1 %vm9074_vm1, %v6740_v47  ;;  %v1776_v33 = vsub.f32 %v9294_v39, %v1748_v22 }
 0x543   : > { %v1759_v10 = vmul.f32 1.442695, %v1752_v15  ;;  %v1771_v43 = vmul.f32 1.442695, %v1764_v52  ;;  %7529 = vpow2.f32 %v1769_v35  ;;  %v7362_v61 = vunpack.i.h.bf16 %v7360_v41 }
 0x544   : > { %v1783_v60 = vmul.f32 1.442695, %v1776_v33  ;;  %v7361_v63 = vunpack.i.l.bf16 %v7360_v41 }
 0x545   : > { %7531 = vpow2.f32 %v1759_v10 }
 0x546   : > { %v9341_v54 = vpop.eup %7519  ;;  %v7365_v24 = vpop.permute.xlu1 %7364  ;;  %7533 = vpow2.f32 %v1771_v43  ;;  %v6746_v49 = vpack.c.bf16 %v7362_v61, %v7361_v63 }
 0x547   : > { %10625 = vst [vmem:[#allocation61_spill] sm:$0xff] %v9341_v54  ;;  %v9343_v56 = vpop.eup %7521  ;;  %6298 = vmatprep.mubr.msk.f32.mxu0 %vm1388_vm0, %v9341_v54  ;;  %7535 = vpow2.f32 %v1777_v0  ;;  %v7367_v31 = vunpack.i.h.bf16 %v7365_v24  ;;  %v7366_v58 = vunpack.i.l.bf16 %v7365_v24 }
 0x548   : > { %10626 = vst [vmem:[#allocation62_spill] sm:$0xff] %v9343_v56  ;;  %6284 = vmatprep.mubr.msk.f32.mxu1 %vm1388_vm0, %v9343_v56  ;;  %7537 = vpow2.f32 %v1779_v9 }
 0x549   : > { %7539 = vpow2.f32 %v1781_v57  ;;  %v6752_v20 = vpack.c.bf16 %v7367_v31, %v7366_v58 }
 0x54a   : > { %v9350_v30 = vpop.permute.xlu1 %2137  ;;  %v9352_v3 = vpop.eup %7523  ;;  %7541 = vpow2.f32 %v1783_v60 }
 0x54b   : > { %10627 = vst [vmem:[#allocation63_spill] sm:$0xff] %v9352_v3  ;;  %v9354_v5 = vpop.eup %7525 }
 0x54c   : > { %10628 = vst [vmem:[#allocation64_spill] sm:$0xff] %v9354_v5  ;;  %v9356_v39 = vpop.eup %7527  ;;  %6299 = vmatmul.mubr.msk.f32.vlgmr.msra.gmra.mrb[16].mxu0 %vm1388_vm0, %v9354_v5 }
 0x54d   : > { %10629 = vst [vmem:[#allocation65_spill] sm:$0xff] %v9356_v39  ;;  %v9360_v46 = vpop.eup %7529  ;;  %6285 = vmatmul.mubr.msk.f32.vlgmr.msra.gmra.mrb[16].mxu1 %vm1388_vm0, %v9356_v39  ;;  %6301 = vmatprep.mubr.msk.f32.mxu0 %vm1388_vm0, %v9352_v3 }
 0x54e   : > { %v7370_v18 = vpop.permute.xlu1 %7369  ;;  %10630 = vst [vmem:[#allocation66_spill] sm:$0xff] %v9360_v46  ;;  %6745 = vmatpush3.bf16.xpose.msk.msra.mxu1 %vm9074_vm1, %v6740_v47  ;;  %6287 = vmatprep.mubr.msk.f32.mxu1 %vm1388_vm0, %v9360_v46 }
 0x54f   : > { %v9369_v19 = vpop.eup %7531  ;;  %6305 = vmatpush3.msk.msra.mxu0 %vm2036_vm6, %v9316_v14  ;;  %6748 = vmatprep.subr.msk.bf16.mxu1 %vm9074_vm1, %v6746_v49  ;;  %v2140_v14 = vpop.permute.xlu0 %2139  ;;  %v7372_v52 = vunpack.i.h.bf16 %v7370_v18  ;;  %v7371_v41 = vunpack.i.l.bf16 %v7370_v18 }
 0x550   : > { %10631 = vst [vmem:[#allocation67_spill] sm:$0xff] %v9369_v19  ;;  %v9375_v21 = vpop.eup %7533  ;;  %6302 = vmatmul.mubr.msk.f32.gmra.mrb[18].mxu0 %vm1388_vm0, %v9369_v19  ;;  %6340 = vmatprep.subr.msk.mxu0 %vm1388_vm0, %v5829_v11 }
 0x551   : > { %10632 = vst [vmem:[#allocation68_spill] sm:$0xff] %v9375_v21  ;;  %v9381_v37 = vpop.eup %7535  ;;  %6288 = vmatmul.mubr.msk.f32.gmra.mrb[18].mxu1 %vm1388_vm0, %v9375_v21  ;;  %v6758_v10 = vpack.c.bf16 %v7372_v52, %v7371_v41 }
 0x552   : > { %10633 = vst [vmem:[#allocation69_spill] sm:$0xff] %v9381_v37  ;;  %v2144_v1 = vpop.permute.xlu1 %2143  ;;  %6306 = vmatprep.mubr.msk.f32.mxu0 %vm1732_vm15, %v9381_v37  ;;  %6320 = vmatprep.mubr.msk.f32.mxu1 %vm1388_vm0, %v9350_v30  ;;  %v9392_v12 = vpop.eup %7537 }
 0x553   : > { %10634 = vst [vmem:[#allocation70_spill] sm:$0xff] %v9392_v12  ;;  %v9394_v48 = vpop.eup %7539  ;;  %v2142_v47 = vpop.permute.xlu0 %2141 }
 0x554   : > { %10635 = vst [vmem:[#allocation71_spill] sm:$0xff] %v9394_v48  ;;  %6307 = vmatmul.mubr.msk.f32.vlgmr.msra.gmra.mrb[16].mxu0 %vm1732_vm15, %v9392_v12  ;;  %v9403_v22 = vpop.eup %7541 }
 0x555   : > { %6309 = vmatprep.mubr.msk.f32.mxu0 %vm1732_vm15, %v9394_v48  ;;  %10636 = vst [vmem:[#allocation72_spill] sm:$0xff] %v9403_v22 }
 0x556   : > { %v7380_v17 = vpop.permute.xlu1 %7379  ;;  %6751 = vmatpush3.bf16.xpose.msk.msra.mxu1 %vm9074_vm1, %v6746_v49  ;;  %6341 = vmatpush3.xpose.msk.msra.mxu0 %vm1388_vm0, %v5829_v11 }
 0x557   : > { %v7382_v13 = vunpack.i.h.bf16 %v7380_v17  ;;  %v7381_v27 = vunpack.i.l.bf16 %v7380_v17  ;;  %6754 = vmatprep.subr.msk.bf16.mxu1 %vm9074_vm1, %v6752_v20  ;;  %v7375_v43 = vpop.permute.xlu0 %7374 }
 0x558   : > { %6310 = vmatmul.mubr.msk.f32.gmra.mrb[18].mxu0 %vm1732_vm15, %v9403_v22  ;;  %v7377_v24 = vunpack.i.h.bf16 %v7375_v43  ;;  %v7376_v9 = vunpack.i.l.bf16 %v7375_v43 }
 0x559   : > { %v6764_v35 = vpack.c.bf16 %v7382_v13, %v7381_v27  ;;  %6342 = vmatprep.mubr.msk.f32.mxu0 %vm1388_vm0, %v9350_v30 }
 0x55a   : > { %v7385_v15 = vpop.permute.xlu1 %7384  ;;  %v6780_v33 = vpack.c.bf16 %v7377_v24, %v7376_v9 }
 0x55b   : > { %v7387_v0 = vunpack.i.h.bf16 %v7385_v15  ;;  %v7386_v6 = vunpack.i.l.bf16 %v7385_v15  ;;  %6765 = vmatprep.subr.bf16.mxu0 %v6764_v35 }
 0x55c   : > { %6343 = vmatmul.mubr.msk.f32.vlgmr.msra.gmra.mrb[20].mxu0 %vm1388_vm0, %v2140_v14 }
 0x55d   : > { %v6768_v25 = vpack.c.bf16 %v7387_v0, %v7386_v6  ;;  %6321 = vmatmul.mubr.msk.f32.vlgmr.msra.gmra.mrb[20].mxu1 %vm1388_vm0, %v2140_v14  ;;  %6767 = vmatpush3.bf16.msra.mxu0 %v6764_v35 }
 0x55e   : > { %6323 = vmatprep.mubr.msk.f32.mxu1 %vm1388_vm0, %v2142_v47  ;;  %6757 = vmatpush3.bf16.xpose.msk.msra.mxu1 %vm9074_vm1, %v6752_v20  ;;  %v7390_v57 = vpop.permute.xlu1 %7389 }
 0x55f   : > { %6760 = vmatprep.subr.msk.bf16.mxu1 %vm9074_vm1, %v6758_v10  ;;  %6345 = vmatprep.mubr.msk.f32.mxu0 %vm1388_vm0, %v2142_v47  ;;  %v7392_v60 = vunpack.i.h.bf16 %v7390_v57  ;;  %v7391_v61 = vunpack.i.l.bf16 %v7390_v57 }
 0x560   : > { %6769 = vmatprep.subr.bf16.mxu0 %v6768_v25  ;;  %6346 = vmatmul.mubr.msk.f32.gmra.mrb[22].mxu0 %vm1388_vm0, %v2144_v1 }
 0x561   : > { %6324 = vmatmul.mubr.msk.f32.gmra.mrb[22].mxu1 %vm1388_vm0, %v2144_v1  ;;  %6771 = vmatpush3.bf16.msra.mxu0 %v6768_v25  ;;  %v6786_v63 = vpack.c.bf16 %v7392_v60, %v7391_v61 }
 0x562   : > { %6334 = vmatprep.mubr.msk.f32.mxu1 %vm1388_vm0, %v9350_v30 }
 0x566   : > { %6763 = vmatpush3.bf16.xpose.msk.msra.mxu1 %vm9074_vm1, %v6758_v10 }
 0x567   : > { %6782 = vmatprep.subr.msk.bf16.mxu1 %vm9074_vm1, %v6780_v33 }
 0x56d   : > { %6335 = vmatmul.mubr.msk.f32.vlgmr.msra.gmra.mrb[24].mxu1 %vm1388_vm0, %v2140_v14 }
 0x56e   : > { %6337 = vmatprep.mubr.msk.f32.mxu1 %vm1388_vm0, %v2142_v47  ;;  %6785 = vmatpush3.bf16.xpose.msk.msra.mxu1 %vm9074_vm1, %v6780_v33 }
 0x56f   : > { %6788 = vmatprep.subr.msk.bf16.mxu1 %vm9074_vm1, %v6786_v63 }
 0x571   : > { %6338 = vmatmul.mubr.msk.f32.gmra.mrb[26].mxu1 %vm1388_vm0, %v2144_v1 }
 0x576   : > { %6791 = vmatpush3.bf16.xpose.msk.msra.mxu1 %vm9074_vm1, %v6786_v63 }
 0x620   : > { %v6286_v30 = vpop.f32.mrb[16].mxu1 }
 0x621   : > { %v1907_v18 = vpop.f32.mrb[17].mxu1 }
 0x624   : > { %v6289_v49 = vpop.f32.mrb[18].mxu1 }
 0x625   : > { %v1917_v11 = vpop.f32.mrb[19].mxu1 }
 0x627   : > { %v6308_v31 = vpop.f32.mrb[16].mxu0 }
 0x628   : > { %v9436_v58 = vadd.f32 %v6308_v31, %v6286_v30  ;;  %v2106_v14 = vpop.f32.mrb[17].mxu0 }
 0x629   : > { %v9438_v17 = vadd.f32 %v2106_v14, %v1907_v18 }
 0x62a   : > { %10637 = vst [vmem:[#allocation73_spill] sm:$0xff] %v9436_v58 }
 0x62b   : > { %10638 = vst [vmem:[#allocation74_spill] sm:$0xff] %v9438_v17  ;;  %v6311_v20 = vpop.f32.mrb[18].mxu0 }
 0x62c   : > { %v9440_v13 = vadd.f32 %v6311_v20, %v6289_v49  ;;  %v2116_v27 = vpop.f32.mrb[19].mxu0 }
 0x62d   : > { %v9442_v35 = vadd.f32 %v2116_v27, %v1917_v11 }
 0x62e   : > { %10639 = vst [vmem:[#allocation75_spill] sm:$0xff] %v9440_v13 }
 0x62f   : > { %10640 = vst [vmem:[#allocation76_spill] sm:$0xff] %v9442_v35  ;;  %v6344_v1 = vpop.f32.mrb[20].mxu0 }
 0x630   : > { %v6322_v47 = vpop.f32.mrb[20].mxu1  ;;  %v9444_v15 = vmul.f32 0.17677669, %v6344_v1  ;;  %v2434_v52 = vpop.f32.mrb[21].mxu0 }
 0x631   : > { %v2255_v41 = vmul.f32 0.17677669, %v6322_v47  ;;  %v2235_v0 = vpop.f32.mrb[21].mxu1  ;;  %v9464_v30 = vmul.f32 0.17677669, %v2434_v52 }
 0x632   : > { %v2254_v6 = vmul.f32 0.17677669, %v2235_v0  ;;  %v2496_v25 = vsel %vm1732_vm15, %v9444_v15, -inf }
 0x633   : > { %2497 = vmax.xlane.f32.xlu1 %v2496_v25  ;;  %v6347_v10 = vpop.f32.mrb[22].mxu0  ;;  %v9451_v43 = vsel %vm1361_vm2, %v2255_v41, -1e+30  ;;  %v2493_v11 = vsel %vm1732_vm15, %v9464_v30, -inf }
 0x634   : > { %v6325_v24 = vpop.f32.mrb[22].mxu1  ;;  %v9453_v9 = vmul.f32 0.17677669, %v6347_v10  ;;  %v2468_v33 = vsel %vm1388_vm0, %v9451_v43, -inf  ;;  %v2444_v57 = vpop.f32.mrb[23].mxu0 }
 0x635   : > { %2469 = vmax.xlane.f32.xlu0 %v2468_v33  ;;  %v2245_v60 = vpop.f32.mrb[23].mxu1  ;;  %v9462_v63 = vsel %vm1360_vm3, %v2254_v6, -1e+30  ;;  %v2257_v49 = vmul.f32 0.17677669, %v6325_v24 }
 0x636   : > { %v2502_v61 = vsel %vm1732_vm15, %v9453_v9, -inf  ;;  %v2465_v18 = vsel %vm1388_vm0, %v9462_v63, -inf  ;;  %v2256_v31 = vmul.f32 0.17677669, %v2245_v60  ;;  %v9482_v52 = vmul.f32 0.17677669, %v2444_v57 }
 0x637   : > { %2503 = vmax.xlane.f32.xlu1 %v2502_v61  ;;  %v9473_v14 = vsel %vm1363_vm4, %v2257_v49, -1e+30 }
 0x638   : > { %v2474_v27 = vsel %vm1388_vm0, %v9473_v14, -inf  ;;  %v9480_v47 = vsel %vm1362_vm5, %v2256_v31, -1e+30  ;;  %v2499_v10 = vsel %vm1732_vm15, %v9482_v52, -inf }
 0x639   : > { %2466 = vmax.xlane.f32.xlu0 %v2465_v18  ;;  %v2471_v0 = vsel %vm1388_vm0, %v9480_v47, -inf }
 0x63d   : > { %2494 = vmax.xlane.f32.xlu0 %v2493_v11 }
 0x640   : > { %v6336_v20 = vpop.f32.mrb[24].mxu1 }
 0x641   : > { %2475 = vmax.xlane.f32.xlu0 %v2474_v27  ;;  %v2340_v1 = vpop.f32.mrb[25].mxu1  ;;  %v2360_v6 = vmul.f32 0.17677669, %v6336_v20 }
 0x642   : > { %v2359_v57 = vmul.f32 0.17677669, %v2340_v1 }
 0x643   : > { %v2462_v24 = vsel %vm9240_vm11, %v2360_v6, -1e+30 }
 0x644   : > { %v6339_v41 = vpop.f32.mrb[26].mxu1  ;;  %v2480_v33 = vsel %vm1388_vm0, %v2462_v24, -inf  ;;  %v2461_v61 = vsel %vm9232_vm9, %v2359_v57, -1e+30 }
 0x645   : > { %v2350_v25 = vpop.f32.mrb[27].mxu1  ;;  %2472 = vmax.xlane.f32.xlu0 %v2471_v0  ;;  %v2362_v60 = vmul.f32 0.17677669, %v6339_v41  ;;  %v2477_v18 = vsel %vm1388_vm0, %v2461_v61, -inf }
 0x646   : > { %v2361_v49 = vmul.f32 0.17677669, %v2350_v25 }
 0x647   : > { %v9504_v11 = vsel %vm9252_vm12, %v2362_v60, -1e+30 }
 0x648   : > { %7399 = vrot.lane.b32.xlu1 %v8985_v36, %s8176_s18  ;;  %v2486_v31 = vsel %vm1388_vm0, %v9504_v11, -inf  ;;  %v9512_v20 = vsel %vm9270_vm14, %v2361_v49, -1e+30 }
 0x649   : > { %2500 = vmax.xlane.f32.xlu0 %v2499_v10  ;;  %v2483_v27 = vsel %vm1388_vm0, %v9512_v20, -inf }
 0x64d   : > { %2481 = vmax.xlane.f32.xlu0 %v2480_v33 }
 0x663   : > { %7394 = vrot.lane.b32.xlu0 %v8973_v26, %s8176_s18 }
 0x667   : > { %7404 = vrot.lane.b32.xlu0 %v9115_v42, %s8177_s19 }
 0x66b   : > { %2931 = vrot.lane.b32.xlu0 %v9109_v28, %s8177_s19 }
 0x66c   : > { %2478 = vmax.xlane.f32.xlu1 %v2477_v18 }
 0x66f   : > { %2933 = vrot.lane.b32.xlu0 %v9139_v29, %s8177_s19 }
 0x670   : > { %2487 = vmax.xlane.f32.xlu1 %v2486_v31 }
 0x673   : > { %7414 = vrot.lane.b32.xlu0 %v9079_v32, %s8178_s24 }
 0x674   : > { %2484 = vmax.xlane.f32.xlu1 %v2483_v27 }
 0x677   : > { %7434 = vrot.lane.b32.xlu0 %v8973_v26, %s8177_s19 }
 0x685   : > { %2929 = vrot.lane.b32.xlu1 %v9047_v8, %s8177_s19 }
 0x689   : > { %7409 = vrot.lane.b32.xlu1 %v9132_v53, %s8177_s19 }
 0x68d   : > { %2935 = vrot.lane.b32.xlu1 %v9149_v4, %s8177_s19 }
 0x691   : > { %7419 = vrot.lane.b32.xlu1 %v9015_v45, %s8177_s19 }
 0x695   : > { %7424 = vrot.lane.b32.xlu1 %v9029_v51, %s8177_s19 }
 0x699   : > { %7429 = vrot.lane.b32.xlu1 %v9095_v59, %s8178_s24 }
 0x69d   : > { %7439 = vrot.lane.b32.xlu1 %v8985_v36, %s8177_s19 }
 0x6c0   : > { %v2498_v16 = vpop.xlane.xlu1 %2497 }
 0x6c2   : > { %v2470_v32 = vpop.xlane.xlu0 %2469 }
 0x6c4   : > { %v2504_v13 = vpop.xlane.xlu1 %2503 }
 0x6c6   : > { %v2467_v1 = vpop.xlane.xlu0 %2466 }
 0x6c8   : > { %v7400_v17 = vpop.permute.xlu1 %7399 }
 0x6ca   : > { %v2495_v41 = vpop.xlane.xlu0 %2494 }
 0x6ce   : > { %v2476_v0 = vpop.xlane.xlu0 %2475 }
 0x6d2   : > { %v2473_v6 = vpop.xlane.xlu0 %2472 }
 0x6d6   : > { %v2501_v25 = vpop.xlane.xlu0 %2500 }
 0x6da   : > { %v2482_v10 = vpop.xlane.xlu0 %2481 }
 0x6db   : > { %v2490_v35 = vmax.f32 %v2470_v32, %v2482_v10 }
 0x6dd   : > { %v9539_v58 = vmax.f32 %v2490_v35, %v2498_v16 }
 0x6de   : > { %v7395_v33 = vpop.permute.xlu0 %7394 }
 0x6df   : > { %v7397_v57 = vunpack.i.h.bf16 %v7395_v33  ;;  %v7396_v60 = vunpack.i.l.bf16 %v7395_v33  ;;  %v2522_v33 = vsub.f32 %v2462_v24, %v9539_v58 }
 0x6e1   : > { %v9534_v49 = vpack.c.bf16 %v7397_v57, %v7396_v60 }
 0x6e2   : > { %v7405_v18 = vpop.permute.xlu0 %7404 }
 0x6e3   : > { %v7407_v31 = vunpack.i.h.bf16 %v7405_v18  ;;  %v7406_v27 = vunpack.i.l.bf16 %v7405_v18  ;;  %6773 = vmatprep.subr.bf16.mxu0 %v9534_v49 }
 0x6e5   : > { %v6792_v59 = vpack.c.bf16 %v7407_v31, %v7406_v27  ;;  %v2527_v31 = vmul.f32 1.442695, %v2522_v33 }
 0x6e6   : > { %v9542_v60 = vpop.permute.xlu0 %2931 }
 0x6e7   : > { %6794 = vmatprep.subr.msk.bf16.mxu1 %vm9074_vm1, %v6792_v59 }
 0x6ea   : > { %v9546_v12 = vpop.permute.xlu0 %2933 }
 0x6f9   : > { %v2479_v22 = vpop.xlane.xlu1 %2478 }
 0x6fa   : > { %v2489_v48 = vmax.f32 %v2467_v1, %v2479_v22 }
 0x6fc   : > { %v2505_v57 = vmax.f32 %v2489_v48, %v2495_v41  ;;  %v7402_v41 = vunpack.i.h.bf16 %v7400_v17 }
 0x6fd   : > { %v2488_v18 = vpop.xlane.xlu1 %2487 }
 0x6fe   : > { %v2521_v21 = vsub.f32 %v2461_v61, %v2505_v57  ;;  %v2492_v19 = vmax.f32 %v2476_v0, %v2488_v18  ;;  %v2509_v24 = vsub.f32 %v9462_v63, %v2505_v57  ;;  %v7401_v0 = vunpack.i.l.bf16 %v7400_v17 }
 0x700   : > { %v2525_v27 = vmul.f32 1.442695, %v2521_v21  ;;  %v9544_v46 = vmax.f32 %v2492_v19, %v2504_v13  ;;  %v7415_v21 = vpop.permute.xlu0 %7414  ;;  %v6776_v17 = vpack.c.bf16 %v7402_v41, %v7401_v0 }
 0x701   : > { %v2485_v3 = vpop.xlane.xlu1 %2484 }
 0x702   : > { %7543 = vpow2.f32 %v2525_v27  ;;  %v2491_v16 = vmax.f32 %v2473_v6, %v2485_v3  ;;  %v2524_v22 = vsub.f32 %v9504_v11, %v9544_v46  ;;  %v2510_v3 = vsub.f32 %v9451_v43, %v9539_v58 }
 0x703   : > { %7545 = vpow2.f32 %v2527_v31  ;;  %v2513_v11 = vmul.f32 1.442695, %v2509_v24  ;;  %v7417_v6 = vunpack.i.h.bf16 %v7415_v21  ;;  %v2512_v43 = vsub.f32 %v9473_v14, %v9544_v46 }
 0x704   : > { %v2507_v35 = vmax.f32 %v2491_v16, %v2501_v25  ;;  %v2531_v13 = vmul.f32 1.442695, %v2524_v22  ;;  %v7416_v25 = vunpack.i.l.bf16 %v7415_v21  ;;  %v2515_v33 = vmul.f32 1.442695, %v2510_v3 }
 0x705   : > { %v9550_v48 = vpop.permute.xlu1 %2929 }
 0x706   : > { %6392 = vmatprep.mubr.msk.f32.mxu1 %vm1388_vm0, %v9550_v48  ;;  %v2523_v19 = vsub.f32 %v9512_v20, %v2507_v35  ;;  %v2511_v32 = vsub.f32 %v9480_v47, %v2507_v35  ;;  %v2533_v47 = vsub.f32 %v9464_v30, %v2505_v57  ;;  %v6820_v14 = vpack.c.bf16 %v7417_v6, %v7416_v25 }
 0x707   : > { %6393 = vmatmul.mubr.msk.f32.vlgmr.msra.gmra.mrb[28].mxu1 %vm1388_vm0, %v9542_v60  ;;  %v2534_v30 = vsub.f32 %v9444_v15, %v9539_v58  ;;  %v2519_v57 = vmul.f32 1.442695, %v2512_v43  ;;  %v2535_v24 = vsub.f32 %v9482_v52, %v2507_v35  ;;  %v2536_v58 = vsub.f32 %v9453_v9, %v9544_v46 }
 0x708   : > { %6797 = vmatpush3.bf16.xpose.msk.msra.mxu1 %vm9074_vm1, %v6792_v59  ;;  %6395 = vmatprep.mubr.msk.f32.mxu1 %vm1388_vm0, %v9546_v12  ;;  %v2529_v63 = vmul.f32 1.442695, %v2523_v19  ;;  %v2517_v27 = vmul.f32 1.442695, %v2511_v32  ;;  %v2537_v22 = vmul.f32 1.442695, %v2533_v47 }
 0x709   : > { %v7410_v61 = vpop.permute.xlu1 %7409  ;;  %v2539_v19 = vmul.f32 1.442695, %v2534_v30  ;;  %v2541_v21 = vmul.f32 1.442695, %v2535_v24  ;;  %v2543_v46 = vmul.f32 1.442695, %v2536_v58 }
 0x70a   : > { %v7412_v20 = vunpack.i.h.bf16 %v7410_v61  ;;  %v7411_v1 = vunpack.i.l.bf16 %v7410_v61  ;;  %7547 = vpow2.f32 %v2529_v63 }
 0x70b   : > { %7549 = vpow2.f32 %v2531_v13 }
 0x70c   : > { %v6798_v10 = vpack.c.bf16 %v7412_v20, %v7411_v1  ;;  %v9565_v59 = vpop.eup %7543  ;;  %7551 = vpow2.f32 %v2513_v11  ;;  %v5864_v11 = vld [vmem:[%s10613_s7 + $0x8] sm:$0xf] }
 0x70d   : > { %v9569_v18 = vpop.permute.xlu1 %2935  ;;  %v9571_v31 = vpop.eup %7545  ;;  %6356 = vmatprep.mubr.msk.f32.mxu0 %vm1388_vm0, %v9565_v59  ;;  %7553 = vpow2.f32 %v2515_v33 }
 0x70e   : > { %6396 = vmatmul.mubr.msk.f32.gmra.mrb[30].mxu1 %vm1388_vm0, %v9569_v18  ;;  %6357 = vmatmul.mubr.msk.f32.vlgmr.msra.gmra.mrb[24].mxu0 %vm1388_vm0, %v9571_v31  ;;  %7555 = vpow2.f32 %v2517_v27 }
 0x70f   : > { %6800 = vmatprep.subr.msk.bf16.mxu1 %vm9074_vm1, %v6798_v10  ;;  %6775 = vmatpush3.bf16.msra.mxu0 %v9534_v49  ;;  %v2816_v49 = vld [vmem:[#allocation11 + $0x4] sm:$0xf]  ;;  %7557 = vpow2.f32 %v2519_v57 }
 0x710   : > { %6803 = vmatpush3.bf16.xpose.msk.msra.mxu1 %vm9074_vm1, %v6798_v10  ;;  %6777 = vmatprep.subr.bf16.mxu0 %v6776_v17  ;;  %7559 = vpow2.f32 %v2537_v22 }
 0x711   : > { %6406 = vmatprep.mubr.msk.f32.mxu1 %vm1388_vm0, %v9550_v48  ;;  %v7420_v16 = vpop.permute.xlu1 %7419  ;;  %6822 = vmatprep.subr.msk.bf16.mxu1 %vm9074_vm1, %v6820_v14  ;;  %7561 = vpow2.f32 %v2539_v19 }
 0x712   : > { %7563 = vpow2.f32 %v2541_v21  ;;  %v7422_v0 = vunpack.i.h.bf16 %v7420_v16  ;;  %v7421_v6 = vunpack.i.l.bf16 %v7420_v16 }
 0x713   : > { %6779 = vmatpush3.bf16.msra.mxu0 %v6776_v17  ;;  %7565 = vpow2.f32 %v2543_v46  ;;  %v7435_v17 = vpop.permute.xlu0 %7434 }
 0x714   : > { %6376 = vmatprep.subr.msk.mxu0 %vm2036_vm6, %v2816_v49  ;;  %v9595_v3 = vpop.eup %7547  ;;  %v6804_v33 = vpack.c.bf16 %v7422_v0, %v7421_v6  ;;  %v7436_v30 = vunpack.i.l.bf16 %v7435_v17 }
 0x715   : > { %v7425_v15 = vpop.permute.xlu1 %7424  ;;  %v9597_v13 = vpop.eup %7549  ;;  %6359 = vmatprep.mubr.msk.f32.mxu0 %vm1388_vm0, %v9595_v3 }
 0x716   : > { %v9603_v52 = vpop.eup %7551  ;;  %6360 = vmatmul.mubr.msk.f32.gmra.mrb[26].mxu0 %vm1388_vm0, %v9597_v13  ;;  %v7427_v47 = vunpack.i.h.bf16 %v7425_v15  ;;  %v7426_v27 = vunpack.i.l.bf16 %v7425_v15 }
 0x717   : > { %6407 = vmatmul.mubr.msk.f32.vlgmr.msra.gmra.mrb[32].mxu1 %vm1388_vm0, %v9542_v60  ;;  %6370 = vmatprep.mubr.msk.f32.mxu0 %vm1388_vm0, %v9603_v52  ;;  %v9613_v61 = vpop.eup %7553 }
 0x718   : > { %6409 = vmatprep.mubr.msk.f32.mxu1 %vm1388_vm0, %v9546_v12  ;;  %6825 = vmatpush3.bf16.xpose.msk.msra.mxu1 %vm9074_vm1, %v6820_v14  ;;  %v9620_v32 = vpop.eup %7555  ;;  %v7437_v14 = vunpack.i.h.bf16 %v7435_v17  ;;  %v6808_v57 = vpack.c.bf16 %v7427_v47, %v7426_v27 }
 0x719   : > { %v7430_v9 = vpop.permute.xlu1 %7429  ;;  %v9630_v1 = vpop.eup %7557 }
 0x71a   : > { %v7432_v35 = vunpack.i.h.bf16 %v7430_v9  ;;  %v7431_v63 = vunpack.i.l.bf16 %v7430_v9  ;;  %6371 = vmatmul.mubr.msk.f32.vlgmr.msra.gmra.mrb[24].mxu0 %vm1388_vm0, %v9613_v61  ;;  %v9632_v41 = vpop.eup %7559  ;;  %v9659_v16 = vpack.c.bf16 %v7437_v14, %v7436_v30 }
 0x71b   : > { %6410 = vmatmul.mubr.msk.f32.gmra.mrb[34].mxu1 %vm1388_vm0, %v9569_v18  ;;  %6373 = vmatprep.mubr.msk.f32.mxu0 %vm1388_vm0, %v9620_v32  ;;  %v9640_v25 = vpop.eup %7561 }
 0x71c   : > { %v6826_v20 = vpack.c.bf16 %v7432_v35, %v7431_v63  ;;  %6377 = vmatpush3.msk.msra.mxu0 %vm2036_vm6, %v2816_v49  ;;  %v9642_v10 = vpop.eup %7563 }
 0x71d   : > { %6412 = vmatprep.subr.msk.mxu0 %vm1388_vm0, %v5864_v11  ;;  %v9649_v43 = vpop.eup %7565 }
 0x71e   : > { %6828 = vmatprep.subr.msk.bf16.mxu1 %vm9074_vm1, %v6826_v20  ;;  %6374 = vmatmul.mubr.msk.f32.gmra.mrb[26].mxu0 %vm1388_vm0, %v9630_v1 }
 0x71f   : > { %6378 = vmatprep.mubr.msk.f32.mxu0 %vm1732_vm15, %v9632_v41 }
 0x720   : > { %6831 = vmatpush3.bf16.xpose.msk.msra.mxu1 %vm9074_vm1, %v6826_v20 }
 0x722   : > { %6379 = vmatmul.mubr.msk.f32.vlgmr.msra.gmra.mrb[24].mxu0 %vm1732_vm15, %v9640_v25 }
 0x723   : > { %6413 = vmatpush3.xpose.msk.msra.mxu0 %vm1388_vm0, %v5864_v11  ;;  %6381 = vmatprep.mubr.msk.f32.mxu0 %vm1732_vm15, %v9642_v10 }
 0x724   : > { %6805 = vmatprep.subr.bf16.mxu0 %v6804_v33 }
 0x726   : > { %6382 = vmatmul.mubr.msk.f32.gmra.mrb[26].mxu0 %vm1732_vm15, %v9649_v43 }
 0x727   : > { %6414 = vmatprep.mubr.msk.f32.mxu0 %vm1388_vm0, %v9550_v48 }
 0x72a   : > { %6415 = vmatmul.mubr.msk.f32.vlgmr.msra.gmra.mrb[28].mxu0 %vm1388_vm0, %v9542_v60 }
 0x72b   : > { %6807 = vmatpush3.bf16.msra.mxu0 %v6804_v33  ;;  %6417 = vmatprep.mubr.msk.f32.mxu0 %vm1388_vm0, %v9546_v12 }
 0x72c   : > { %6809 = vmatprep.subr.bf16.mxu0 %v6808_v57 }
 0x72e   : > { %6418 = vmatmul.mubr.msk.f32.gmra.mrb[30].mxu0 %vm1388_vm0, %v9569_v18 }
 0x72f   : > { %6811 = vmatpush3.bf16.msra.mxu0 %v6808_v57 }
 0x730   : > { %6813 = vmatprep.subr.bf16.mxu0 %v9659_v16 }
 0x7da   : > { %v6394_v48 = vpop.f32.mrb[28].mxu1 }
 0x7db   : > { %v3047_v22 = vmul.f32 0.17677669, %v6394_v48  ;;  %v3027_v24 = vpop.f32.mrb[29].mxu1 }
 0x7dc   : > { %v3046_v49 = vmul.f32 0.17677669, %v3027_v24 }
 0x7dd   : > { %v9667_v60 = vsel %vm1361_vm2, %v3047_v22, -1e+30 }
 0x7de   : > { %v3260_v12 = vsel %vm1388_vm0, %v9667_v60, -inf  ;;  %v9674_v18 = vsel %vm1360_vm3, %v3046_v49, -1e+30 }
 0x7df   : > { %3261 = vmax.xlane.f32.xlu0 %v3260_v12  ;;  %v3257_v21 = vsel %vm1388_vm0, %v9674_v18, -inf }
 0x7e1   : > { %v6397_v19 = vpop.f32.mrb[30].mxu1 }
 0x7e2   : > { %v3049_v58 = vmul.f32 0.17677669, %v6397_v19  ;;  %v3037_v15 = vpop.f32.mrb[31].mxu1 }
 0x7e3   : > { %v3048_v46 = vmul.f32 0.17677669, %v3037_v15  ;;  %3258 = vmax.xlane.f32.xlu0 %v3257_v21 }
 0x7e4   : > { %v9681_v9 = vsel %vm1363_vm4, %v3049_v58, -1e+30 }
 0x7e5   : > { %v3266_v35 = vsel %vm1388_vm0, %v9681_v9, -inf  ;;  %v9688_v63 = vsel %vm1362_vm5, %v3048_v46, -1e+30 }
 0x7e6   : > { %v3263_v20 = vsel %vm1388_vm0, %v9688_v63, -inf }
 0x7e7   : > { %3267 = vmax.xlane.f32.xlu0 %v3266_v35 }
 0x7ea   : > { %v6408_v11 = vpop.f32.mrb[32].mxu1 }
 0x7eb   : > { %v3152_v0 = vmul.f32 0.17677669, %v6408_v11  ;;  %v3132_v6 = vpop.f32.mrb[33].mxu1  ;;  %3264 = vmax.xlane.f32.xlu0 %v3263_v20 }
 0x7ec   : > { %v3151_v33 = vmul.f32 0.17677669, %v3132_v6 }
 0x7ed   : > { %v9694_v47 = vsel %vm9240_vm11, %v3152_v0, -1e+30 }
 0x7ee   : > { %v6411_v27 = vpop.f32.mrb[34].mxu1  ;;  %v3272_v17 = vsel %vm1388_vm0, %v9694_v47, -inf  ;;  %v3253_v14 = vsel %vm9232_vm9, %v3151_v33, -1e+30 }
 0x7ef   : > { %v3154_v30 = vmul.f32 0.17677669, %v6411_v27  ;;  %v3142_v57 = vpop.f32.mrb[35].mxu1  ;;  %3273 = vmax.xlane.f32.xlu0 %v3272_v17  ;;  %v3269_v48 = vsel %vm1388_vm0, %v3253_v14, -inf }
 0x7f0   : > { %v3153_v22 = vmul.f32 0.17677669, %v3142_v57  ;;  %3270 = vmax.xlane.f32.xlu1 %v3269_v48 }
 0x7f1   : > { %v9703_v24 = vsel %vm9252_vm12, %v3154_v30, -1e+30 }
 0x7f2   : > { %v3278_v49 = vsel %vm1388_vm0, %v9703_v24, -inf  ;;  %v9709_v12 = vsel %vm9270_vm14, %v3153_v22, -1e+30 }
 0x7f3   : > { %v3275_v58 = vsel %vm1388_vm0, %v9709_v12, -inf }
 0x7f4   : > { %3279 = vmax.xlane.f32.xlu1 %v3278_v49 }
 0x7f5   : > { %v9711_v19 = vpop.f32.mrb[24].mxu0 }
 0x7f6   : > { %10641 = vst [vmem:[#allocation77_spill] sm:$0xff] %v9711_v19  ;;  %v9715_v15 = vpop.f32.mrb[25].mxu0 }
 0x7f7   : > { %10642 = vst [vmem:[#allocation78_spill] sm:$0xff] %v9715_v15 }
 0x7f8   : > { %3276 = vmax.xlane.f32.xlu1 %v3275_v58 }
 0x7f9   : > { %v9717_v21 = vpop.f32.mrb[26].mxu0 }
 0x7fa   : > { %10643 = vst [vmem:[#allocation79_spill] sm:$0xff] %v9717_v21  ;;  %v9719_v46 = vpop.f32.mrb[27].mxu0 }
 0x7fb   : > { %10644 = vst [vmem:[#allocation80_spill] sm:$0xff] %v9719_v46 }
 0x7fd   : > { %v6416_v35 = vpop.f32.mrb[28].mxu0 }
 0x7fe   : > { %v9721_v11 = vmul.f32 0.17677669, %v6416_v35  ;;  %v3226_v20 = vpop.f32.mrb[29].mxu0  ;;  %v9749_v35 = vpop.permute.xlu1 %7439 }
 0x7ff   : > { %v9723_v0 = vmul.f32 0.17677669, %v3226_v20 }
 0x800   : > { %v3288_v6 = vsel %vm1732_vm15, %v9721_v11, -inf }
 0x801   : > { %3289 = vmax.xlane.f32.xlu1 %v3288_v6  ;;  %v6419_v33 = vpop.f32.mrb[30].mxu0  ;;  %v3285_v27 = vsel %vm1732_vm15, %v9723_v0, -inf }
 0x802   : > { %v9729_v17 = vmul.f32 0.17677669, %v6419_v33  ;;  %3286 = vmax.xlane.f32.xlu0 %v3285_v27  ;;  %v3236_v30 = vpop.f32.mrb[31].mxu0 }
 0x803   : > { %v9731_v57 = vmul.f32 0.17677669, %v3236_v30 }
 0x804   : > { %v3294_v48 = vsel %vm1732_vm15, %v9729_v17, -inf }
 0x805   : > { %3295 = vmax.xlane.f32.xlu1 %v3294_v48  ;;  %v3291_v22 = vsel %vm1732_vm15, %v9731_v57, -inf }
 0x806   : > { %3292 = vmax.xlane.f32.xlu0 %v3291_v22 }
 0x816   : > { %3713 = vrot.lane.b32.xlu1 %v9047_v8, %s8178_s24 }
 0x81a   : > { %7449 = vrot.lane.b32.xlu1 %v9132_v53, %s8178_s24 }
 0x81c   : > { %7444 = vrot.lane.b32.xlu0 %v9115_v42, %s8178_s24 }
 0x81e   : > { %3719 = vrot.lane.b32.xlu1 %v9149_v4, %s8178_s24 }
 0x820   : > { %3715 = vrot.lane.b32.xlu0 %v9109_v28, %s8178_s24 }
 0x824   : > { %3717 = vrot.lane.b32.xlu0 %v9139_v29, %s8178_s24 }
 0x86c   : > { %v3262_v49 = vpop.xlane.xlu0 %3261 }
 0x870   : > { %v3259_v58 = vpop.xlane.xlu0 %3258 }
 0x874   : > { %v3268_v8 = vpop.xlane.xlu0 %3267 }
 0x878   : > { %v3265_v6 = vpop.xlane.xlu0 %3264 }
 0x87c   : > { %v3274_v33 = vpop.xlane.xlu0 %3273 }
 0x87d   : > { %v3271_v20 = vpop.xlane.xlu1 %3270  ;;  %v3282_v42 = vmax.f32 %v3262_v49, %v3274_v33 }
 0x87e   : > { %v3281_v30 = vmax.f32 %v3259_v58, %v3271_v20 }
 0x881   : > { %v3280_v53 = vpop.xlane.xlu1 %3279 }
 0x882   : > { %v3284_v21 = vmax.f32 %v3268_v8, %v3280_v53 }
 0x885   : > { %v3277_v27 = vpop.xlane.xlu1 %3276 }
 0x886   : > { %v3283_v46 = vmax.f32 %v3265_v6, %v3277_v27 }
 0x88e   : > { %v3290_v48 = vpop.xlane.xlu1 %3289 }
 0x88f   : > { %v9751_v4 = vmax.f32 %v3282_v42, %v3290_v48  ;;  %v3287_v22 = vpop.xlane.xlu0 %3286 }
 0x890   : > { %v3297_v28 = vmax.f32 %v3281_v30, %v3287_v22  ;;  %v7441_v30 = vunpack.i.l.bf16 %v9749_v35 }
 0x891   : > { %v3314_v29 = vsub.f32 %v9694_v47, %v9751_v4 }
 0x892   : > { %v3313_v19 = vsub.f32 %v3253_v14, %v3297_v28  ;;  %v3296_v15 = vpop.xlane.xlu1 %3295  ;;  %v3301_v47 = vsub.f32 %v9674_v18, %v3297_v28  ;;  %v3325_v48 = vsub.f32 %v9723_v0, %v3297_v28 }
 0x893   : > { %v3293_v37 = vpop.xlane.xlu0 %3292  ;;  %v9755_v39 = vmax.f32 %v3284_v21, %v3296_v15  ;;  %v3319_v54 = vmul.f32 1.442695, %v3314_v29 }
 0x894   : > { %v3299_v5 = vmax.f32 %v3283_v46, %v3293_v37  ;;  %v3317_v56 = vmul.f32 1.442695, %v3313_v19 }
 0x895   : > { %v3316_v20 = vsub.f32 %v9703_v24, %v9755_v39  ;;  %v3305_v24 = vmul.f32 1.442695, %v3301_v47  ;;  %v3304_v42 = vsub.f32 %v9681_v9, %v9755_v39 }
 0x896   : > { %v9757_v49 = vpop.permute.xlu1 %3713  ;;  %v3315_v58 = vsub.f32 %v9709_v12, %v3299_v5  ;;  %7567 = vpow2.f32 %v3317_v56  ;;  %v3302_v12 = vsub.f32 %v9667_v60, %v9751_v4  ;;  %v3303_v56 = vsub.f32 %v9688_v63, %v3299_v5 }
 0x897   : > { %6464 = vmatprep.mubr.msk.f32.mxu1 %vm1388_vm0, %v9757_v49  ;;  %v7445_v8 = vpop.permute.xlu0 %7444  ;;  %7569 = vpow2.f32 %v3319_v54  ;;  %v3323_v33 = vmul.f32 1.442695, %v3316_v20  ;;  %v7442_v60 = vunpack.i.h.bf16 %v9749_v35  ;;  %v3329_v35 = vmul.f32 1.442695, %v3325_v48 }
 0x898   : > { %v7447_v14 = vunpack.i.h.bf16 %v7445_v8  ;;  %v7446_v15 = vunpack.i.l.bf16 %v7445_v8  ;;  %v3321_v19 = vmul.f32 1.442695, %v3315_v58  ;;  %v3307_v27 = vmul.f32 1.442695, %v3302_v12 }
 0x899   : > { %v3309_v22 = vmul.f32 1.442695, %v3303_v56  ;;  %v3326_v58 = vsub.f32 %v9721_v11, %v9751_v4  ;;  %v3311_v8 = vmul.f32 1.442695, %v3304_v42  ;;  %v6816_v0 = vpack.c.bf16 %v7442_v60, %v7441_v30  ;;  %v3600_v4 = vld [vmem:[#allocation11 + $0x8] sm:$0xf] }
 0x89a   : > { %v7450_v37 = vpop.permute.xlu1 %7449  ;;  %v6832_v21 = vpack.c.bf16 %v7447_v14, %v7446_v15  ;;  %7571 = vpow2.f32 %v3321_v19  ;;  %v3327_v28 = vsub.f32 %v9731_v57, %v3299_v5  ;;  %v3328_v11 = vsub.f32 %v9729_v17, %v9755_v39  ;;  %v5899_v17 = vld [vmem:[%s10613_s7 + $0xc] sm:$0xf] }
 0x89b   : > { %v7452_v46 = vunpack.i.h.bf16 %v7450_v37  ;;  %v7451_v6 = vunpack.i.l.bf16 %v7450_v37  ;;  %v9765_v53 = vpop.permute.xlu0 %3715  ;;  %7573 = vpow2.f32 %v3323_v33  ;;  %v3331_v20 = vmul.f32 1.442695, %v3326_v58 }
 0x89c   : > { %6465 = vmatmul.mubr.msk.f32.vlgmr.msra.gmra.mrb[36].mxu1 %vm1388_vm0, %v9765_v53  ;;  %6834 = vmatprep.subr.msk.bf16.mxu1 %vm9074_vm1, %v6832_v21  ;;  %7575 = vpow2.f32 %v3305_v24  ;;  %v3333_v14 = vmul.f32 1.442695, %v3327_v28  ;;  %v3335_v23 = vmul.f32 1.442695, %v3328_v11 }
 0x89d   : > { %v6838_v18 = vpack.c.bf16 %v7452_v46, %v7451_v6  ;;  %6837 = vmatpush3.bf16.xpose.msk.msra.mxu1 %vm9074_vm1, %v6832_v21  ;;  %7577 = vpow2.f32 %v3307_v27 }
 0x89e   : > { %v9783_v63 = vpop.permute.xlu1 %3719  ;;  %7579 = vpow2.f32 %v3309_v22 }
 0x89f   : > { %v9776_v54 = vpop.permute.xlu0 %3717  ;;  %6840 = vmatprep.subr.msk.bf16.mxu1 %vm9074_vm1, %v6838_v18  ;;  %7581 = vpow2.f32 %v3311_v8 }
 0x8a0   : > { %6467 = vmatprep.mubr.msk.f32.mxu1 %vm1388_vm0, %v9776_v54  ;;  %v9793_v29 = vpop.eup %7567  ;;  %7583 = vpow2.f32 %v3329_v35 }
 0x8a1   : > { %6468 = vmatmul.mubr.msk.f32.gmra.mrb[38].mxu1 %vm1388_vm0, %v9783_v63  ;;  %v9795_v9 = vpop.eup %7569  ;;  %6428 = vmatprep.mubr.msk.f32.mxu0 %vm1388_vm0, %v9793_v29  ;;  %7585 = vpow2.f32 %v3331_v20 }
 0x8a2   : > { %6478 = vmatprep.mubr.msk.f32.mxu1 %vm1388_vm0, %v9757_v49  ;;  %6429 = vmatmul.mubr.msk.f32.vlgmr.msra.gmra.mrb[32].mxu0 %vm1388_vm0, %v9795_v9  ;;  %7587 = vpow2.f32 %v3333_v14 }
 0x8a3   : > { %6815 = vmatpush3.bf16.msra.mxu0 %v9659_v16  ;;  %7589 = vpow2.f32 %v3335_v23 }
 0x8a4   : > { %6817 = vmatprep.subr.bf16.mxu0 %v6816_v0  ;;  %v9809_v47 = vpop.eup %7571 }
 0x8a5   : > { %6843 = vmatpush3.bf16.xpose.msk.msra.mxu1 %vm9074_vm1, %v6838_v18  ;;  %v9811_v5 = vpop.eup %7573  ;;  %6431 = vmatprep.mubr.msk.f32.mxu0 %vm1388_vm0, %v9809_v47  ;;  %vm4549_vm1 = vcmask 523264  }
 0x8a6   : > { %v9815_v16 = vpop.eup %7575  ;;  %6432 = vmatmul.mubr.msk.f32.gmra.mrb[34].mxu0 %vm1388_vm0, %v9811_v5 }
 0x8a7   : > { %6819 = vmatpush3.bf16.msra.mxu0 %v6816_v0  ;;  %6442 = vmatprep.mubr.msk.f32.mxu0 %vm1388_vm0, %v9815_v16  ;;  %v9824_v39 = vpop.eup %7577 }
 0x8a8   : > { %6448 = vmatprep.subr.msk.mxu0 %vm2036_vm6, %v3600_v4  ;;  %v9831_v57 = vpop.eup %7579 }
 0x8a9   : > { %v9841_v15 = vpop.eup %7581 }
 0x8aa   : > { %6443 = vmatmul.mubr.msk.f32.vlgmr.msra.gmra.mrb[32].mxu0 %vm1388_vm0, %v9824_v39  ;;  %v9843_v37 = vpop.eup %7583 }
 0x8ab   : > { %6445 = vmatprep.mubr.msk.f32.mxu0 %vm1388_vm0, %v9831_v57  ;;  %6449 = vmatpush3.msk.msra.mxu0 %vm2036_vm6, %v3600_v4  ;;  %v9849_v19 = vpop.eup %7585 }
 0x8ac   : > { %6479 = vmatmul.mubr.msk.f32.vlgmr.msra.gmra.mrb[40].mxu1 %vm1388_vm0, %v9765_v53  ;;  %6484 = vmatprep.subr.msk.mxu0 %vm1388_vm0, %v5899_v17  ;;  %v9851_v21 = vpop.eup %7587 }
 0x8ad   : > { %6481 = vmatprep.mubr.msk.f32.mxu1 %vm1388_vm0, %v9776_v54  ;;  %v9858_v46 = vpop.eup %7589 }
 0x8ae   : > { %6446 = vmatmul.mubr.msk.f32.gmra.mrb[34].mxu0 %vm1388_vm0, %v9841_v15 }
 0x8af   : > { %6450 = vmatprep.mubr.msk.f32.mxu0 %vm1732_vm15, %v9843_v37 }
 0x8b0   : > { %6482 = vmatmul.mubr.msk.f32.gmra.mrb[42].mxu1 %vm1388_vm0, %v9783_v63 }
 0x8b2   : > { %6451 = vmatmul.mubr.msk.f32.vlgmr.msra.gmra.mrb[32].mxu0 %vm1732_vm15, %v9849_v19 }
 0x8b3   : > { %6453 = vmatprep.mubr.msk.f32.mxu0 %vm1732_vm15, %v9851_v21  ;;  %6485 = vmatpush3.xpose.msk.msra.mxu0 %vm1388_vm0, %v5899_v17 }
 0x8b6   : > { %6454 = vmatmul.mubr.msk.f32.gmra.mrb[34].mxu0 %vm1732_vm15, %v9858_v46 }
 0x8b7   : > { %6486 = vmatprep.mubr.msk.f32.mxu0 %vm1388_vm0, %v9757_v49 }
 0x8ba   : > { %6487 = vmatmul.mubr.msk.f32.vlgmr.msra.gmra.mrb[36].mxu0 %vm1388_vm0, %v9765_v53 }
 0x8bb   : > { %6489 = vmatprep.mubr.msk.f32.mxu0 %vm1388_vm0, %v9776_v54 }
 0x8be   : > { %6490 = vmatmul.mubr.msk.f32.gmra.mrb[38].mxu0 %vm1388_vm0, %v9783_v63 }
 0x96f   : > { %v6466_v6 = vpop.f32.mrb[36].mxu1 }
 0x970   : > { %v3811_v12 = vpop.f32.mrb[37].mxu1  ;;  %v3831_v33 = vmul.f32 0.17677669, %v6466_v6 }
 0x971   : > { %v3830_v24 = vmul.f32 0.17677669, %v3811_v12 }
 0x972   : > { %v9880_v53 = vsel %vm1361_vm2, %v3831_v33, -1e+30  ;;  %vm4554_vm2 = vcmask 785408  }
 0x973   : > { %v9873_v56 = vsel %vm1360_vm3, %v3830_v24, -1e+30  ;;  %v4044_v60 = vsel %vm1388_vm0, %v9880_v53, -inf }
 0x974   : > { %v6469_v18 = vpop.f32.mrb[38].mxu1  ;;  %v4041_v49 = vsel %vm1388_vm0, %v9873_v56, -inf }
 0x975   : > { %4042 = vmax.xlane.f32.xlu0 %v4041_v49  ;;  %v3821_v54 = vpop.f32.mrb[39].mxu1  ;;  %v3833_v0 = vmul.f32 0.17677669, %v6469_v18 }
 0x976   : > { %v3832_v42 = vmul.f32 0.17677669, %v3821_v54 }
 0x977   : > { %v9910_v40 = vsel %vm1363_vm4, %v3833_v0, -1e+30 }
 0x978   : > { %v9897_v35 = vsel %vm1362_vm5, %v3832_v42, -1e+30  ;;  %v4050_v6 = vsel %vm1388_vm0, %v9910_v40, -inf }
 0x979   : > { %4045 = vmax.xlane.f32.xlu0 %v4044_v60  ;;  %v4047_v4 = vsel %vm1388_vm0, %v9897_v35, -inf }
 0x97f   : > { %v6480_v27 = vpop.f32.mrb[40].mxu1 }
 0x980   : > { %v3936_v63 = vmul.f32 0.17677669, %v6480_v27  ;;  %v3916_v30 = vpop.f32.mrb[41].mxu1 }
 0x981   : > { %v3935_v48 = vmul.f32 0.17677669, %v3916_v30 }
 0x982   : > { %v9886_v22 = vsel %vm9240_vm11, %v3936_v63, -1e+30 }
 0x983   : > { %v9890_v34 = vsel %vm9232_vm9, %v3935_v48, -1e+30  ;;  %v6483_v58 = vpop.f32.mrb[42].mxu1  ;;  %v4056_v8 = vsel %vm1388_vm0, %v9886_v22, -inf }
 0x984   : > { %4057 = vmax.xlane.f32.xlu0 %v4056_v8  ;;  %v3926_v28 = vpop.f32.mrb[43].mxu1  ;;  %v4053_v55 = vsel %vm1388_vm0, %v9890_v34, -inf  ;;  %v3938_v20 = vmul.f32 0.17677669, %v6483_v58  ;;  %v2545_v58 = vsel %vm1388_vm0, %v9603_v52, 0.0  ;;  %v2548_v8 = vsel %vm1388_vm0, %v9613_v61, 0.0 }
 0x985   : > { %v3937_v11 = vmul.f32 0.17677669, %v3926_v28  ;;  %4054 = vmax.xlane.f32.xlu1 %v4053_v55  ;;  %v9918_v17 = vpop.f32.mrb[32].mxu0  ;;  %v3340_v52 = vsel %vm1388_vm0, %v9824_v39, 0.0  ;;  %v3352_v61 = vsel %vm1388_vm0, %v9795_v9, 0.0  ;;  %v2566_v9 = vsel %vm1388_vm0, %v9597_v13, 0.0 }
 0x986   : > { %v9916_v23 = vsel %vm9252_vm12, %v3938_v20, -1e+30  ;;  %v9920_v2 = vpop.f32.mrb[33].mxu0  ;;  %v2554_v39 = vsel %vm1388_vm0, %v9630_v1, 0.0 }
 0x987   : > { %v9903_v50 = vsel %vm9270_vm14, %v3937_v11, -1e+30  ;;  %v4062_v44 = vsel %vm1388_vm0, %v9916_v23, -inf }
 0x988   : > { %4048 = vmax.xlane.f32.xlu0 %v4047_v4  ;;  %v4059_v14 = vsel %vm1388_vm0, %v9903_v50, -inf }
 0x989   : > { %4060 = vmax.xlane.f32.xlu1 %v4059_v14  ;;  %v9926_v62 = vpop.f32.mrb[34].mxu0 }
 0x98a   : > { %v9928_v12 = vpop.f32.mrb[35].mxu0 }
 0x98c   : > { %4051 = vmax.xlane.f32.xlu0 %v4050_v6 }
 0x98d   : > { %4063 = vmax.xlane.f32.xlu1 %v4062_v44  ;;  %v6488_v38 = vpop.f32.mrb[36].mxu0 }
 0x98e   : > { %v9930_v33 = vmul.f32 0.17677669, %v6488_v38  ;;  %v4010_v24 = vpop.f32.mrb[37].mxu0 }
 0x98f   : > { %v9932_v18 = vmul.f32 0.17677669, %v4010_v24 }
 0x990   : > { %v4072_v49 = vsel %vm1732_vm15, %v9930_v33, -inf }
 0x991   : > { %v6491_v54 = vpop.f32.mrb[38].mxu0  ;;  %4073 = vmax.xlane.f32.xlu1 %v4072_v49  ;;  %v4069_v60 = vsel %vm1732_vm15, %v9932_v18, -inf }
 0x992   : > { %v9938_v27 = vmul.f32 0.17677669, %v6491_v54  ;;  %v4020_v42 = vpop.f32.mrb[39].mxu0  ;;  %4070 = vmax.xlane.f32.xlu0 %v4069_v60 }
 0x993   : > { %v9940_v63 = vmul.f32 0.17677669, %v4020_v42 }
 0x994   : > { %v4078_v30 = vsel %vm1732_vm15, %v9938_v27, -inf }
 0x995   : > { %4079 = vmax.xlane.f32.xlu1 %v4078_v30  ;;  %v4075_v48 = vsel %vm1732_vm15, %v9940_v63, -inf }
 0x996   : > { %4076 = vmax.xlane.f32.xlu0 %v4075_v48 }
 0x9a6   : > { %7459 = vrot.lane.b32.xlu1 %v9029_v51, %s8178_s24  ;;  %v2557_v51 = vsel %vm1388_vm0, %v9565_v59, 0.0  ;;  %v2573_v59 = vsel %vm1732_vm15, %v9632_v41, 0.0  ;;  %v2563_v41 = vsel %vm1388_vm0, %v9595_v3, 0.0 }
 0x9aa   : > { %7464 = vrot.lane.b32.xlu1 %v8973_v26, %s8178_s24  ;;  %v2560_v26 = vsel %vm1388_vm0, %v9571_v31, 0.0  ;;  %v2576_v31 = vsel %vm1732_vm15, %v9640_v25, 0.0  ;;  %v2551_v25 = vsel %vm1388_vm0, %v9620_v32, 0.0 }
 0x9ac   : > { %7454 = vrot.lane.b32.xlu0 %v9015_v45, %s8178_s24  ;;  %v3349_v45 = vsel %vm1388_vm0, %v9793_v29, 0.0  ;;  %v3368_v29 = vsel %vm1732_vm15, %v9849_v19, 0.0 }
 0x9ae   : > { %7469 = vrot.lane.b32.xlu1 %v8985_v36, %s8178_s24  ;;  %v3337_v36 = vsel %vm1388_vm0, %v9815_v16, 0.0  ;;  %v3365_v16 = vsel %vm1732_vm15, %v9843_v37, 0.0  ;;  %v3343_v37 = vsel %vm1388_vm0, %v9831_v57, 0.0 }
 0x9cb   : > { %2546 = vadd.xlane.f32.xlu0 %v2545_v58 }
 0x9cf   : > { %2549 = vadd.xlane.f32.xlu0 %v2548_v8 }
 0x9d2   : > { %2558 = vadd.xlane.f32.xlu1 %v2557_v51 }
 0x9d3   : > { %2561 = vadd.xlane.f32.xlu0 %v2560_v26 }
 0x9d6   : > { %3350 = vadd.xlane.f32.xlu1 %v3349_v45 }
 0x9d7   : > { %3338 = vadd.xlane.f32.xlu0 %v3337_v36 }
 0x9da   : > { %3341 = vadd.xlane.f32.xlu1 %v3340_v52 }
 0x9db   : > { %2574 = vadd.xlane.f32.xlu0 %v2573_v59 }
 0x9de   : > { %2577 = vadd.xlane.f32.xlu1 %v2576_v31 }
 0x9df   : > { %3353 = vadd.xlane.f32.xlu0 %v3352_v61 }
 0x9e2   : > { %3369 = vadd.xlane.f32.xlu1 %v3368_v29 }
 0x9e3   : > { %3366 = vadd.xlane.f32.xlu0 %v3365_v16 }
 0x9e6   : > { %2564 = vadd.xlane.f32.xlu1 %v2563_v41 }
 0x9e7   : > { %2552 = vadd.xlane.f32.xlu0 %v2551_v25 }
 0x9ea   : > { %2567 = vadd.xlane.f32.xlu1 %v2566_v9 }
 0x9eb   : > { %2555 = vadd.xlane.f32.xlu0 %v2554_v39 }
 0x9ef   : > { %3344 = vadd.xlane.f32.xlu0 %v3343_v37 }
 0xa02   : > { %v4043_v19 = vpop.xlane.xlu0 %4042 }
 0xa06   : > { %v4046_v0 = vpop.xlane.xlu0 %4045 }
 0xa11   : > { %v4058_v28 = vpop.xlane.xlu0 %4057 }
 0xa12   : > { %v4055_v3 = vpop.xlane.xlu1 %4054  ;;  %v4066_v4 = vmax.f32 %v4046_v0, %v4058_v28 }
 0xa13   : > { %v4065_v14 = vmax.f32 %v4043_v19, %v4055_v3 }
 0xa15   : > { %v4049_v20 = vpop.xlane.xlu0 %4048 }
 0xa16   : > { %v4061_v55 = vpop.xlane.xlu1 %4060 }
 0xa17   : > { %v4067_v49 = vmax.f32 %v4049_v20, %v4061_v55 }
 0xa19   : > { %v4052_v11 = vpop.xlane.xlu0 %4051 }
 0xa1a   : > { %v4064_v32 = vpop.xlane.xlu1 %4063 }
 0xa1b   : > { %v4068_v54 = vmax.f32 %v4052_v11, %v4064_v32 }
 0xa1e   : > { %v4074_v13 = vpop.xlane.xlu1 %4073 }
 0xa1f   : > { %v4082_v6 = vmax.f32 %v4066_v4, %v4074_v13  ;;  %v4071_v44 = vpop.xlane.xlu0 %4070 }
 0xa20   : > { %v4081_v38 = vmax.f32 %v4065_v14, %v4071_v44 }
 0xa21   : > { %v4086_v1 = vsub.f32 %v9880_v53, %v4082_v6  ;;  %v4098_v24 = vsub.f32 %v9886_v22, %v4082_v6  ;;  %v4110_v57 = vsub.f32 %v9930_v33, %v4082_v6 }
 0xa22   : > { %v4097_v60 = vsub.f32 %v9890_v34, %v4081_v38  ;;  %v4080_v42 = vpop.xlane.xlu1 %4079  ;;  %v4085_v8 = vsub.f32 %v9873_v56, %v4081_v38  ;;  %v4109_v26 = vsub.f32 %v9932_v18, %v4081_v38 }
 0xa23   : > { %v4091_v30 = vmul.f32 1.442695, %v4086_v1  ;;  %v4103_v48 = vmul.f32 1.442695, %v4098_v24  ;;  %v4115_v58 = vmul.f32 1.442695, %v4110_v57  ;;  %v4077_v51 = vpop.xlane.xlu0 %4076  ;;  %v9994_v45 = vmax.f32 %v4068_v54, %v4080_v42 }
 0xa24   : > { %v9996_v53 = vmax.f32 %v4067_v49, %v4077_v51  ;;  %v4101_v22 = vmul.f32 1.442695, %v4097_v60  ;;  %v4089_v36 = vmul.f32 1.442695, %v4085_v8  ;;  %v4113_v59 = vmul.f32 1.442695, %v4109_v26 }
 0xa25   : > { %7591 = vpow2.f32 %v4091_v30  ;;  %v4100_v56 = vsub.f32 %v9916_v23, %v9994_v45  ;;  %v4088_v28 = vsub.f32 %v9910_v40, %v9994_v45  ;;  %v4112_v49 = vsub.f32 %v9938_v27, %v9994_v45 }
 0xa26   : > { %7593 = vpow2.f32 %v4103_v48  ;;  %v7460_v33 = vpop.permute.xlu1 %7459  ;;  %v4099_v34 = vsub.f32 %v9903_v50, %v9996_v53  ;;  %v4087_v39 = vsub.f32 %v9897_v35, %v9996_v53  ;;  %v4111_v38 = vsub.f32 %v9940_v63, %v9996_v53  ;;  %v4384_v48 = vld [vmem:[#allocation11 + $0xc] sm:$0xf] }
 0xa27   : > { %7595 = vpow2.f32 %v4115_v58  ;;  %v7455_v52 = vpop.permute.xlu0 %7454  ;;  %v7462_v31 = vunpack.i.h.bf16 %v7460_v33  ;;  %v7461_v61 = vunpack.i.l.bf16 %v7460_v33  ;;  %v4107_v25 = vmul.f32 1.442695, %v4100_v56 }
 0xa28   : > { %7597 = vpow2.f32 %v4101_v22  ;;  %v7457_v18 = vunpack.i.h.bf16 %v7455_v52  ;;  %v7456_v29 = vunpack.i.l.bf16 %v7455_v52  ;;  %v4105_v41 = vmul.f32 1.442695, %v4099_v34 }
 0xa29   : > { %7599 = vpow2.f32 %v4089_v36  ;;  %v6848_v50 = vpack.c.bf16 %v7462_v31, %v7461_v61  ;;  %v4093_v32 = vmul.f32 1.442695, %v4087_v39  ;;  %v4095_v6 = vmul.f32 1.442695, %v4088_v28  ;;  %v10647_v31 = vld [vmem:[#allocation62_spill] sm:$0xff]  ;;  %v10650_v39 = vld [vmem:[#allocation69_spill] sm:$0xff] }
 0xa2a   : > { %v7465_v16 = vpop.permute.xlu1 %7464  ;;  %7601 = vpow2.f32 %v4113_v59  ;;  %v6844_v9 = vpack.c.bf16 %v7457_v18, %v7456_v29  ;;  %v4117_v42 = vmul.f32 1.442695, %v4111_v38  ;;  %v4119_v58 = vmul.f32 1.442695, %v4112_v49  ;;  %v10646_v59 = vld [vmem:[#allocation61_spill] sm:$0xff]  ;;  %v10648_v29 = vld [vmem:[#allocation64_spill] sm:$0xff] }
 0xa2b   : > { %v7467_v37 = vunpack.i.h.bf16 %v7465_v16  ;;  %v7466_v19 = vunpack.i.l.bf16 %v7465_v16  ;;  %7603 = vpow2.f32 %v4105_v41  ;;  %v3355_v27 = vsel %vm1388_vm0, %v9809_v47, 0.0 }
 0xa2c   : > { %6845 = vmatprep.subr.bf16.mxu0 %v6844_v9  ;;  %7605 = vpow2.f32 %v4107_v25  ;;  %v2579_v8 = vsel %vm1732_vm15, %v9642_v10, 0.0  ;;  %v3346_v26 = vsel %vm1388_vm0, %v9841_v15, 0.0  ;;  %v3358_v47 = vsel %vm1388_vm0, %v9811_v5, 0.0  ;;  %v10649_v25 = vld [vmem:[#allocation65_spill] sm:$0xff] }
 0xa2d   : > { %6847 = vmatpush3.bf16.msra.mxu0 %v6844_v9  ;;  %v6852_v11 = vpack.c.bf16 %v7467_v37, %v7466_v19  ;;  %7607 = vpow2.f32 %v4093_v32  ;;  %v2582_v10 = vsel %vm1732_vm15, %v9649_v43, 0.0  ;;  %v3371_v53 = vsel %vm1732_vm15, %v9851_v21, 0.0  ;;  %v10653_v32 = vld [vmem:[#allocation66_spill] sm:$0xff] }
 0xa2e   : > { %v7470_v23 = vpop.permute.xlu1 %7469  ;;  %6849 = vmatprep.subr.bf16.mxu0 %v6848_v50  ;;  %7609 = vpow2.f32 %v4095_v6  ;;  %v3374_v5 = vsel %vm1732_vm15, %v9858_v46, 0.0  ;;  %v10645_v21 = vmov 0.0   ;;  %v1785_v56 = vsel %vm1388_vm0, %v10646_v59, 0.0 }
 0xa2f   : > { %v7592_v0 = vpop.eup %7591  ;;  %v7472_v4 = vunpack.i.h.bf16 %v7470_v23  ;;  %v7471_v14 = vunpack.i.l.bf16 %v7470_v23  ;;  %7611 = vpow2.f32 %v4117_v42  ;;  %v1797_v61 = vsel %vm1388_vm0, %v10647_v31, 0.0  ;;  %v10657_v42 = vld [vmem:[#allocation72_spill] sm:$0xff] }
 0xa30   : > { %v7594_v3 = vpop.eup %7593  ;;  %v4124_v55 = vsel %vm1388_vm0, %v7592_v0, 0.0  ;;  %7613 = vpow2.f32 %v4119_v58  ;;  %v1788_v16 = vsel %vm1388_vm0, %v10648_v29, 0.0  ;;  %v1800_v9 = vsel %vm1388_vm0, %v10649_v25, 0.0 }
 0xa31   : > { %v10007_v20 = vpop.eup %7595  ;;  %v4136_v35 = vsel %vm1388_vm0, %v7594_v3, 0.0  ;;  %4125 = vadd.xlane.f32.xlu1 %v4124_v55  ;;  %6851 = vmatpush3.bf16.msra.mxu0 %v6848_v50  ;;  %v6856_v57 = vpack.c.bf16 %v7472_v4, %v7471_v14  ;;  %v1813_v50 = vsel %vm1732_vm15, %v10650_v39, 0.0 }
 0xa32   : > { %4137 = vadd.xlane.f32.xlu0 %v4136_v35  ;;  %v7598_v13 = vpop.eup %7597  ;;  %6853 = vmatprep.subr.bf16.mxu0 %v6852_v11  ;;  %v4152_v40 = vsel %vm1732_vm15, %v10007_v20, 0.0  ;;  %v1803_v35 = vsel %vm1388_vm0, %v10653_v32, 0.0 }
 0xa33   : > { %6500 = vmatprep.mubr.msk.f32.mxu0 %vm1388_vm0, %v7598_v13  ;;  %v7600_v44 = vpop.eup %7599  ;;  %v4133_v1 = vsel %vm1388_vm0, %v7598_v13, 0.0 }
 0xa34   : > { %v7602_v24 = vpop.eup %7601  ;;  %6501 = vmatmul.mubr.msk.f32.vlgmr.msra.gmra.mrb[40].mxu0 %vm1388_vm0, %v7594_v3  ;;  %v4121_v54 = vsel %vm1388_vm0, %v7600_v44, 0.0  ;;  %v10652_v3 = vld [vmem:[#allocation63_spill] sm:$0xff] }
 0xa35   : > { %4153 = vadd.xlane.f32.xlu1 %v4152_v40  ;;  %6855 = vmatpush3.bf16.msra.mxu0 %v6852_v11  ;;  %v7604_v60 = vpop.eup %7603  ;;  %v4149_v63 = vsel %vm1732_vm15, %v7602_v24, 0.0  ;;  %v1791_v28 = vsel %vm1388_vm0, %v10652_v3, 0.0  ;;  %v10654_v11 = vld [vmem:[#allocation67_spill] sm:$0xff]  ;;  %v10655_v40 = vld [vmem:[#allocation68_spill] sm:$0xff] }
 0xa36   : > { %4134 = vadd.xlane.f32.xlu0 %v4133_v1  ;;  %6857 = vmatprep.subr.bf16.mxu0 %v6856_v57  ;;  %v7606_v30 = vpop.eup %7605  ;;  %v4139_v36 = vsel %vm1388_vm0, %v7604_v60, 0.0  ;;  %v1794_v4 = vsel %vm1388_vm0, %v10654_v11, 0.0  ;;  %v10656_v1 = vld [vmem:[#allocation71_spill] sm:$0xff] }
 0xa37   : > { %6503 = vmatprep.mubr.msk.f32.mxu0 %vm1388_vm0, %v7604_v60  ;;  %v7608_v51 = vpop.eup %7607  ;;  %v4142_v15 = vsel %vm1388_vm0, %v7606_v30, 0.0 }
 0xa38   : > { %6504 = vmatmul.mubr.msk.f32.gmra.mrb[42].mxu0 %vm1388_vm0, %v7606_v30  ;;  %v7610_v45 = vpop.eup %7609  ;;  %v4127_v34 = vsel %vm1388_vm0, %v7608_v51, 0.0 }
 0xa39   : > { %4122 = vadd.xlane.f32.xlu1 %v4121_v54  ;;  %6859 = vmatpush3.bf16.msra.mxu0 %v6856_v57  ;;  %v7612_v22 = vpop.eup %7611  ;;  %v4130_v43 = vsel %vm1388_vm0, %v7610_v45, 0.0 }
 0xa3a   : > { %4150 = vadd.xlane.f32.xlu0 %v4149_v63  ;;  %6514 = vmatprep.mubr.msk.f32.mxu0 %vm1388_vm0, %v7600_v44  ;;  %v7614_v33 = vpop.eup %7613  ;;  %v4155_v52 = vsel %vm1732_vm15, %v7612_v22, 0.0  ;;  %v1806_v44 = vsel %vm1388_vm0, %v10655_v40, 0.0  ;;  %v1822_v63 = vsel %vm1732_vm15, %v10657_v42, 0.0  ;;  %v10660_v40 = vld [vmem:[#allocation80_spill] sm:$0xff] }
 0xa3b   : > { %6520 = vmatprep.subr.msk.mxu0 %vm2036_vm6, %v4384_v48  ;;  %v4158_v46 = vsel %vm1732_vm15, %v7614_v33, 0.0  ;;  %v4564_v42 = vld [vmem:[#allocation10 + $0x28] sm:$0xff] }
 0xa3c   : > { %6515 = vmatmul.mubr.msk.f32.vlgmr.msra.gmra.mrb[40].mxu0 %vm1388_vm0, %v7592_v0  ;;  %v10651_v0 = vld [vmem:[#allocation70_spill] sm:$0xff] }
 0xa3d   : > { %3356 = vadd.xlane.f32.xlu1 %v3355_v27  ;;  %6517 = vmatprep.mubr.msk.f32.mxu0 %vm1388_vm0, %v7608_v51  ;;  %v1816_v23 = vsel %vm1732_vm15, %v10651_v0, 0.0 }
 0xa3e   : > { %2580 = vadd.xlane.f32.xlu0 %v2579_v8  ;;  %6521 = vmatpush3.msk.msra.mxu0 %vm2036_vm6, %v4384_v48 }
 0xa40   : > { %6518 = vmatmul.mubr.msk.f32.gmra.mrb[42].mxu0 %vm1388_vm0, %v7610_v45 }
 0xa41   : > { %3347 = vadd.xlane.f32.xlu1 %v3346_v26  ;;  %6522 = vmatprep.mubr.msk.f32.mxu0 %vm1732_vm15, %v7602_v24  ;;  %v1819_v24 = vsel %vm1732_vm15, %v10656_v1, 0.0  ;;  %v4560_v1 = vld [vmem:[#allocation10 + $0x8] sm:$0xff] }
 0xa42   : > { %3359 = vadd.xlane.f32.xlu0 %v3358_v47 }
 0xa44   : > { %6523 = vmatmul.mubr.msk.f32.vlgmr.msra.gmra.mrb[40].mxu0 %vm1732_vm15, %v10007_v20 }
 0xa45   : > { %2583 = vadd.xlane.f32.xlu1 %v2582_v10  ;;  %6525 = vmatprep.mubr.msk.f32.mxu0 %vm1732_vm15, %v7612_v22  ;;  %v10658_v22 = vld [vmem:[#allocation78_spill] sm:$0xff] }
 0xa46   : > { %3372 = vadd.xlane.f32.xlu0 %v3371_v53 }
 0xa48   : > { %6526 = vmatmul.mubr.msk.f32.gmra.mrb[42].mxu0 %vm1732_vm15, %v7614_v33 }
 0xa49   : > { %3375 = vadd.xlane.f32.xlu1 %v3374_v5  ;;  %4895 = vmatprep.mubr.f32.mxu0 %v10645_v21 }
 0xa4a   : > { %4143 = vadd.xlane.f32.xlu0 %v4142_v15  ;;  %v10659_v15 = vld [vmem:[#allocation77_spill] sm:$0xff] }
 0xa4d   : > { %4131 = vadd.xlane.f32.xlu1 %v4130_v43 }
 0xa4e   : > { %4140 = vadd.xlane.f32.xlu0 %v4139_v36 }
 0xa51   : > { %4128 = vadd.xlane.f32.xlu1 %v4127_v34 }
 0xa52   : > { %4156 = vadd.xlane.f32.xlu0 %v4155_v52 }
 0xa55   : > { %4159 = vadd.xlane.f32.xlu1 %v4158_v46 }
 0xa56   : > { %1786 = vadd.xlane.f32.xlu0 %v1785_v56 }
 0xa58   : > { %v2547_v18 = vpop.xlane.xlu0 %2546 }
 0xa59   : > { %1798 = vadd.xlane.f32.xlu1 %v1797_v61 }
 0xa5a   : > { %1789 = vadd.xlane.f32.xlu0 %v1788_v16 }
 0xa5c   : > { %v2550_v41 = vpop.xlane.xlu0 %2549 }
 0xa5d   : > { %1801 = vadd.xlane.f32.xlu1 %v1800_v9 }
 0xa5e   : > { %1814 = vadd.xlane.f32.xlu0 %v1813_v50 }
 0xa5f   : > { %v2559_v37 = vpop.xlane.xlu1 %2558 }
 0xa60   : > { %v2562_v19 = vpop.xlane.xlu0 %2561  ;;  %v2569_v14 = vadd.f32 %v2559_v37, %v2547_v18 }
 0xa61   : > { %1817 = vadd.xlane.f32.xlu1 %v1816_v23  ;;  %v2570_v57 = vadd.f32 %v2562_v19, %v2550_v41 }
 0xa62   : > { %1792 = vadd.xlane.f32.xlu0 %v1791_v28 }
 0xa63   : > { %v3351_v55 = vpop.xlane.xlu1 %3350 }
 0xa64   : > { %v3339_v20 = vpop.xlane.xlu0 %3338 }
 0xa65   : > { %1804 = vadd.xlane.f32.xlu1 %v1803_v35  ;;  %v3361_v48 = vadd.f32 %v3351_v55, %v3339_v20 }
 0xa66   : > { %1795 = vadd.xlane.f32.xlu0 %v1794_v4 }
 0xa67   : > { %v3342_v13 = vpop.xlane.xlu1 %3341 }
 0xa68   : > { %v2575_v6 = vpop.xlane.xlu0 %2574 }
 0xa69   : > { %v2585_v38 = vadd.f32 %v2575_v6, %v2569_v14  ;;  %1807 = vadd.xlane.f32.xlu1 %v1806_v44 }
 0xa6a   : > { %1820 = vadd.xlane.f32.xlu0 %v1819_v24  ;;  %v4561_v24 = vld [vmem:[#allocation10 + $0x10] sm:$0xff] }
 0xa6b   : > { %v2578_v49 = vpop.xlane.xlu1 %2577  ;;  %7615 = vrcp.f32 %v2585_v38  ;;  %v4559_v38 = vld [vmem:[#allocation10] sm:$0xff] }
 0xa6c   : > { %v2586_v54 = vadd.f32 %v2578_v49, %v2570_v57  ;;  %v3354_v60 = vpop.xlane.xlu0 %3353  ;;  %v6860_v57 = vpack.c.bf16 %v4560_v1, %v4559_v38  ;;  %v4562_v49 = vld [vmem:[#allocation10 + $0x18] sm:$0xff] }
 0xa6d   : > { %v3362_v30 = vadd.f32 %v3354_v60, %v3342_v13  ;;  %1823 = vadd.xlane.f32.xlu1 %v1822_v63  ;;  %v4563_v60 = vld [vmem:[#allocation10 + $0x20] sm:$0xff] }
 0xa6e   : > { %7617 = vrcp.f32 %v2586_v54  ;;  %v6864_v54 = vpack.c.bf16 %v4562_v49, %v4561_v24  ;;  %6861 = vmatprep.subr.bf16.mxu1 %v6860_v57 }
 0xa6f   : > { %v3370_v58 = vpop.xlane.xlu1 %3369  ;;  %6863 = vmatpush3.bf16.msra.mxu1 %v6860_v57 }
 0xa70   : > { %v3378_v27 = vadd.f32 %v3370_v58, %v3362_v30  ;;  %v3367_v8 = vpop.xlane.xlu0 %3366  ;;  %v10661_v30 = vld [vmem:[#allocation79_spill] sm:$0xff]  ;;  %6865 = vmatprep.subr.bf16.mxu1 %v6864_v54  ;;  %v6868_v58 = vpack.c.bf16 %v4564_v42, %v4563_v60 }
 0xa71   : > { %v3377_v51 = vadd.f32 %v3367_v8, %v3361_v48  ;;  %v4565_v8 = vld [vmem:[#allocation10 + $0x30] sm:$0xff] }
 0xa72   : > { %7619 = vrcp.f32 %v3378_v27 }
 0xa73   : > { %7621 = vrcp.f32 %v3377_v51  ;;  %v2565_v26 = vpop.xlane.xlu1 %2564  ;;  %v4566_v51 = vld [vmem:[#allocation10 + $0x38] sm:$0xff]  ;;  %6867 = vmatpush3.bf16.msra.mxu1 %v6864_v54 }
 0xa74   : > { %v2553_v47 = vpop.xlane.xlu0 %2552  ;;  %6869 = vmatprep.subr.bf16.mxu1 %v6868_v58 }
 0xa75   : > { %v2571_v45 = vadd.f32 %v2565_v26, %v2553_v47  ;;  %v7616_v10 = vpop.eup %7615 }
 0xa76   : > { %v2922_v5 = vmul.f32 %v7616_v10, %v10658_v22  ;;  %v4567_v22 = vld [vmem:[#allocation10 + $0x40] sm:$0xff] }
 0xa77   : > { %v2568_v18 = vpop.xlane.xlu1 %2567  ;;  %6871 = vmatpush3.bf16.msra.mxu1 %v6868_v58 }
 0xa78   : > { %v7618_v53 = vpop.eup %7617  ;;  %v2556_v56 = vpop.xlane.xlu0 %2555 }
 0xa79   : > { %v2924_v33 = vmul.f32 %v7618_v53, %v10659_v15  ;;  %v2572_v28 = vadd.f32 %v2568_v18, %v2556_v56  ;;  %v6872_v53 = vpack.c.bf16 %v4566_v51, %v4565_v8 }
 0xa7b   : > { %v7473_v43 = vpack.i.bf16 %v2924_v33, %v2922_v5  ;;  %v4568_v5 = vld [vmem:[#allocation10 + $0x48] sm:$0xff]  ;;  %6873 = vmatprep.subr.bf16.mxu1 %v6872_v53 }
 0xa7c   : > { %v7620_v36 = vpop.eup %7619  ;;  %v3345_v31 = vpop.xlane.xlu0 %3344  ;;  %v6876_v33 = vpack.c.bf16 %v4568_v5, %v4567_v22  ;;  %6875 = vmatpush3.bf16.msra.mxu1 %v6872_v53  ;;  %v10662_v5 = vld [vmem:[#allocation73_spill] sm:$0xff] }
 0xa7d   : > { %v7622_v34 = vpop.eup %7621  ;;  %v3708_v52 = vmul.f32 %v7620_v36, %v9918_v17  ;;  %v4570_v36 = vld [vmem:[#allocation10 + $0x58] sm:$0xff] }
 0xa7e   : > { %v3706_v46 = vmul.f32 %v7622_v34, %v9920_v2  ;;  %6877 = vmatprep.subr.bf16.mxu1 %v6876_v33 }
 0xa80   : > { %7474 = vrot.lane.b32.xlu0 %v7473_v43, %s8178_s24  ;;  %v7478_v59 = vpack.i.bf16 %v3708_v52, %v3706_v46  ;;  %v4569_v43 = vld [vmem:[#allocation10 + $0x50] sm:$0xff]  ;;  %v4571_v52 = vld [vmem:[#allocation10 + $0x60] sm:$0xff]  ;;  %v4572_v46 = vld [vmem:[#allocation10 + $0x68] sm:$0xff]  ;;  %6879 = vmatpush3.bf16.msra.mxu1 %v6876_v33 }
 0xa81   : > { %v6880_v34 = vpack.c.bf16 %v4570_v36, %v4569_v43  ;;  %v10663_v36 = vld [vmem:[#allocation74_spill] sm:$0xff] }
 0xa82   : > { %7479 = vrot.lane.b32.xlu1 %v7478_v59, %s8177_s19 }
 0xa83   : > { %6881 = vmatprep.subr.bf16.mxu1 %v6880_v34 }
 0xa84   : > { %6883 = vmatpush3.bf16.msra.mxu1 %v6880_v34 }
 0xabe   : > { %v4126_v61 = vpop.xlane.xlu1 %4125 }
 0xabf   : > { %v4138_v29 = vpop.xlane.xlu0 %4137 }
 0xac0   : > { %v4146_v16 = vadd.f32 %v4138_v29, %v4126_v61 }
 0xac2   : > { %v4154_v41 = vpop.xlane.xlu1 %4153 }
 0xac3   : > { %v4135_v25 = vpop.xlane.xlu0 %4134  ;;  %v10085_v9 = vadd.f32 %v4154_v41, %v4146_v16 }
 0xac6   : > { %v4123_v39 = vpop.xlane.xlu1 %4122 }
 0xac7   : > { %v4151_v50 = vpop.xlane.xlu0 %4150  ;;  %v4145_v17 = vadd.f32 %v4135_v25, %v4123_v39  ;;  %v4573_v39 = vld [vmem:[#allocation10 + $0x70] sm:$0xff] }
 0xac9   : > { %v10087_v37 = vadd.f32 %v4151_v50, %v4145_v17  ;;  %v4574_v50 = vld [vmem:[#allocation10 + $0x78] sm:$0xff] }
 0xaca   : > { %v3357_v2 = vpop.xlane.xlu1 %3356  ;;  %v6888_v17 = vpack.c.bf16 %v4574_v50, %v4573_v39 }
 0xacb   : > { %v2581_v19 = vpop.xlane.xlu0 %2580  ;;  %v3363_v55 = vadd.f32 %v3357_v2, %v3345_v31 }
 0xacc   : > { %v2587_v0 = vadd.f32 %v2581_v19, %v2571_v45 }
 0xace   : > { %7623 = vrcp.f32 %v2587_v0  ;;  %v3348_v23 = vpop.xlane.xlu1 %3347 }
 0xacf   : > { %v3360_v3 = vpop.xlane.xlu0 %3359 }
 0xad0   : > { %v3364_v4 = vadd.f32 %v3360_v3, %v3348_v23 }
 0xad2   : > { %v2584_v20 = vpop.xlane.xlu1 %2583 }
 0xad3   : > { %v3373_v32 = vpop.xlane.xlu0 %3372  ;;  %v2588_v35 = vadd.f32 %v2584_v20, %v2572_v28 }
 0xad4   : > { %v3379_v11 = vadd.f32 %v3373_v32, %v3363_v55 }
 0xad5   : > { %7625 = vrcp.f32 %v2588_v35 }
 0xad6   : > { %v3376_v14 = vpop.xlane.xlu1 %3375  ;;  %7627 = vrcp.f32 %v3379_v11 }
 0xad7   : > { %v3380_v13 = vadd.f32 %v3376_v14, %v3364_v4  ;;  %v4144_v59 = vpop.xlane.xlu0 %4143 }
 0xad8   : > { %v7624_v6 = vpop.eup %7623 }
 0xad9   : > { %7629 = vrcp.f32 %v3380_v13  ;;  %v10090_v44 = vmul.f32 %v7624_v6, %v10660_v40 }
 0xada   : > { %7631 = vrcp.f32 %v10085_v9 }
 0xadb   : > { %v4141_v18 = vpop.xlane.xlu0 %4140  ;;  %7633 = vrcp.f32 %v10087_v37 }
 0xadf   : > { %v7626_v63 = vpop.eup %7625  ;;  %v4157_v16 = vpop.xlane.xlu0 %4156 }
 0xae0   : > { %v10093_v48 = vmul.f32 %v7626_v63, %v10661_v30  ;;  %v7628_v27 = vpop.eup %7627 }
 0xae1   : > { %v3710_v45 = vmul.f32 %v7628_v27, %v9928_v12  ;;  %v4132_v12 = vpop.xlane.xlu1 %4131 }
 0xae2   : > { %v7488_v26 = vpack.i.bf16 %v10093_v48, %v10090_v44  ;;  %v4148_v29 = vadd.f32 %v4144_v59, %v4132_v12 }
 0xae3   : > { %v7630_v47 = vpop.eup %7629  ;;  %v1787_v14 = vpop.xlane.xlu0 %1786 }
 0xae4   : > { %v3712_v10 = vmul.f32 %v7630_v47, %v9926_v62  ;;  %v6884_v62 = vpack.c.bf16 %v4572_v46, %v4571_v52  ;;  %v7632_v2 = vpop.eup %7631 }
 0xae5   : > { %v4129_v56 = vpop.xlane.xlu1 %4128  ;;  %v7634_v0 = vpop.eup %7633 }
 0xae6   : > { %v7493_v15 = vpack.i.bf16 %v3712_v10, %v3710_v45  ;;  %6885 = vmatprep.subr.bf16.mxu1 %v6884_v62  ;;  %v4147_v31 = vadd.f32 %v4141_v18, %v4129_v56 }
 0xae7   : > { %6887 = vmatpush3.bf16.msra.mxu1 %v6884_v62  ;;  %v1790_v6 = vpop.xlane.xlu0 %1789 }
 0xae8   : > { %7494 = vrot.lane.b32.xlu0 %v7493_v15, %s8177_s19  ;;  %v4163_v25 = vadd.f32 %v4157_v16, %v4147_v31  ;;  %6889 = vmatprep.subr.bf16.mxu1 %v6888_v17  ;;  %s5490_s19 = sshll.u32 %s8965_s0, 4  ;;  %s10291_s19 = int_to_ptr.vmem [resolvable:$true] %s5490_s19 }
 0xae9   : > { %v4160_v61 = vpop.xlane.xlu1 %4159  ;;  %s7907_s0 = scalar_lea.vmem %s10291_s19, 512 }
 0xaea   : > { %v4164_v41 = vadd.f32 %v4160_v61, %v4148_v29  ;;  %p7908_p11 = scmp.ne.s32.totalorder %s10291_s19, %s7907_s0 }
 0xaeb   : > { %6891 = vmatpush3.bf16.msra.mxu1 %v6888_v17  ;;  %v1815_v44 = vpop.xlane.xlu0 %1814  ;;  %v10664_v17 = vld [vmem:[#allocation76_spill] sm:$0xff] }
 0xaec   : > { %7635 = vrcp.f32 %v4164_v41 }
 0xaed   : > { %7637 = vrcp.f32 %v4163_v25  ;;  %v1799_v13 = vpop.xlane.xlu1 %1798 }
 0xaee   : > { %v1809_v60 = vadd.f32 %v1799_v13, %v1787_v14  ;;  %v4704_v14 = vld [vmem:[#allocation15 + $0x8] sm:$0xff]  ;;  %v4710_v13 = vld [vmem:[#allocation15 + $0x38] sm:$0xff] }
 0xaef   : > { %v1793_v1 = vpop.xlane.xlu0 %1792 }
 0xaf0   : > { %v1825_v63 = vadd.f32 %v1815_v44, %v1809_v60  ;;  %v4709_v44 = vld [vmem:[#allocation15 + $0x30] sm:$0xff]  ;;  %v4716_v60 = vld [vmem:[#allocation15 + $0x68] sm:$0xff] }
 0xaf1   : > { %v1802_v40 = vpop.xlane.xlu1 %1801 }
 0xaf2   : > { %v1810_v57 = vadd.f32 %v1802_v40, %v1790_v6  ;;  %v4703_v6 = vld [vmem:[#allocation15] sm:$0xff]  ;;  %v6892_v40 = vpack.c.bf16 %v4710_v13, %v4704_v14 }
 0xaf3   : > { %v1796_v49 = vpop.xlane.xlu0 %1795 }
 0xaf4   : > { %6893 = vmatprep.subr.bf16.mxu0 %v6892_v40  ;;  %v4758_v40 = vld [vmem:[#allocation15 + $0x1b8] sm:$0xff] }
 0xaf5   : > { %v1818_v38 = vpop.xlane.xlu1 %1817 }
 0xaf6   : > { %v7636_v55 = vpop.eup %7635  ;;  %v1826_v42 = vadd.f32 %v1818_v38, %v1810_v57  ;;  %v4706_v38 = vld [vmem:[#allocation15 + $0x18] sm:$0xff] }
 0xaf7   : > { %v7638_v32 = vpop.eup %7637  ;;  %v1821_v30 = vpop.xlane.xlu0 %1820 }
 0xaf8   : > { %7639 = vrcp.f32 %v1826_v42 }
 0xaf9   : > { %v1805_v24 = vpop.xlane.xlu1 %1804  ;;  %7641 = vrcp.f32 %v1825_v63  ;;  %v4722_v63 = vld [vmem:[#allocation15 + $0x98] sm:$0xff] }
 0xafa   : > { %v1811_v48 = vadd.f32 %v1805_v24, %v1793_v1  ;;  %v4712_v1 = vld [vmem:[#allocation15 + $0x48] sm:$0xff]  ;;  %v6894_v24 = vpack.c.bf16 %v4709_v44, %v4703_v6 }
 0xafb   : > { %v7475_v47 = vpop.permute.xlu0 %7474  ;;  %v6924_v57 = vpack.c.bf16 %v4712_v1, %v4706_v38  ;;  %v4752_v6 = vld [vmem:[#allocation15 + $0x188] sm:$0xff]  ;;  %v4751_v38 = vld [vmem:[#allocation15 + $0x180] sm:$0xff]  ;;  %v4757_v1 = vld [vmem:[#allocation15 + $0x1b0] sm:$0xff] }
 0xafc   : > { %v1827_v8 = vadd.f32 %v1821_v30, %v1811_v48  ;;  %v7477_v53 = vunpack.i.h.bf16 %v7475_v47  ;;  %v7476_v22 = vunpack.i.l.bf16 %v7475_v47  ;;  %v4715_v30 = vld [vmem:[#allocation15 + $0x60] sm:$0xff]  ;;  %v4721_v48 = vld [vmem:[#allocation15 + $0x90] sm:$0xff]  ;;  %6895 = vmatpush1.bf16.msra.mxu0 %v6894_v24  ;;  %v6908_v44 = vpack.c.bf16 %v4758_v40, %v4752_v6  ;;  %v4754_v24 = vld [vmem:[#allocation15 + $0x198] sm:$0xff] }
 0xafd   : > { %v1808_v54 = vpop.xlane.xlu1 %1807  ;;  %6925 = vmatprep.subr.bf16.mxu1 %v6924_v57  ;;  %v6910_v57 = vpack.c.bf16 %v4757_v1, %v4751_v38 }
 0xafe   : > { %v1812_v27 = vadd.f32 %v1808_v54, %v1796_v49  ;;  %7643 = vrcp.f32 %v1827_v8  ;;  %v4705_v49 = vld [vmem:[#allocation15 + $0x10] sm:$0xff]  ;;  %v4711_v54 = vld [vmem:[#allocation15 + $0x40] sm:$0xff]  ;;  %v4718_v8 = vld [vmem:[#allocation15 + $0x78] sm:$0xff] }
 0xaff   : > { %v6926_v42 = vpack.c.bf16 %v4711_v54, %v4705_v49  ;;  %v4760_v49 = vld [vmem:[#allocation15 + $0x1c8] sm:$0xff]  ;;  %v4753_v54 = vld [vmem:[#allocation15 + $0x190] sm:$0xff] }
 0xb01   : > { %v1824_v58 = vpop.xlane.xlu1 %1823 }
 0xb02   : > { %v1828_v51 = vadd.f32 %v1824_v58, %v1812_v27  ;;  %v6896_v58 = vpack.c.bf16 %v4722_v63, %v4716_v60  ;;  %v6898_v27 = vpack.c.bf16 %v4721_v48, %v4715_v30  ;;  %v4759_v60 = vld [vmem:[#allocation15 + $0x1c0] sm:$0xff]  ;;  %v4764_v30 = vld [vmem:[#allocation15 + $0x1e8] sm:$0xff]  ;;  %v4770_v48 = vld [vmem:[#allocation15 + $0x218] sm:$0xff] }
 0xb03   : > { %v6942_v63 = vpack.c.bf16 %v4759_v60, %v4753_v54  ;;  %v5918_v60 = vld [vmem:[%s10666_s17] ss:$0 sm:$0xff]  ;;  %s7911_s17 = sshll.u32 %s8179_s28, 4  ;;  %s7912_s17 = int_to_ptr.vmem [resolvable:$false] %s7911_s17 }
 0xb04   : > { %7645 = vrcp.f32 %v1828_v51  ;;  %v4724_v51 = vld [vmem:[#allocation15 + $0xa8] sm:$0xff]  ;;  %6897 = vmatprep.subr.bf16.mxu0 %v6896_v58  ;;  %v6912_v58 = vpack.c.bf16 %v4770_v48, %v4764_v30  ;;  %s7913_s3 = scalar_lea.vmem %s7912_s17, 1024  ;;  %p7914_p5 = scmp.lt.s32.totalorder %s10291_s19, %s7912_s17 }
 0xb05   : > { %v7480_v45 = vpop.permute.xlu1 %7479  ;;  %v6928_v47 = vpack.c.bf16 %v4724_v51, %v4718_v8  ;;  %6899 = vmatpush1.bf16.msra.mxu0 %v6898_v27  ;;  %v4763_v27 = vld [vmem:[#allocation15 + $0x1e0] sm:$0xff]  ;;  %v4769_v8 = vld [vmem:[#allocation15 + $0x210] sm:$0xff]  ;;  %v4766_v51 = vld [vmem:[#allocation15 + $0x1f8] sm:$0xff]  ;;  %p7915_p0 = scmp.lt.s32.totalorder %s7913_s3, %s7907_s0 }
 0xb06   : > { %v7482_v33 = vunpack.i.h.bf16 %v7480_v45  ;;  %v7481_v43 = vunpack.i.l.bf16 %v7480_v45  ;;  %v4723_v45 = vld [vmem:[#allocation15 + $0xa0] sm:$0xff] }
 0xb07   : > { %p7916_p13 = por %p7915_p0, %p7914_p5 }
 0xb17   : > { %v6524_v19 = vpop.f32.mrb[40].mxu0 }
 0xb18   : > { %v4492_v23 = vmul.f32 %v7632_v2, %v6524_v19  ;;  %v4466_v3 = vpop.f32.mrb[41].mxu0  ;;  %v10665_v19 = vld [vmem:[#allocation75_spill] sm:$0xff] }
 0xb19   : > { %v4490_v28 = vmul.f32 %v7634_v0, %v4466_v3 }
 0xb1b   : > { %v7483_v9 = vpack.i.bf16 %v4492_v23, %v4490_v28  ;;  %v6527_v20 = vpop.f32.mrb[42].mxu0 }
 0xb1c   : > { %v4496_v35 = vmul.f32 %v7636_v55, %v6527_v20  ;;  %v4476_v37 = vpop.f32.mrb[43].mxu0 }
 0xb1d   : > { %v4494_v11 = vmul.f32 %v7638_v32, %v4476_v37  ;;  %7484 = vrot.lane.b32.xlu1 %v7483_v9, %s8176_s18 }
 0xb1f   : > { %v7498_v4 = vpack.i.bf16 %v4496_v35, %v4494_v11 }
 0xb21   : > { %7489 = vrot.lane.b32.xlu1 %v7488_v26, %s8178_s24  ;;  %v7640_v26 = vpop.eup %7639  ;;  %s10293_s24 = sadd.s32 %s7090_s27, %s5922_s5 }
 0xb22   : > { %v7642_v10 = vpop.eup %7641  ;;  %v2132_v15 = vmul.f32 %v7640_v26, %v10662_v5  ;;  %v4717_v26 = vld [vmem:[#allocation15 + $0x70] sm:$0xff]  ;;  %s5923_s16 = sshll.u32 %s10293_s24, 7 }
 0xb23   : > { %v2130_v34 = vmul.f32 %v7642_v10, %v10663_v36  ;;  %v7644_v46 = vpop.eup %7643  ;;  %v4728_v10 = vld [vmem:[#allocation15 + $0xc8] sm:$0xff] }
 0xb24   : > { %v4546_v62 = vsel %vm1388_vm0, %v2132_v15, %v7477_v53  ;;  %v7646_v18 = vpop.eup %7645  ;;  %v2134_v2 = vmul.f32 %v7644_v46, %v10664_v17  ;;  %v4734_v53 = vld [vmem:[#allocation15 + $0xf8] sm:$0xff]  ;;  %v4727_v15 = vld [vmem:[#allocation15 + $0xc0] sm:$0xff]  ;;  %v4736_v36 = vld [vmem:[#allocation15 + $0x108] sm:$0xff] }
 0xb25   : > { %7499 = vrot.lane.b32.xlu1 %v7498_v4, %s8176_s18  ;;  %v4545_v56 = vsel %vm1388_vm0, %v2130_v34, %v7476_v22  ;;  %v4551_v31 = vsel %vm4549_vm1, %v4546_v62, %v7482_v33  ;;  %v2136_v0 = vmul.f32 %v7646_v18, %v10665_v19  ;;  %v6930_v22 = vpack.c.bf16 %v4723_v45, %v4717_v26  ;;  %v4733_v33 = vld [vmem:[#allocation15 + $0xf0] sm:$0xff]  ;;  %v7681_v19 = vld [vmem:[%s8767_s30 + $0x10] sm:$0xff]  ;;  %s10669_s18 = sld [smem:[#allocation58_spill]] }
 0xb26   : > { %v4550_v61 = vsel %vm4549_vm1, %v4545_v56, %v7481_v43  ;;  %v6900_v5 = vpack.c.bf16 %v4734_v53, %v4728_v10  ;;  %v4730_v43 = vld [vmem:[#allocation15 + $0xd8] sm:$0xff]  ;;  %v4729_v34 = vld [vmem:[#allocation15 + $0xd0] sm:$0xff]  ;;  %v6902_v46 = vpack.c.bf16 %v4733_v33, %v4727_v15  ;;  %v6914_v26 = vpack.c.bf16 %v4769_v8, %v4763_v27  ;;  %v4771_v10 = vld [vmem:[#allocation15 + $0x220] sm:$0xff] }
 0xb27   : > { %v6932_v62 = vpack.c.bf16 %v4736_v36, %v4730_v43  ;;  %v4765_v45 = vld [vmem:[#allocation15 + $0x1f0] sm:$0xff]  ;;  %v4782_v15 = vld [vmem:[#allocation15 + $0x278] sm:$0xff]  ;;  %v4775_v43 = vld [vmem:[#allocation15 + $0x240] sm:$0xff] }
 0xb28   : > { %6901 = vmatprep.subr.bf16.mxu0 %v6900_v5  ;;  %v4776_v5 = vld [vmem:[#allocation15 + $0x248] sm:$0xff]  ;;  %v4781_v36 = vld [vmem:[#allocation15 + $0x270] sm:$0xff] }
 0xb29   : > { %6903 = vmatpush1.bf16.msra.mxu0 %v6902_v46  ;;  %v6916_v33 = vpack.c.bf16 %v4782_v15, %v4776_v5  ;;  %v4784_v46 = vld [vmem:[#allocation15 + $0x288] sm:$0xff]  ;;  %v4731_v5 = vld [vmem:[#allocation15 + $0xe0] sm:$0xff]  ;;  %v4737_v15 = vld [vmem:[#allocation15 + $0x110] sm:$0xff] }
 0xb2b   : > { %p10671_p6 = scmp.ne.s32.totalorder %s10669_s18, 0 }
 0xb2d   : > { %p7909_p7 = pnand %p7908_p11, %p10671_p6 }
 0xb2f   : > { %p7910_p3 = pneg %p7909_p7 }
 0xb31   : > { %p7917_p9 = pnand %p7916_p13, %p7910_p3 }
 0xb5a   : > { %v7495_v25 = vpop.permute.xlu0 %7494 }
 0xb5b   : > { %v7497_v28 = vunpack.i.h.bf16 %v7495_v25  ;;  %v7496_v55 = vunpack.i.l.bf16 %v7495_v25 }
 0xb8f   : > { %v7485_v52 = vpop.permute.xlu1 %7484 }
 0xb90   : > { %v7487_v12 = vunpack.i.h.bf16 %v7485_v52  ;;  %v7486_v59 = vunpack.i.l.bf16 %v7485_v52  ;;  %v4735_v52 = vld [vmem:[#allocation15 + $0x100] sm:$0xff] }
 0xb91   : > { %v6934_v56 = vpack.c.bf16 %v4735_v52, %v4729_v34  ;;  %v4778_v34 = vld [vmem:[#allocation15 + $0x258] sm:$0xff]  ;;  %v6918_v52 = vpack.c.bf16 %v4781_v36, %v4775_v43  ;;  %v4744_v43 = vld [vmem:[#allocation15 + $0x148] sm:$0xff] }
 0xb92   : > { %v4555_v29 = vsel %vm4554_vm2, %v4550_v61, %v7486_v59  ;;  %v4556_v16 = vsel %vm4554_vm2, %v4551_v31, %v7487_v12  ;;  %v4740_v12 = vld [vmem:[#allocation15 + $0x128] sm:$0xff]  ;;  %v4746_v59 = vld [vmem:[#allocation15 + $0x158] sm:$0xff] }
 0xb93   : > { %v7490_v41 = vpop.permute.xlu1 %7489  ;;  %6560 = vmatprep.mubr.f32.mxu1 %v4555_v29  ;;  %v6904_v18 = vpack.c.bf16 %v4746_v59, %v4740_v12  ;;  %v7679_v61 = vld [vmem:[%s8767_s30 + $0x8] sm:$0xff]  ;;  %v4783_v12 = vld [vmem:[#allocation15 + $0x280] sm:$0xff]  ;;  %v6948_v59 = vpack.c.bf16 %v4784_v46, %v4778_v34 }
 0xb94   : > { %v7492_v39 = vunpack.i.h.bf16 %v7490_v41  ;;  %v7491_v50 = vunpack.i.l.bf16 %v7490_v41  ;;  %6561 = vmatmul.mubr.f32.vlgmr.msra.gmra.mrb[44].mxu1 %v4556_v16  ;;  %v7680_v41 = vld [vmem:[%s8767_s30] sm:$0xff]  ;;  %v4750_v36 = vld [vmem:[#allocation15 + $0x178] sm:$0xff] }
 0xb95   : > { %6927 = vmatpush1.bf16.msra.mxu1 %v6926_v42  ;;  %6905 = vmatprep.subr.bf16.mxu0 %v6904_v18  ;;  %v6940_v42 = vpack.c.bf16 %v4760_v49, %v4754_v24  ;;  %v4788_v18 = vld [vmem:[#allocation15 + $0x2a8] sm:$0xff]  ;;  %v4707_v24 = vld [vmem:[#allocation15 + $0x20] sm:$0xff] }
 0xb96   : > { %v4547_v23 = vsel %vm1388_vm0, %v2134_v2, %v7491_v50  ;;  %v4548_v3 = vsel %vm1388_vm0, %v2136_v0, %v7492_v39  ;;  %6929 = vmatprep.subr.bf16.mxu1 %v6928_v47  ;;  %v4772_v47 = vld [vmem:[#allocation15 + $0x228] sm:$0xff] }
 0xb97   : > { %v7500_v9 = vpop.permute.xlu1 %7499  ;;  %v4552_v35 = vsel %vm4549_vm1, %v4547_v23, %v7496_v55  ;;  %v4553_v37 = vsel %vm4549_vm1, %v4548_v3, %v7497_v28  ;;  %v7682_v23 = vld [vmem:[%s8767_s30 + $0x18] sm:$0xff]  ;;  %v6944_v53 = vpack.c.bf16 %v4772_v47, %v4766_v51  ;;  %s10301_s30 = scalar_lea.hbm %s10670_s15, %s5923_s16 }
 0xb98   : > { %v7502_v20 = vunpack.i.h.bf16 %v7500_v9  ;;  %v7501_v32 = vunpack.i.l.bf16 %v7500_v9  ;;  %v4739_v9 = vld [vmem:[#allocation15 + $0x120] sm:$0xff]  ;;  %v4732_v47 = vld [vmem:[#allocation15 + $0xe8] sm:$0xff] }
 0xb99   : > { %6931 = vmatpush1.bf16.msra.mxu1 %v6930_v22  ;;  %v6946_v22 = vpack.c.bf16 %v4771_v10, %v4765_v45  ;;  %v4719_v51 = vld [vmem:[#allocation15 + $0x80] sm:$0xff]  ;;  %v4738_v45 = vld [vmem:[#allocation15 + $0x118] sm:$0xff] }
 0xb9a   : > { %v4557_v11 = vsel %vm4554_vm2, %v4552_v35, %v7501_v32  ;;  %v4558_v4 = vsel %vm4554_vm2, %v4553_v37, %v7502_v20  ;;  %6933 = vmatprep.subr.bf16.mxu1 %v6932_v62  ;;  %v4745_v20 = vld [vmem:[#allocation15 + $0x150] sm:$0xff]  ;;  %v4742_v32 = vld [vmem:[#allocation15 + $0x138] sm:$0xff]  ;;  %v4748_v37 = vld [vmem:[#allocation15 + $0x168] sm:$0xff] }
 0xb9b   : > { %6563 = vmatprep.mubr.f32.mxu1 %v4557_v11  ;;  %v6906_v35 = vpack.c.bf16 %v4745_v20, %v4739_v9  ;;  %v4741_v11 = vld [vmem:[#allocation15 + $0x130] sm:$0xff]  ;;  %v6936_v14 = vpack.c.bf16 %v4748_v37, %v4742_v32  ;;  %v4714_v9 = vld [vmem:[#allocation15 + $0x58] sm:$0xff] }
 0xb9c   : > { %6564 = vmatmul.mubr.f32.gmra.mrb[46].mxu1 %v4558_v4  ;;  %v4747_v4 = vld [vmem:[#allocation15 + $0x160] sm:$0xff]  ;;  %v4777_v62 = vld [vmem:[#allocation15 + $0x250] sm:$0xff] }
 0xb9d   : > { %4984 = vmatprep.mubr.f32.mxu1 %v10645_v21  ;;  %6935 = vmatpush1.bf16.msra.mxu1 %v6934_v56  ;;  %v6938_v13 = vpack.c.bf16 %v4747_v4, %v4741_v11  ;;  %v6950_v56 = vpack.c.bf16 %v4783_v12, %v4777_v62  ;;  %v6968_v62 = vpack.c.bf16 %v4750_v36, %v4744_v43  ;;  %v4743_v12 = vld [vmem:[#allocation15 + $0x140] sm:$0xff]  ;;  %v5240_v36 = vld [vmem:[#allocation16 + $0xb0] sm:$0xff] }
 0xb9e   : > { %6907 = vmatpush1.bf16.msra.mxu0 %v6906_v35  ;;  %6937 = vmatprep.subr.bf16.mxu1 %v6936_v14 }
 0xb9f   : > { %6909 = vmatprep.subr.bf16.mxu0 %v6908_v44 }
 0xba1   : > { %6939 = vmatpush1.bf16.msra.mxu1 %v6938_v13 }
 0xba2   : > { %6911 = vmatpush1.bf16.msra.mxu0 %v6910_v57  ;;  %6941 = vmatprep.subr.bf16.mxu1 %v6940_v42  ;;  %v4713_v57 = vld [vmem:[#allocation15 + $0x50] sm:$0xff]  ;;  %v4720_v42 = vld [vmem:[#allocation15 + $0x88] sm:$0xff] }
 0xba3   : > { %6913 = vmatprep.subr.bf16.mxu0 %v6912_v58  ;;  %v6958_v48 = vpack.c.bf16 %v4713_v57, %v4707_v24  ;;  %v5234_v24 = vld [vmem:[#allocation16 + $0x80] sm:$0xff]  ;;  %v5235_v57 = vld [vmem:[#allocation16 + $0x88] sm:$0xff] }
 0xba5   : > { %6943 = vmatpush1.bf16.msra.mxu1 %v6942_v63  ;;  %v4726_v63 = vld [vmem:[#allocation15 + $0xb8] sm:$0xff] }
 0xba6   : > { %6915 = vmatpush1.bf16.msra.mxu0 %v6914_v26  ;;  %6945 = vmatprep.subr.bf16.mxu1 %v6944_v53  ;;  %v6960_v27 = vpack.c.bf16 %v4726_v63, %v4720_v42  ;;  %v4725_v26 = vld [vmem:[#allocation15 + $0xb0] sm:$0xff] }
 0xba7   : > { %6917 = vmatprep.subr.bf16.mxu0 %v6916_v33  ;;  %v6962_v10 = vpack.c.bf16 %v4725_v26, %v4719_v51  ;;  %v5236_v63 = vld [vmem:[#allocation16 + $0x90] sm:$0xff]  ;;  %v5221_v51 = vld [vmem:[#allocation16 + $0x18] sm:$0xff] }
 0xba9   : > { %6947 = vmatpush1.bf16.msra.mxu1 %v6946_v22  ;;  %v6964_v22 = vpack.c.bf16 %v4738_v45, %v4732_v47  ;;  %v5239_v45 = vld [vmem:[#allocation16 + $0xa8] sm:$0xff] }
 0xbaa   : > { %6919 = vmatpush1.bf16.msra.mxu0 %v6918_v52  ;;  %6949 = vmatprep.subr.bf16.mxu1 %v6948_v59  ;;  %v6966_v52 = vpack.c.bf16 %v4737_v15, %v4731_v5  ;;  %v4749_v59 = vld [vmem:[#allocation15 + $0x170] sm:$0xff]  ;;  %v5222_v5 = vld [vmem:[#allocation16 + $0x20] sm:$0xff]  ;;  %v5223_v15 = vld [vmem:[#allocation16 + $0x28] sm:$0xff] }
 0xbab   : > { %v6998_v43 = vpack.c.bf16 %v5223_v15, %v5222_v5 }
 0xbad   : > { %6951 = vmatpush1.bf16.msra.mxu1 %v6950_v56 }
 0xc67   : > { %v6562_v31 = vpop.f32.mrb[44].mxu1 }
 0xc68   : > { %v10123_v29 = vadd.f32 %v7679_v61, %v6562_v31  ;;  %v4641_v16 = vpop.f32.mrb[45].mxu1  ;;  %v4794_v31 = vld [vmem:[#allocation15 + $0x2d8] sm:$0xff] }
 0xc69   : > { %v10126_v25 = vadd.f32 %v7680_v41, %v4641_v16  ;;  %v6920_v61 = vpack.c.bf16 %v4794_v31, %v4788_v18  ;;  %v4787_v16 = vld [vmem:[#allocation15 + $0x2a0] sm:$0xff]  ;;  %v4793_v41 = vld [vmem:[#allocation15 + $0x2d0] sm:$0xff]  ;;  %v4756_v18 = vld [vmem:[#allocation15 + $0x1a8] sm:$0xff] }
 0xc6a   : > { %v4666_v39 = vmul.f32 %v10123_v29, %v10123_v29  ;;  %v4762_v31 = vld [vmem:[#allocation15 + $0x1d8] sm:$0xff] }
 0xc6b   : > { %v4665_v50 = vmul.f32 %v10126_v25, %v10126_v25  ;;  %6921 = vmatprep.subr.bf16.mxu0 %v6920_v61 }
 0xc6c   : > { %4671 = vadd.xlane.f32.xlu1 %v4666_v39  ;;  %v4790_v39 = vld [vmem:[#allocation15 + $0x2b8] sm:$0xff] }
 0xc6d   : > { %4669 = vadd.xlane.f32.xlu0 %v4665_v50  ;;  %v6922_v50 = vpack.c.bf16 %v4793_v41, %v4787_v16  ;;  %v6970_v16 = vpack.c.bf16 %v4749_v59, %v4743_v12  ;;  %v5224_v12 = vld [vmem:[#allocation16 + $0x30] sm:$0xff]  ;;  %v5225_v59 = vld [vmem:[#allocation16 + $0x38] sm:$0xff] }
 0xc6f   : > { %v6565_v17 = vpop.f32.mrb[46].mxu1  ;;  %6923 = vmatpush1.bf16.msra.mxu0 %v6922_v50  ;;  %v4755_v50 = vld [vmem:[#allocation15 + $0x1a0] sm:$0xff] }
 0xc70   : > { %v4651_v2 = vpop.f32.mrb[47].mxu1  ;;  %v10136_v3 = vadd.f32 %v7682_v23, %v6565_v17  ;;  %v4796_v17 = vld [vmem:[#allocation15 + $0x2e8] sm:$0xff] }
 0xc71   : > { %v10133_v0 = vadd.f32 %v7681_v19, %v4651_v2  ;;  %v4789_v2 = vld [vmem:[#allocation15 + $0x2b0] sm:$0xff]  ;;  %v4795_v19 = vld [vmem:[#allocation15 + $0x2e0] sm:$0xff]  ;;  %v6952_v23 = vpack.c.bf16 %v4796_v17, %v4790_v39  ;;  %v6972_v39 = vpack.c.bf16 %v4762_v31, %v4756_v18  ;;  %v7002_v18 = vpack.c.bf16 %v5225_v59, %v5224_v12 }
 0xc72   : > { %v4668_v55 = vmul.f32 %v10136_v3, %v10136_v3  ;;  %v4761_v17 = vld [vmem:[#allocation15 + $0x1d0] sm:$0xff]  ;;  %v5242_v31 = vld [vmem:[#allocation16 + $0xc0] sm:$0xff] }
 0xc73   : > { %v4667_v28 = vmul.f32 %v10133_v0, %v10133_v0  ;;  %6953 = vmatprep.subr.bf16.mxu1 %v6952_v23  ;;  %v6974_v23 = vpack.c.bf16 %v4761_v17, %v4755_v50  ;;  %v5226_v50 = vld [vmem:[#allocation16 + $0x40] sm:$0xff]  ;;  %v5227_v17 = vld [vmem:[#allocation16 + $0x48] sm:$0xff] }
 0xc75   : > { %4673 = vadd.xlane.f32.xlu0 %v4667_v28  ;;  %v6954_v28 = vpack.c.bf16 %v4795_v19, %v4789_v2  ;;  %v4768_v2 = vld [vmem:[#allocation15 + $0x208] sm:$0xff]  ;;  %v4774_v19 = vld [vmem:[#allocation15 + $0x238] sm:$0xff] }
 0xc77   : > { %6955 = vmatpush1.bf16.msra.mxu1 %v6954_v28  ;;  %v6976_v28 = vpack.c.bf16 %v4774_v19, %v4768_v2  ;;  %v7006_v19 = vpack.c.bf16 %v5227_v17, %v5226_v50 }
 0xc79   : > { %4675 = vadd.xlane.f32.xlu0 %v4668_v55  ;;  %v4708_v55 = vld [vmem:[#allocation15 + $0x28] sm:$0xff] }
 0xc7a   : > { %v6956_v20 = vpack.c.bf16 %v4714_v9, %v4708_v55  ;;  %v4767_v55 = vld [vmem:[#allocation15 + $0x200] sm:$0xff]  ;;  %v4773_v9 = vld [vmem:[#allocation15 + $0x230] sm:$0xff] }
 0xc7c   : > { %6957 = vmatprep.subr.bf16.mxu0 %v6956_v20  ;;  %v4780_v20 = vld [vmem:[#allocation15 + $0x268] sm:$0xff] }
 0xcf9   : > { %v4672_v32 = vpop.xlane.xlu1 %4671 }
 0xcfa   : > { %v4678_v35 = vmul.f32 0.0078125, %v4672_v32  ;;  %v4670_v37 = vpop.xlane.xlu0 %4669  ;;  %v4786_v32 = vld [vmem:[#allocation15 + $0x298] sm:$0xff] }
 0xcfb   : > { %v4677_v11 = vmul.f32 0.0078125, %v4670_v37  ;;  %v6980_v37 = vpack.c.bf16 %v4786_v32, %v4780_v20  ;;  %v5259_v20 = vld [vmem:[#allocation16 + $0x148] sm:$0xff]  ;;  %v5228_v32 = vld [vmem:[#allocation16 + $0x50] sm:$0xff] }
 0xcfc   : > { %v4682_v4 = vadd.f32 1.1920929e-07, %v4678_v35  ;;  %v6978_v35 = vpack.c.bf16 %v4773_v9, %v4767_v55  ;;  %v5258_v55 = vld [vmem:[#allocation16 + $0x140] sm:$0xff] }
 0xcfd   : > { %v4681_v14 = vadd.f32 1.1920929e-07, %v4677_v11  ;;  %v4779_v11 = vld [vmem:[#allocation15 + $0x260] sm:$0xff] }
 0xcfe   : > { %7647 = vrsqrt.f32 %v4682_v4  ;;  %v4785_v4 = vld [vmem:[#allocation15 + $0x290] sm:$0xff] }
 0xcff   : > { %7649 = vrsqrt.f32 %v4681_v14  ;;  %v4792_v14 = vld [vmem:[#allocation15 + $0x2c8] sm:$0xff] }
 0xd02   : > { %v4674_v13 = vpop.xlane.xlu0 %4673 }
 0xd03   : > { %v4679_v6 = vmul.f32 0.0078125, %v4674_v13  ;;  %v4798_v13 = vld [vmem:[#allocation15 + $0x2f8] sm:$0xff] }
 0xd05   : > { %v4683_v40 = vadd.f32 1.1920929e-07, %v4679_v6  ;;  %v6982_v6 = vpack.c.bf16 %v4785_v4, %v4779_v11  ;;  %v5246_v4 = vld [vmem:[#allocation16 + $0xe0] sm:$0xff] }
 0xd06   : > { %v4676_v44 = vpop.xlane.xlu0 %4675 }
 0xd07   : > { %7651 = vrsqrt.f32 %v4683_v40  ;;  %v4680_v38 = vmul.f32 0.0078125, %v4676_v44  ;;  %v6984_v40 = vpack.c.bf16 %v4798_v13, %v4792_v14  ;;  %v4791_v44 = vld [vmem:[#allocation15 + $0x2c0] sm:$0xff]  ;;  %v5247_v14 = vld [vmem:[#allocation16 + $0xe8] sm:$0xff]  ;;  %v5260_v13 = vld [vmem:[#allocation16 + $0x150] sm:$0xff] }
 0xd08   : > { %v7648_v1 = vpop.eup %7647 }
 0xd09   : > { %v7650_v49 = vpop.eup %7649  ;;  %v4684_v54 = vadd.f32 1.1920929e-07, %v4680_v38  ;;  %v4690_v8 = vmul.f32 %v7648_v1, %v10123_v29  ;;  %v4797_v38 = vld [vmem:[#allocation15 + $0x2f0] sm:$0xff] }
 0xd0a   : > { %v4689_v30 = vmul.f32 %v7650_v49, %v10126_v25  ;;  %v6986_v1 = vpack.c.bf16 %v4797_v38, %v4791_v44  ;;  %v6988_v49 = vpack.c.bf16 %v5235_v57, %v5234_v24  ;;  %v5230_v44 = vld [vmem:[#allocation16 + $0x60] sm:$0xff]  ;;  %v5231_v38 = vld [vmem:[#allocation16 + $0x68] sm:$0xff]  ;;  %v5248_v57 = vld [vmem:[#allocation16 + $0xf0] sm:$0xff] }
 0xd0b   : > { %7653 = vrsqrt.f32 %v4684_v54  ;;  %v10153_v53 = vmul.f32 %v5918_v60, %v4690_v8  ;;  %v5218_v54 = vld [vmem:[#allocation16] sm:$0xff]  ;;  %v5220_v8 = vld [vmem:[#allocation16 + $0x10] sm:$0xff]  ;;  %v7014_v24 = vpack.c.bf16 %v5231_v38, %v5230_v44 }
 0xd0c   : > { %v10146_v58 = vmul.f32 %v5918_v60, %v4689_v30  ;;  %6989 = vmatprep.subr.bf16.mxu1 %v6988_v49  ;;  %v5237_v30 = vld [vmem:[#allocation16 + $0x98] sm:$0xff]  ;;  %v6994_v47 = vpack.c.bf16 %v5221_v51, %v5220_v8 }
 0xd0d   : > { %v5249_v49 = vld [vmem:[#allocation16 + $0xf8] sm:$0xff] }
 0xd0e   : > { %4896 = vmatmul.mubr.f32.vlgmr.msra.gmra.mrb[44].mxu0 %v10146_v58  ;;  %4985 = vmatmul.mubr.f32.vlgmr.msra.gmra.mrb[48].mxu1 %v10146_v58  ;;  %v5265_v8 = vld [vmem:[#allocation16 + $0x178] sm:$0xff] }
 0xd0f   : > { %6959 = vmatpush1.bf16.msra.mxu0 %v6958_v48  ;;  %4901 = vmatprep.mubr.f32.mxu0 %v10645_v21  ;;  %v5250_v48 = vld [vmem:[#allocation16 + $0x100] sm:$0xff] }
 0xd10   : > { %4990 = vmatprep.mubr.f32.mxu1 %v10645_v21  ;;  %6961 = vmatprep.subr.bf16.mxu0 %v6960_v27  ;;  %v5251_v27 = vld [vmem:[#allocation16 + $0x108] sm:$0xff] }
 0xd11   : > { %v7652_v33 = vpop.eup %7651  ;;  %v7020_v26 = vpack.c.bf16 %v5251_v27, %v5250_v48  ;;  %v5264_v27 = vld [vmem:[#allocation16 + $0x170] sm:$0xff] }
 0xd12   : > { %4902 = vmatmul.mubr.f32.gmra.mrb[46].mxu0 %v10153_v53  ;;  %4991 = vmatmul.mubr.f32.gmra.mrb[50].mxu1 %v10153_v53  ;;  %v4691_v34 = vmul.f32 %v7652_v33, %v10133_v0  ;;  %v7048_v51 = vpack.c.bf16 %v5265_v8, %v5264_v27 }
 0xd13   : > { %6963 = vmatpush1.bf16.msra.mxu0 %v6962_v10  ;;  %4907 = vmatprep.mubr.f32.mxu0 %v10645_v21  ;;  %v5252_v10 = vld [vmem:[#allocation16 + $0x110] sm:$0xff] }
 0xd14   : > { %4996 = vmatprep.mubr.f32.mxu1 %v10645_v21  ;;  %6965 = vmatprep.subr.bf16.mxu0 %v6964_v22  ;;  %v4701_v46 = vmul.f32 %v5918_v60, %v4691_v34  ;;  %v5253_v22 = vld [vmem:[#allocation16 + $0x118] sm:$0xff] }
 0xd15   : > { %v7654_v56 = vpop.eup %7653  ;;  %v7024_v33 = vpack.c.bf16 %v5253_v22, %v5252_v10  ;;  %v5241_v34 = vld [vmem:[#allocation16 + $0xb8] sm:$0xff] }
 0xd16   : > { %4908 = vmatmul.mubr.f32.gmra.mrb[48].mxu0 %v4701_v46  ;;  %4997 = vmatmul.mubr.f32.gmra.mrb[52].mxu1 %v4701_v46  ;;  %v4692_v61 = vmul.f32 %v7654_v56, %v10136_v3 }
 0xd17   : > { %6967 = vmatpush1.bf16.msra.mxu0 %v6966_v52  ;;  %4913 = vmatprep.mubr.f32.mxu0 %v10645_v21  ;;  %v5254_v52 = vld [vmem:[#allocation16 + $0x120] sm:$0xff] }
 0xd18   : > { %5002 = vmatprep.mubr.f32.mxu1 %v10645_v21  ;;  %6969 = vmatprep.subr.bf16.mxu0 %v6968_v62  ;;  %v4702_v41 = vmul.f32 %v5918_v60, %v4692_v61  ;;  %v5219_v60 = vld [vmem:[#allocation16 + $0x8] sm:$0xff] }
 0xd19   : > { %v6990_v42 = vpack.c.bf16 %v5219_v60, %v5218_v54  ;;  %v5255_v62 = vld [vmem:[#allocation16 + $0x128] sm:$0xff]  ;;  %v5262_v54 = vld [vmem:[#allocation16 + $0x160] sm:$0xff]  ;;  %v7016_v60 = vpack.c.bf16 %v5249_v49, %v5248_v57  ;;  %v4819_v57 = vsub.s32 4, %v9174_v7  ;;  %v4823_v49 = vsub.s32 5, %v9174_v7 }
 0xd1a   : > { %4914 = vmatmul.mubr.f32.gmra.mrb[50].mxu0 %v4702_v41  ;;  %5003 = vmatmul.mubr.f32.gmra.mrb[54].mxu1 %v4702_v41  ;;  %v7028_v56 = vpack.c.bf16 %v5255_v62, %v5254_v52  ;;  %v5243_v61 = vld [vmem:[#allocation16 + $0xc8] sm:$0xff] }
 0xd1b   : > { %6971 = vmatpush1.bf16.msra.mxu0 %v6970_v16  ;;  %5073 = vmatprep.mubr.f32.mxu0 %v10645_v21  ;;  %v5256_v16 = vld [vmem:[#allocation16 + $0x130] sm:$0xff] }
 0xd1c   : > { %6973 = vmatprep.subr.bf16.mxu0 %v6972_v39  ;;  %6991 = vmatpush3.bf16.msra.mxu1 %v6990_v42  ;;  %v5257_v39 = vld [vmem:[#allocation16 + $0x138] sm:$0xff]  ;;  %v5263_v42 = vld [vmem:[#allocation16 + $0x168] sm:$0xff] }
 0xd1d   : > { %v7032_v2 = vpack.c.bf16 %v5257_v39, %v5256_v16  ;;  %v7044_v48 = vpack.c.bf16 %v5263_v42, %v5262_v54 }
 0xd1f   : > { %6975 = vmatpush1.bf16.msra.mxu0 %v6974_v23  ;;  %v5244_v23 = vld [vmem:[#allocation16 + $0xd0] sm:$0xff] }
 0xd20   : > { %6977 = vmatprep.subr.bf16.mxu0 %v6976_v28  ;;  %v5245_v28 = vld [vmem:[#allocation16 + $0xd8] sm:$0xff] }
 0xd21   : > { %v7008_v9 = vpack.c.bf16 %v5245_v28, %v5244_v23 }
 0xd23   : > { %6979 = vmatpush1.bf16.msra.mxu0 %v6978_v35  ;;  %v5229_v35 = vld [vmem:[#allocation16 + $0x58] sm:$0xff] }
 0xd24   : > { %6981 = vmatprep.subr.bf16.mxu0 %v6980_v37  ;;  %v7036_v37 = vpack.c.bf16 %v5259_v20, %v5258_v55  ;;  %v7010_v11 = vpack.c.bf16 %v5229_v35, %v5228_v32 }
 0xd27   : > { %6983 = vmatpush1.bf16.msra.mxu0 %v6982_v6  ;;  %v7012_v6 = vpack.c.bf16 %v5247_v14, %v5246_v4 }
 0xd28   : > { %6985 = vmatprep.subr.bf16.mxu0 %v6984_v40  ;;  %v5261_v40 = vld [vmem:[#allocation16 + $0x158] sm:$0xff] }
 0xd2b   : > { %6987 = vmatpush1.bf16.msra.mxu0 %v6986_v1  ;;  %v7040_v1 = vpack.c.bf16 %v5261_v40, %v5260_v13  ;;  %v4803_v13 = vsub.s32 0, %v9174_v7 }
 0xd2c   : > { %7021 = vmatprep.subr.bf16.mxu0 %v7020_v26 }
 0xd2e   : > { %5074 = vmatmul.mubr.f32.vlgmr.msra.gmra.mrb[52].mxu0 %v10146_v58  ;;  %v6992_v58 = vpack.c.bf16 %v5237_v30, %v5236_v63  ;;  %v5232_v63 = vld [vmem:[#allocation16 + $0x70] sm:$0xff]  ;;  %v5233_v30 = vld [vmem:[#allocation16 + $0x78] sm:$0xff] }
 0xd2f   : > { %5079 = vmatprep.mubr.f32.mxu0 %v10645_v21  ;;  %7023 = vmatpush3.bf16.msra.mxu0 %v7020_v26  ;;  %v4815_v26 = vsub.s32 3, %v9174_v7 }
 0xd30   : > { %6993 = vmatprep.subr.bf16.mxu1 %v6992_v58  ;;  %7025 = vmatprep.subr.bf16.mxu0 %v7024_v33  ;;  %v7018_v58 = vpack.c.bf16 %v5233_v30, %v5232_v63 }
 0xd31   : > { %6995 = vmatpush3.bf16.msra.mxu1 %v6994_v47  ;;  %v10173_v47 = vld [vmem:[%s10667_s25] sm:$0x3f] }
 0xd32   : > { %5080 = vmatmul.mubr.f32.gmra.mrb[54].mxu0 %v10153_v53  ;;  %v4804_v38 = vrot.slane %v10173_v47, %v4803_v13  ;;  %v4820_v30 = vrot.slane %v10173_v47, %v4819_v57 }
 0xd33   : > { %5085 = vmatprep.mubr.f32.mxu0 %v10645_v21  ;;  %7027 = vmatpush3.bf16.msra.mxu0 %v7024_v33 }
 0xd34   : > { %7029 = vmatprep.subr.bf16.mxu0 %v7028_v56 }
 0xd36   : > { %5086 = vmatmul.mubr.f32.gmra.mrb[56].mxu0 %v4701_v46  ;;  %v7000_v46 = vpack.c.bf16 %v5241_v34, %v5240_v36 }
 0xd37   : > { %5091 = vmatprep.mubr.f32.mxu0 %v10645_v21  ;;  %v5238_v21 = vld [vmem:[#allocation16 + $0xa0] sm:$0xff]  ;;  %7031 = vmatpush3.bf16.msra.mxu0 %v7028_v56 }
 0xd38   : > { %v6996_v53 = vpack.c.bf16 %v5239_v45, %v5238_v21  ;;  %7033 = vmatprep.subr.bf16.mxu0 %v7032_v2  ;;  %v4816_v21 = vrot.slane %v10173_v47, %v4815_v26 }
 0xd3a   : > { %5092 = vmatmul.mubr.f32.gmra.mrb[58].mxu0 %v4702_v41  ;;  %6997 = vmatprep.subr.bf16.mxu1 %v6996_v53  ;;  %v7004_v41 = vpack.c.bf16 %v5243_v61, %v5242_v31 }
 0xd3b   : > { %6999 = vmatpush3.bf16.msra.mxu1 %v6998_v43  ;;  %7035 = vmatpush3.bf16.msra.mxu0 %v7032_v2 }
 0xd3c   : > { %7001 = vmatprep.subr.bf16.mxu1 %v7000_v46  ;;  %7037 = vmatprep.subr.bf16.mxu0 %v7036_v37 }
 0xd3f   : > { %7003 = vmatpush3.bf16.msra.mxu1 %v7002_v18  ;;  %7039 = vmatpush3.bf16.msra.mxu0 %v7036_v37 }
 0xd40   : > { %7005 = vmatprep.subr.bf16.mxu1 %v7004_v41  ;;  %7041 = vmatprep.subr.bf16.mxu0 %v7040_v1 }
 0xd43   : > { %7007 = vmatpush3.bf16.msra.mxu1 %v7006_v19  ;;  %7043 = vmatpush3.bf16.msra.mxu0 %v7040_v1 }
 0xd44   : > { %7009 = vmatprep.subr.bf16.mxu1 %v7008_v9  ;;  %7045 = vmatprep.subr.bf16.mxu0 %v7044_v48 }
 0xd47   : > { %7011 = vmatpush3.bf16.msra.mxu1 %v7010_v11  ;;  %7047 = vmatpush3.bf16.msra.mxu0 %v7044_v48 }
 0xd48   : > { %7013 = vmatprep.subr.bf16.mxu1 %v7012_v6  ;;  %7049 = vmatprep.subr.bf16.mxu0 %v7048_v51 }
 0xd4b   : > { %7015 = vmatpush3.bf16.msra.mxu1 %v7014_v24  ;;  %7051 = vmatpush3.bf16.msra.mxu0 %v7048_v51 }
 0xd4c   : > { %7017 = vmatprep.subr.bf16.mxu1 %v7016_v60 }
 0xd4f   : > { %7019 = vmatpush3.bf16.msra.mxu1 %v7018_v58  ;;  %v4824_v58 = vrot.slane %v10173_v47, %v4823_v49 }
 0xde1   : > { %v4897_v45 = vpop.f32.mrb[44].mxu0  ;;  %v10176_v10 = vpop.f32.mrb[48].mxu1 }
 0xde2   : > { %v10178_v53 = vpop.f32.mrb[45].mxu0  ;;  %v4988_v22 = vpop.f32.mrb[49].mxu1  ;;  %v4898_v42 = vadd.f32 %v4897_v45, %v4804_v38 }
 0xde3   : > { %v4989_v5 = vadd.f32 %v4988_v22, %v4816_v21 }
 0xde5   : > { %v5098_v15 = vmul.f32 %v4989_v5, %v4989_v5  ;;  %v4903_v33 = vpop.f32.mrb[46].mxu0  ;;  %v10180_v43 = vpop.f32.mrb[50].mxu1 }
 0xde6   : > { %v10182_v36 = vpop.f32.mrb[47].mxu0  ;;  %v4994_v34 = vpop.f32.mrb[51].mxu1 }
 0xde7   : > { %v5110_v52 = vmul.f32 %v5098_v15, %v4989_v5  ;;  %v4995_v46 = vadd.f32 %v4994_v34, %v4816_v21 }
 0xde9   : > { %v5122_v62 = vmul.f32 0.044715, %v5110_v52  ;;  %v5101_v12 = vmul.f32 %v4995_v46, %v4995_v46  ;;  %v4909_v59 = vpop.f32.mrb[48].mxu0  ;;  %v10184_v56 = vpop.f32.mrb[52].mxu1 }
 0xdea   : > { %v10186_v18 = vpop.f32.mrb[49].mxu0  ;;  %v5000_v31 = vpop.f32.mrb[53].mxu1 }
 0xdeb   : > { %v5134_v61 = vadd.f32 %v5122_v62, %v4989_v5  ;;  %v5113_v16 = vmul.f32 %v5101_v12, %v4995_v46  ;;  %v5001_v41 = vadd.f32 %v5000_v31, %v4816_v21 }
 0xded   : > { %v5146_v39 = vmul.f32 0.7978846, %v5134_v61  ;;  %v5125_v50 = vmul.f32 0.044715, %v5113_v16  ;;  %v5104_v17 = vmul.f32 %v5001_v41, %v5001_v41  ;;  %v10188_v2 = vpop.f32.mrb[50].mxu0  ;;  %v10190_v19 = vpop.f32.mrb[54].mxu1 }
 0xdee   : > { %v10192_v23 = vpop.f32.mrb[51].mxu0  ;;  %v5006_v28 = vpop.f32.mrb[55].mxu1  ;;  %v4916_v13 = vadd.f32 %v10188_v2, %v4804_v38 }
 0xdef   : > { %7655 = vtanh.f32 %v5146_v39  ;;  %v5137_v55 = vadd.f32 %v5125_v50, %v4995_v46  ;;  %v5116_v9 = vmul.f32 %v5104_v17, %v5001_v41  ;;  %v10194_v20 = vadd.f32 %v5006_v28, %v4816_v21 }
 0xdf0   : > { %v4904_v21 = vadd.f32 %v4903_v33, %v4804_v38  ;;  %v4910_v39 = vadd.f32 %v4909_v59, %v4804_v38 }
 0xdf1   : > { %v5149_v32 = vmul.f32 0.7978846, %v5137_v55  ;;  %v5128_v35 = vmul.f32 0.044715, %v5116_v9  ;;  %v5107_v37 = vmul.f32 %v10194_v20, %v10194_v20 }
 0xdf3   : > { %7657 = vtanh.f32 %v5149_v32  ;;  %v5140_v11 = vadd.f32 %v5128_v35, %v5001_v41  ;;  %v5119_v4 = vmul.f32 %v5107_v37, %v10194_v20 }
 0xdf5   : > { %v5152_v14 = vmul.f32 0.7978846, %v5140_v11  ;;  %v5131_v6 = vmul.f32 0.044715, %v5119_v4 }
 0xdf7   : > { %7659 = vtanh.f32 %v5152_v14  ;;  %v5143_v40 = vadd.f32 %v5131_v6, %v10194_v20 }
 0xdf9   : > { %v7656_v44 = vpop.eup %7655  ;;  %v5155_v24 = vmul.f32 0.7978846, %v5143_v40 }
 0xdfa   : > { %v5170_v1 = vadd.f32 1.0, %v7656_v44 }
 0xdfb   : > { %7661 = vtanh.f32 %v5155_v24 }
 0xdfc   : > { %v5182_v54 = vmul.f32 0.5, %v5170_v1 }
 0xdfd   : > { %v7658_v60 = vpop.eup %7657 }
 0xdfe   : > { %v5194_v63 = vmul.f32 %v5182_v54, %v4989_v5  ;;  %v5173_v48 = vadd.f32 1.0, %v7658_v60 }
 0xe00   : > { %v10206_v27 = vmul.f32 %v5194_v63, %v4898_v42  ;;  %v5185_v8 = vmul.f32 0.5, %v5173_v48 }
 0xe01   : > { %v7660_v51 = vpop.eup %7659  ;;  %v5075_v26 = vpop.f32.mrb[52].mxu0 }
 0xe02   : > { %v10208_v22 = vadd.f32 %v5075_v26, %v4820_v30  ;;  %v5077_v15 = vpop.f32.mrb[53].mxu0  ;;  %v5197_v34 = vmul.f32 %v5185_v8, %v4995_v46  ;;  %v5176_v52 = vadd.f32 1.0, %v7660_v51 }
 0xe03   : > { %v10210_v62 = vadd.f32 %v5077_v15, %v4824_v58 }
 0xe04   : > { %v5099_v45 = vmul.f32 %v10208_v22, %v10208_v22  ;;  %v10214_v5 = vmul.f32 %v5197_v34, %v4904_v21  ;;  %v5188_v12 = vmul.f32 0.5, %v5176_v52 }
 0xe05   : > { %v5100_v31 = vmul.f32 %v10210_v62, %v10210_v62  ;;  %v5081_v61 = vpop.f32.mrb[54].mxu0  ;;  %v7662_v16 = vpop.eup %7661 }
 0xe06   : > { %v5111_v33 = vmul.f32 %v5099_v45, %v10208_v22  ;;  %v10219_v50 = vadd.f32 %v5081_v61, %v4820_v30  ;;  %v5083_v46 = vpop.f32.mrb[55].mxu0  ;;  %v5200_v17 = vmul.f32 %v5188_v12, %v5001_v41  ;;  %v5179_v9 = vadd.f32 1.0, %v7662_v16 }
 0xe07   : > { %v5112_v28 = vmul.f32 %v5100_v31, %v10210_v62  ;;  %v10222_v55 = vadd.f32 %v5083_v46, %v4824_v58 }
 0xe08   : > { %v5123_v32 = vmul.f32 0.044715, %v5111_v33  ;;  %v5102_v35 = vmul.f32 %v10219_v50, %v10219_v50  ;;  %v10226_v37 = vmul.f32 %v5200_v17, %v4910_v39  ;;  %v5191_v14 = vmul.f32 0.5, %v5179_v9 }
 0xe09   : > { %v5124_v11 = vmul.f32 0.044715, %v5112_v28  ;;  %v5103_v59 = vmul.f32 %v10222_v55, %v10222_v55  ;;  %v5087_v4 = vpop.f32.mrb[56].mxu0  ;;  %v4807_v9 = vsub.s32 1, %v9174_v7 }
 0xe0a   : > { %v5135_v41 = vadd.f32 %v5123_v32, %v10208_v22  ;;  %v5114_v6 = vmul.f32 %v5102_v35, %v10219_v50  ;;  %v10233_v40 = vadd.f32 %v5087_v4, %v4820_v30  ;;  %v5089_v44 = vpop.f32.mrb[57].mxu0  ;;  %v5203_v49 = vmul.f32 %v5191_v14, %v10194_v20 }
 0xe0b   : > { %v5136_v1 = vadd.f32 %v5124_v11, %v10210_v62  ;;  %v5115_v24 = vmul.f32 %v5103_v59, %v10222_v55  ;;  %v10237_v57 = vadd.f32 %v5089_v44, %v4824_v58  ;;  %v4811_v11 = vsub.s32 2, %v9174_v7 }
 0xe0c   : > { %v5147_v54 = vmul.f32 0.7978846, %v5135_v41  ;;  %v5126_v60 = vmul.f32 0.044715, %v5114_v6  ;;  %v5105_v2 = vmul.f32 %v10233_v40, %v10233_v40  ;;  %v10244_v8 = vmul.f32 %v5203_v49, %v4916_v13 }
 0xe0d   : > { %v5148_v38 = vmul.f32 0.7978846, %v5136_v1  ;;  %v5127_v42 = vmul.f32 0.044715, %v5115_v24  ;;  %v5106_v63 = vmul.f32 %v10237_v57, %v10237_v57  ;;  %v5093_v48 = vpop.f32.mrb[58].mxu0  ;;  %v4808_v6 = vrot.slane %v10173_v47, %v4807_v9 }
 0xe0e   : > { %7663 = vtanh.f32 %v5147_v54  ;;  %v5138_v51 = vadd.f32 %v5126_v60, %v10219_v50  ;;  %v5117_v26 = vmul.f32 %v5105_v2, %v10233_v40  ;;  %v10248_v21 = vadd.f32 %v5093_v48, %v4820_v30  ;;  %v5095_v20 = vpop.f32.mrb[59].mxu0 }
 0xe0f   : > { %7665 = vtanh.f32 %v5148_v38  ;;  %v5139_v15 = vadd.f32 %v5127_v42, %v10222_v55  ;;  %v5118_v34 = vmul.f32 %v5106_v63, %v10237_v57  ;;  %v10252_v52 = vadd.f32 %v5095_v20, %v4824_v58 }
 0xe10   : > { %v5150_v45 = vmul.f32 0.7978846, %v5138_v51  ;;  %v5129_v12 = vmul.f32 0.044715, %v5117_v26  ;;  %v5108_v31 = vmul.f32 %v10248_v21, %v10248_v21  ;;  %v4812_v24 = vrot.slane %v10173_v47, %v4811_v11 }
 0xe11   : > { %v5151_v61 = vmul.f32 0.7978846, %v5139_v15  ;;  %v5130_v16 = vmul.f32 0.044715, %v5118_v34  ;;  %v5109_v39 = vmul.f32 %v10252_v52, %v10252_v52  ;;  %v4900_v38 = vadd.f32 %v10178_v53, %v4808_v6 }
 0xe12   : > { %7667 = vtanh.f32 %v5150_v45  ;;  %v5141_v30 = vadd.f32 %v5129_v12, %v10233_v40  ;;  %v5120_v33 = vmul.f32 %v5108_v31, %v10248_v21  ;;  %v4987_v48 = vadd.f32 %v10176_v10, %v4812_v24 }
 0xe13   : > { %7669 = vtanh.f32 %v5151_v61  ;;  %v5142_v46 = vadd.f32 %v5130_v16, %v10237_v57  ;;  %v5121_v58 = vmul.f32 %v5109_v39, %v10252_v52  ;;  %v4906_v31 = vadd.f32 %v10182_v36, %v4808_v6 }
 0xe14   : > { %v5153_v17 = vmul.f32 0.7978846, %v5141_v30  ;;  %v5132_v28 = vmul.f32 0.044715, %v5120_v33  ;;  %v4912_v36 = vadd.f32 %v10186_v18, %v4808_v6  ;;  %v4918_v18 = vadd.f32 %v10192_v23, %v4808_v6 }
 0xe15   : > { %v5154_v32 = vmul.f32 0.7978846, %v5142_v46  ;;  %v5133_v35 = vmul.f32 0.044715, %v5121_v58 }
 0xe16   : > { %7671 = vtanh.f32 %v5153_v17  ;;  %v5144_v59 = vadd.f32 %v5132_v28, %v10248_v21 }
 0xe17   : > { %7673 = vtanh.f32 %v5154_v32  ;;  %v5145_v4 = vadd.f32 %v5133_v35, %v10252_v52 }
 0xe18   : > { %v7664_v14 = vpop.eup %7663  ;;  %v5156_v13 = vmul.f32 0.7978846, %v5144_v59 }
 0xe19   : > { %v7666_v41 = vpop.eup %7665  ;;  %v5157_v44 = vmul.f32 0.7978846, %v5145_v4  ;;  %v5171_v1 = vadd.f32 1.0, %v7664_v14 }
 0xe1a   : > { %7675 = vtanh.f32 %v5156_v13  ;;  %v5172_v49 = vadd.f32 1.0, %v7666_v41 }
 0xe1b   : > { %7677 = vtanh.f32 %v5157_v44  ;;  %v5183_v54 = vmul.f32 0.5, %v5171_v1 }
 0xe1c   : > { %v7668_v7 = vpop.eup %7667  ;;  %v5184_v60 = vmul.f32 0.5, %v5172_v49 }
 0xe1d   : > { %v7670_v2 = vpop.eup %7669  ;;  %v5195_v42 = vmul.f32 %v5183_v54, %v10208_v22  ;;  %v5174_v63 = vadd.f32 1.0, %v7668_v7  ;;  %v4993_v22 = vadd.f32 %v10180_v43, %v4812_v24  ;;  %v4999_v43 = vadd.f32 %v10184_v56, %v4812_v24 }
 0xe1e   : > { %v5175_v51 = vadd.f32 1.0, %v7670_v2  ;;  %v5196_v26 = vmul.f32 %v5184_v60, %v10210_v62  ;;  %v5005_v56 = vadd.f32 %v10190_v19, %v4812_v24 }
 0xe1f   : > { %v5207_v20 = vmul.f32 %v5195_v42, %v4900_v38  ;;  %v5186_v15 = vmul.f32 0.5, %v5174_v63 }
 0xe20   : > { %v7672_v47 = vpop.eup %7671  ;;  %v5187_v34 = vmul.f32 0.5, %v5175_v51  ;;  %v5208_v45 = vmul.f32 %v5196_v26, %v4987_v48 }
 0xe21   : > { %v7674_v12 = vpop.eup %7673  ;;  %5337 = vmatprep.mubr.f32.mxu1 %v5207_v20  ;;  %v5198_v61 = vmul.f32 %v5186_v15, %v10219_v50  ;;  %v5177_v53 = vadd.f32 1.0, %v7672_v47 }
 0xe22   : > { %v5199_v16 = vmul.f32 %v5187_v34, %v10222_v55  ;;  %5338 = vmatmul.mubr.f32.vlgmr.msra.gmra.mrb[56].mxu1 %v10206_v27  ;;  %6598 = vmatprep.mubr.f32.mxu0 %v5208_v45  ;;  %v5178_v10 = vadd.f32 1.0, %v7674_v12 }
 0xe23   : > { %v5210_v62 = vmul.f32 %v5198_v61, %v4906_v31  ;;  %v5189_v39 = vmul.f32 0.5, %v5177_v53 }
 0xe24   : > { %v7676_v30 = vpop.eup %7675  ;;  %v5211_v33 = vmul.f32 %v5199_v16, %v4993_v22  ;;  %v5190_v46 = vmul.f32 0.5, %v5178_v10 }
 0xe25   : > { %v7678_v58 = vpop.eup %7677  ;;  %5342 = vmatprep.mubr.f32.mxu1 %v5210_v62  ;;  %v5201_v50 = vmul.f32 %v5189_v39, %v10233_v40  ;;  %v5180_v17 = vadd.f32 1.0, %v7676_v30 }
 0xe26   : > { %5343 = vmatmul.mubr.f32.gmra.mrb[58].mxu1 %v10214_v5  ;;  %6599 = vmatmul.mubr.f32.vlgmr.msra.gmra.mrb[60].mxu0 %v5211_v33  ;;  %v5202_v27 = vmul.f32 %v5190_v46, %v10237_v57  ;;  %v5181_v55 = vadd.f32 1.0, %v7678_v58 }
 0xe27   : > { %v5213_v28 = vmul.f32 %v5201_v50, %v4912_v36  ;;  %v5192_v9 = vmul.f32 0.5, %v5180_v17 }
 0xe28   : > { %v5214_v32 = vmul.f32 %v5202_v27, %v4999_v43  ;;  %v5193_v35 = vmul.f32 0.5, %v5181_v55 }
 0xe29   : > { %5347 = vmatprep.mubr.f32.mxu1 %v5213_v28  ;;  %v5204_v40 = vmul.f32 %v5192_v9, %v10248_v21 }
 0xe2a   : > { %5348 = vmatmul.mubr.f32.gmra.mrb[60].mxu1 %v10226_v37  ;;  %6601 = vmatprep.mubr.f32.mxu0 %v5214_v32  ;;  %v5205_v5 = vmul.f32 %v5193_v35, %v10252_v52 }
 0xe2b   : > { %v5216_v57 = vmul.f32 %v5204_v40, %v4918_v18 }
 0xe2c   : > { %v5217_v11 = vmul.f32 %v5205_v5, %v5005_v56 }
 0xe2d   : > { %5352 = vmatprep.mubr.f32.mxu1 %v5216_v57 }
 0xe2e   : > { %5353 = vmatmul.mubr.f32.gmra.mrb[62].mxu1 %v10244_v8  ;;  %6602 = vmatmul.mubr.f32.gmra.mrb[62].mxu0 %v5217_v11 }
 0xe2f   : > { %7920 = shalt.err (!%p7917_p9)
}
 0xe30   : > { %s7921_s9 = scalar_lea.hbm %s10301_s30, 512  ;;  %s7925_s27 = scalar_lea.hbm %s10670_s15, 3072 }
 0xe31   : > { %p7922_p12 = scmp.ne.s32.totalorder %s10301_s30, %s7921_s9  ;;  %p7926_p10 = scmp.lt.u32.totalorder %s10301_s30, %s10670_s15 }
 0xe32   : > { %p7927_p1 = scmp.lt.u32.totalorder %s7925_s27, %s7921_s9  ;;  %p7929_p11 = scmp.lt.u32.totalorder %s7921_s9, %s10301_s30 }
 0xe33   : > { %p7923_p4 = pnand %p7922_p12, %p10671_p6 }
 0xe34   : > { %p7928_p8 = por %p7927_p1, %p7926_p10 }
 0xe35   : > { %p7924_p2 = pneg %p7923_p4 }
 0xe36   : > { %p7930_p7 = por %p7929_p11, %p7928_p8 }
 0xe38   : > { %p7931_p3 = pnand %p7930_p7, %p7924_p2 }
 0xe3a   : > { %7934 = shalt.err (!%p7931_p3)
}
 0xe3b   : > { %s8180_s4 = smov 128   ;;  %s8181_s0 = smov 8  }
 0xe3c   : > { %7139 = dma.vmem_to_hbm [thread:$0]  (%p10671_p6), %s10291_s19, 512, %s10301_s30, %s5457_s21, %s8180_s4, %s8180_s4, %s8181_s0  }
 0xe3d   : > { %s10672_s3 = sld [smem:[#allocation91_spill]]  ;;  %s806_s19 = scalar_lea.vmem [#allocation17], %s8764_s22 }
 0xe3e   : > { %s5472_s30 = sshll.u32 %s806_s19, 4  ;;  %s10673_s9 = sld [smem:[#allocation92_spill]]  ;;  %s10337_s30 = int_to_ptr.vmem [resolvable:$true] %s5472_s30 }
 0xe3f   : > { %s5452_s8 = scalar_lea.sflag [#allocation4], %s8761_s2  ;;  %s7935_s27 = scalar_lea.vmem %s10337_s30, 512 }
 0xe40   : > { %p7936_p5 = scmp.ne.s32.totalorder %s10337_s30, %s7935_s27  ;;  %s8182_s5 = smov [#allocation17]  }
 0xe41   : > { %s7939_s11 = sshll.u32 %s8182_s5, 4  ;;  %s7940_s11 = int_to_ptr.vmem [resolvable:$false] %s7939_s11 }
 0xe42   : > { %p7937_p0 = pnand %p7936_p5, %p10671_p6  ;;  %s7941_s28 = scalar_lea.vmem %s7940_s11, 1024 }
 0xe43   : > { %v5919_v37 = vld [vmem:[%s10672_s3] ss:$0 sm:$0xff]  ;;  %p7942_p9 = scmp.lt.s32.totalorder %s10337_s30, %s7940_s11  ;;  %p7943_p12 = scmp.lt.s32.totalorder %s7941_s28, %s7935_s27 }
 0xe44   : > { %s10345_s25 = scalar_lea.hbm %s10673_s9, %s5923_s16  ;;  %p7938_p13 = pneg %p7937_p0 }
 0xe45   : > { %p7944_p4 = por %p7943_p12, %p7942_p9 }
 0xe47   : > { %p7945_p2 = pnand %p7944_p4, %p7938_p13 }
 0xef5   : > { %v6170_v19 = vpop.f32.mrb[56].mxu1 }
 0xef6   : > { %v6171_v23 = vpop.f32.mrb[57].mxu1 }
 0xef7   : > { %v6172_v8 = vadd.f32 %v6171_v23, %v6170_v19 }
 0xef9   : > { %v6173_v21 = vpop.f32.mrb[58].mxu1  ;;  %v6600_v52 = vpop.f32.mrb[60].mxu0  ;;  %v5340_v59 = vadd.f32 %v6172_v8, %v5919_v37 }
 0xefa   : > { %v6174_v4 = vpop.f32.mrb[59].mxu1  ;;  %v5424_v14 = vpop.f32.mrb[61].mxu0 }
 0xefb   : > { %v6175_v13 = vadd.f32 %v6174_v4, %v6173_v21  ;;  %v5425_v41 = vadd.f32 %v5424_v14, %v5340_v59 }
 0xefd   : > { %v5345_v6 = vadd.f32 %v6175_v13, %v5919_v37  ;;  %v5443_v44 = vadd.f32 %v5425_v41, %v10126_v25  ;;  %v6176_v1 = vpop.f32.mrb[60].mxu1 }
 0xefe   : > { %v6177_v24 = vpop.f32.mrb[61].mxu1 }
 0xeff   : > { %v5430_v49 = vadd.f32 %v6600_v52, %v5345_v6  ;;  %5447 = vst [vmem:[%s806_s19] sm:$0xff] %v5443_v44  ;;  %v6178_v54 = vadd.f32 %v6177_v24, %v6176_v1 }
 0xf01   : > { %v5444_v7 = vadd.f32 %v5430_v49, %v10123_v29  ;;  %v6179_v60 = vpop.f32.mrb[62].mxu1  ;;  %v6603_v2 = vpop.f32.mrb[62].mxu0  ;;  %v5350_v38 = vadd.f32 %v6178_v54, %v5919_v37 }
 0xf02   : > { %v6180_v42 = vpop.f32.mrb[63].mxu1  ;;  %v5434_v63 = vpop.f32.mrb[63].mxu0 }
 0xf03   : > { %5448 = vst [vmem:[%s806_s19 + $0x8] sm:$0xff] %v5444_v7  ;;  %v6181_v48 = vadd.f32 %v6180_v42, %v6179_v60  ;;  %v5435_v51 = vadd.f32 %v5434_v63, %v5350_v38 }
 0xf05   : > { %v5355_v25 = vadd.f32 %v6181_v48, %v5919_v37  ;;  %v5445_v26 = vadd.f32 %v5435_v51, %v10133_v0 }
 0xf07   : > { %v5440_v20 = vadd.f32 %v6603_v2, %v5355_v25  ;;  %5449 = vst [vmem:[%s806_s19 + $0x10] sm:$0xff] %v5445_v26 }
 0xf09   : > { %v5446_v29 = vadd.f32 %v5440_v20, %v10136_v3 }
 0xf0b   : > { %5450 = vst [vmem:[%s806_s19 + $0x18] sm:$0xff] %v5446_v29 }
 0xf0c   : > { %7948 = shalt.err (!%p7945_p2)
}
 0xf0d   : > { %s7949_s24 = scalar_lea.hbm %s10345_s25, 512  ;;  %s7953_s3 = scalar_lea.hbm %s10673_s9, 3072 }
 0xf0e   : > { %p7950_p10 = scmp.ne.s32.totalorder %s10345_s25, %s7949_s24  ;;  %p7954_p11 = scmp.lt.u32.totalorder %s10345_s25, %s10673_s9 }
 0xf0f   : > { %p7955_p7 = scmp.lt.u32.totalorder %s7953_s3, %s7949_s24  ;;  %p7957_p5 = scmp.lt.u32.totalorder %s7949_s24, %s10345_s25 }
 0xf10   : > { %p7951_p1 = pnand %p7950_p10, %p10671_p6 }
 0xf11   : > { %p7956_p3 = por %p7955_p7, %p7954_p11 }
 0xf12   : > { %p7952_p8 = pneg %p7951_p1 }
 0xf13   : > { %p7958_p0 = por %p7957_p5, %p7956_p3 }
 0xf15   : > { %p7959_p13 = pnand %p7958_p0, %p7952_p8 }
 0xf17   : > { %7962 = shalt.err (!%p7959_p13)
}
 0xf18   : > { %7138 = dma.vmem_to_hbm [thread:$0]  (%p10671_p6), %s10337_s30, 512, %s10345_s25, %s5452_s8, %s8180_s4, %s8180_s4, %s8181_s0  }
 0xf19 PF: > { %s10674_s21 = sld [smem:[#allocation40_spill]]  ;;  %s10675_s27 = sld [smem:[#allocation59_spill]] }
 0xf1a   : > { %p7180_p9 = scmp.ge.s32.totalorder %s8141_s13, 2 }
 0xf1f   : > { %s5505_s5 = sand.u32 1, %s10674_s21   ;;  %p10676_p12 = scmp.ne.s32.totalorder %s10675_s27, 0 }
 0xf20   : > { %s5506_s11 = scalar_lea.sflag [#allocation4], %s5505_s5 }
 0xf21   : > { %p7162_p4 = pnand %p7180_p9, %p10676_p12 }
 0xf23   : > { %8068 = dma.done.wait (!%p7162_p4), %s5506_s11, 512  }
 0xf24   : > { %8070 = vsyncadd (!%p7162_p4), %s5506_s11, 4294966784  ;;  %s5515_s18 = scalar_lea.sflag [#allocation19], %s5505_s5 }
 0xf25   : > { %8072 = dma.done.wait (!%p7162_p4), %s5515_s18, 512  }
 0xf26   : > { %8074 = vsyncadd (!%p7162_p4), %s5515_s18, 4294966784  ;;  %s40_s13 = sadd.s32 1, %s8141_s13   ;;  %s10678_s18 = sld [smem:[#allocation37_spill]] }
 0xf27   : > { %p10379_p2 = scmp.ge.s32.totalorder %s40_s13, 8   ;;  %s10679_s4 = sld [smem:[#allocation55_spill]] }
 0xf28   : > { %s10680_s21 = sld [smem:[#allocation38_spill]]  ;;  %s10682_s24 = sld [smem:[#allocation39_spill]] }
 0xf29   : > { %s10681_s0 = sld [smem:[#allocation53_spill]]  ;;  %s10683_s30 = sld [smem:[#allocation52_spill]] }
 0xf2a   : > { %s10684_s27 = sld [smem:[#allocation41_spill]]  ;;  %s10685_s8 = sld [smem:[#allocation50_spill]] }
 0xf2b   : > { %s10686_s16 = sld [smem:[#allocation44_spill]]  ;;  %s10687_s17 = sld [smem:[#allocation46_spill]] }
 0xf2c   : > { %s10688_s3 = sld [smem:[#allocation48_spill]]  ;;  %s10689_s19 = smov %s8085_s20 }
 0xf2d   : > { %s10690_s20 = smov %s10679_s4  ;;  %s10691_s22 = smov %s8097_s23 }
 0xf2e   : > { %s10693_s25 = smov %s8109_s26  ;;  %s10695_s28 = smov %s8121_s29 }
 0xf2f   : > { %s10692_s23 = smov %s10681_s0  ;;  %s10694_s26 = smov %s10683_s30 }
 0xf30   : > { %s10696_s29 = smov %s10685_s8  ;;  %39 = sbr.rel (!%p10379_p2) target bundleno = 32 (0x20), region = 213 }
 0xf31   : > { %s10697_s30 = smov %s10686_s16  ;;  %s10698_s16 = smov %s8137_s14 }
 0xf32   : > { %s10699_s14 = smov %s10688_s3 }
 0xf37   :  { %5520 = vsyncpa [#allocation3], 1 }
 0xf38   :  { %5522 = vsyncpa [#allocation3 + $0x1], 1 }
 0xf39   :  { %5523 = vsyncpa [#allocation6], 1 }
 0xf3a   :  { %5525 = vsyncpa [#allocation6 + $0x1], 1 }
 0xf3b   :  { %5526 = vsyncpa [#allocation9], 1 }
 0xf3c   :  { %5527 = vsyncpa [#allocation12], 1 }
 0xf3d   :  { %5528 = vsyncpa [#allocation4], 1 }
 0xf3e   :  { %5530 = vsyncpa [#allocation4 + $0x1], 1 }
 0xf3f   :  { %5531 = vsyncpa [#allocation19], 1 }
 0xf40   :  { %5533 = vsyncpa [#allocation19 + $0x1], 1 }

</bundles_post_ra>
